<compile_context>
chip_gen: v7x
topology: tpu7x:2x2x1
jax: 0.10.0
libtpu: 0.0.40
codegen_flags: <defaults>
</compile_context>

<pallas_src>
import jax
import jax.numpy as jnp
import numpy as np
from jax.experimental import pallas as pl
from jax.experimental.pallas import tpu as pltpu


# ------------------------------- the kernel -------------------------------- #


def _make_kernel(B):
    NP2 = 256 * B   # expanded conv2 rows (all four layer-2 pool taps, t2-major)
    NA2 = 64 * B    # rows after the layer-2 pool max        (dd3, t3, hw, b)
    ND3 = 16 * B    # rows per conv3 kernel-offset block     (t3, hw, b)
    NT3 = 4 * B     # rows per layer-3 pool-tap block        (hw, b)
    f32 = jnp.float32

    def kernel(xp_ref, ebd_ref, wsm_ref, w1b_ref, bias_ref, o_ref):
        # ---- layer 1: conv1(1x1, 1->8) + bias + ReLU + 2x2 max-pool --------
        # One MXU GEMM expands the gathered input taps over the 8 conv1
        # channels (w1-scaled, block-diagonal over the 4 layer-1 pool taps);
        # the pool is a max over the four 72-wide column blocks.
        pre = jnp.dot(xp_ref[...], ebd_ref[...], preferred_element_type=f32)
        pre = jnp.maximum(pre + bias_ref[0:1, :], 0.0)               # (NP2, 288)
        p2t = jnp.maximum(jnp.maximum(pre[:, 0:72], pre[:, 72:144]),
                          jnp.maximum(pre[:, 144:216], pre[:, 216:288]))

        # ---- layer 2: conv2(3x3, 8->16) + bias + ReLU + 2x2 max-pool -------
        # One GEMM covers all four layer-2 pool taps; pool = row-block max.
        a2 = jnp.dot(p2t, wsm_ref[0:72, 0:16], preferred_element_type=f32)
        a2 = jnp.maximum(a2 + bias_ref[1:2, 0:16], 0.0)              # (NP2, 16)
        a2 = jnp.maximum(jnp.maximum(a2[0:NA2, :], a2[NA2:2 * NA2, :]),
                         jnp.maximum(a2[2 * NA2:3 * NA2, :], a2[3 * NA2:4 * NA2, :]))

        # ---- layer 3: conv3(2x2, 16->32) + bias + ReLU + 2x2 max-pool ------
        # One GEMM per 2x2 kernel offset (aligned 16B-row blocks), accumulated.
        y3 = jnp.dot(a2[0:ND3, :], wsm_ref[72:88, 0:32], preferred_element_type=f32)
        y3 = y3 + jnp.dot(a2[ND3:2 * ND3, :], wsm_ref[88:104, 0:32],
                          preferred_element_type=f32)
        y3 = y3 + jnp.dot(a2[2 * ND3:3 * ND3, :], wsm_ref[104:120, 0:32],
                          preferred_element_type=f32)
        y3 = y3 + jnp.dot(a2[3 * ND3:4 * ND3, :], wsm_ref[120:136, 0:32],
                          preferred_element_type=f32)
        y3 = jnp.maximum(y3 + bias_ref[2:3, 0:32], 0.0)              # (ND3, 32)
        a3 = jnp.maximum(jnp.maximum(y3[0:NT3, :], y3[NT3:2 * NT3, :]),
                         jnp.maximum(y3[2 * NT3:3 * NT3, :], y3[3 * NT3:4 * NT3, :]))
        # a3: (4B, 32), rows (hw, b), cols = conv3 channel (r*8 + c').

        # ---- MLP head ------------------------------------------------------
        # fc1: torch's view(-1, 32) permutation is folded into w1b, an r-block-
        # diagonal repack of fc1, applied once per spatial tap hw.
        h1 = jnp.dot(a3[0:B, :], w1b_ref[0:32, :], preferred_element_type=f32)
        h1 = h1 + jnp.dot(a3[B:2 * B, :], w1b_ref[32:64, :], preferred_element_type=f32)
        h1 = h1 + jnp.dot(a3[2 * B:3 * B, :], w1b_ref[64:96, :], preferred_element_type=f32)
        h1 = h1 + jnp.dot(a3[3 * B:4 * B, :], w1b_ref[96:128, :], preferred_element_type=f32)
        h1 = jnp.maximum(h1 + bias_ref[3:4, 0:256], 0.0)             # (B, 256), cols (r, o)

        # fc2 + fc3 per r-block with shared weights; the final logits are
        # written directly in torch's (b, r) row order.
        for r in range(4):
            h2 = jnp.dot(h1[:, r * 64:(r + 1) * 64], wsm_ref[136:200, 0:64],
                         preferred_element_type=f32)
            h2 = jnp.maximum(h2 + bias_ref[4:5, 0:64], 0.0)          # (B, 64)
            o_r = jnp.dot(h2, wsm_ref[200:264, 0:10], preferred_element_type=f32)
            o_r = o_r + bias_ref[5:6, 0:10]                          # (B, 10)
            for b in range(B):
                o_ref[b * 4 + r: b * 4 + r + 1, :] = o_r[b:b + 1, :]

    return kernel


def _vmem():
    return pl.BlockSpec(memory_space=pltpu.MemorySpace.VMEM)


def classifier_pallas(xp, ebd, wsm, w1big, bias, B):
    return pl.pallas_call(
        _make_kernel(B),
        out_shape=jax.ShapeDtypeStruct((4 * B, 10), jnp.float32),
        in_specs=[_vmem() for _ in range(5)],
        out_specs=_vmem(),
    )(xp, ebd, wsm, w1big, bias)


# --------------------- input tap / im2col gather (XLA) --------------------- #


def build_patch_input(x):
    """x: (B, 1, 28, 28) -> (256*B, 36) expanded pool-tap / im2col matrix."""
    B = x.shape[0]
    img = x[:, 0].astype(jnp.float32)                           # (B, 28, 28)
    # layer-1 pool taps: raw position (2*i1 + p1, 2*j1 + q1), i1, j1 in 0..11
    x1 = jnp.stack([img[:, p1:p1 + 23:2, q1:q1 + 23:2]          # (B, 12, 12)
                    for p1 in (0, 1) for q1 in (0, 1)])         # (4t1, B, 12, 12)
    # layer-2 pool taps x conv2 offsets: i1 = 2*i2 + p2 + di2, i2 in 0..4
    x2 = jnp.stack([
        jnp.stack([x1[:, :, p2 + di2:p2 + di2 + 9:2, q2 + dj2:q2 + dj2 + 9:2]
                   for di2 in range(3) for dj2 in range(3)])    # (9dd2, 4t1, B, 5, 5)
        for p2 in (0, 1) for q2 in (0, 1)])                     # (4t2, 9dd2, 4t1, B, 5, 5)
    # layer-3 pool taps x conv3 offsets: i2 = 2*io3 + p3 + di3, io3 in 0..1
    x3 = jnp.stack([
        jnp.stack([x2[:, :, :, :, p3 + di3:p3 + di3 + 3:2, q3 + dj3:q3 + dj3 + 3:2]
                   for p3 in (0, 1) for q3 in (0, 1)])          # (4t3, 4t2, 9dd2, 4t1, B, 2, 2)
        for di3 in (0, 1) for dj3 in (0, 1)])                   # (4dd3, ...)
    # axes of x3: (dd3, t3, t2, dd2, t1, b, io3, jo3)
    xp = jnp.transpose(x3, (2, 0, 1, 6, 7, 5, 4, 3))            # (t2, dd3, t3, io3, jo3, b, t1, dd2)
    return xp.reshape(256 * B, 36)


# --------------------------------- params ---------------------------------- #


def init_params(key):
    ks = jax.random.split(key, 12)

    def w(k, shape, fan_in):
        return jax.random.normal(k, shape, jnp.float32) * (1.0 / fan_in) ** 0.5

    return {
        "w1": w(ks[0], (8,), 1),             "b1": w(ks[1], (8,), 1),
        "w2": w(ks[2], (3, 3, 8, 16), 72),   "b2": w(ks[3], (16,), 72),
        "w3": w(ks[4], (2, 2, 16, 32), 64),  "b3": w(ks[5], (32,), 64),
        "fw1": w(ks[6], (32, 64), 32),       "fb1": w(ks[7], (64,), 32),
        "fw2": w(ks[8], (64, 64), 64),       "fb2": w(ks[9], (64,), 64),
        "fw3": w(ks[10], (64, 10), 64),      "fb3": w(ks[11], (10,), 64),
    }


def pack_params(p):
    """Repack canonical params into kernel layouts (once, outside the jit)."""
    f32 = np.float32
    w1, b1 = np.asarray(p["w1"], f32), np.asarray(p["b1"], f32)
    w2, b2 = np.asarray(p["w2"], f32), np.asarray(p["b2"], f32)
    w3, b3 = np.asarray(p["w3"], f32), np.asarray(p["b3"], f32)
    fw1, fb1 = np.asarray(p["fw1"], f32), np.asarray(p["fb1"], f32)
    fw2, fb2 = np.asarray(p["fw2"], f32), np.asarray(p["fb2"], f32)
    fw3, fb3 = np.asarray(p["fw3"], f32), np.asarray(p["fb3"], f32)

    # conv1 as a t1-block-diagonal, w1-scaled channel-expansion matrix:
    # ebd[t1*9 + dd2, t1*72 + dd2*8 + ci] = w1[ci]
    ebd = np.zeros((36, 288), f32)
    for t1 in range(4):
        for dd2 in range(9):
            ebd[t1 * 9 + dd2, t1 * 72 + dd2 * 8: t1 * 72 + dd2 * 8 + 8] = w1

    # wsm: [ conv2 (72,16) | conv3 4x(16,32) | fc2 (64,64) | fc3 (64,10) ]
    wsm = np.zeros((264, 64), f32)
    wsm[0:72, 0:16] = w2.reshape(72, 16)        # rows (di2, dj2, ci)
    wsm[72:136, 0:32] = w3.reshape(64, 32)      # rows (di3, dj3, ci2), dd3 blocks of 16
    wsm[136:200, 0:64] = fw2
    wsm[200:264, 0:10] = fw3

    # fc1 repack: w1big[hw*32 + r*8 + c', r*64 + o] = fw1[c'*4 + hw, o]
    # (this is exactly torch's  x.view(-1, 32)  feature permutation, folded in)
    w1big = np.zeros((128, 256), f32)
    for hw in range(4):
        for r in range(4):
            for cp in range(8):
                w1big[hw * 32 + r * 8 + cp, r * 64:(r + 1) * 64] = fw1[cp * 4 + hw]

    # bias rows: [b1 tiled | b2 | b3 | fb1 tiled over r | fb2 | fb3]
    bias = np.zeros((8, 288), f32)
    bias[0, :] = np.tile(b1, 36)
    bias[1, :16] = b2
    bias[2, :32] = b3
    bias[3, :256] = np.tile(fb1, 4)
    bias[4, :64] = fb2
    bias[5, :10] = fb3

    return {"ebd": jnp.asarray(ebd), "wsm": jnp.asarray(wsm),
            "w1big": jnp.asarray(w1big), "bias": jnp.asarray(bias)}


# --------------------------------- forward --------------------------------- #


@jax.jit
def classifier_forward(packed, x_nchw):
    assert x_nchw.shape[1:] == (1, 28, 28), x_nchw.shape
    B = x_nchw.shape[0]
    xp = build_patch_input(x_nchw)
    return classifier_pallas(xp, packed["ebd"], packed["wsm"],
                             packed["w1big"], packed["bias"], B)


# ----------------------- pure-JAX reference (checking) --------------------- #


@jax.jit
def reference_forward(params, x_nchw):
    prec = jax.lax.Precision.HIGHEST   # full-f32 reference -> tight tolerance

    def conv_relu(x, w_hwio, b):
        y = jax.lax.conv_general_dilated(
            x, w_hwio, window_strides=(1, 1), padding="VALID",
            dimension_numbers=("NCHW", "HWIO", "NCHW"), precision=prec)
        return jax.nn.relu(y + b.reshape(1, -1, 1, 1))

    def pool(x):
        return jax.lax.reduce_window(x, -jnp.inf, jax.lax.max,
                                     (1, 1, 2, 2), (1, 1, 2, 2), "VALID")

    x = x_nchw.astype(jnp.float32)
    x = pool(conv_relu(x, params["w1"].reshape(1, 1, 1, 8), params["b1"]))
    x = pool(conv_relu(x, params["w2"], params["b2"]))
    x = pool(conv_relu(x, params["w3"], params["b3"]))
    x = x.reshape(-1, 32)
    x = jax.nn.relu(jnp.dot(x, params["fw1"], precision=prec) + params["fb1"])
    x = jax.nn.relu(jnp.dot(x, params["fw2"], precision=prec) + params["fb2"])
    return jnp.dot(x, params["fw3"], precision=prec) + params["fb3"]


if __name__ == "__main__":
    key = jax.random.PRNGKey(0)
    kx, kparams = jax.random.split(key)
    params = init_params(kparams)
    x = jax.random.normal(kx, (2, 1, 28, 28), dtype=jnp.float32)  # NCHW, like torch

    packed = pack_params(params)
    out = jax.block_until_ready(classifier_forward(packed, x))
    assert out.shape == (8, 10), out.shape   # (B*2*2, 10) from torch's view(-1, 32)

    ref = jax.block_until_ready(reference_forward(params, x))
    max_err = float(jnp.max(jnp.abs(out - ref)))
    assert jnp.allclose(out, ref, atol=2e-4, rtol=2e-4), max_err

    print("KERNEL_OK")
</pallas_src>

<mosaic_0001>
module attributes {stable_mosaic.version = 11 : i64} {
  func.func @kernel(%arg0: memref<512x36xf32, #tpu.memory_space<vmem>>, %arg1: memref<36x288xf32, #tpu.memory_space<vmem>>, %arg2: memref<264x64xf32, #tpu.memory_space<vmem>>, %arg3: memref<128x256xf32, #tpu.memory_space<vmem>>, %arg4: memref<8x288xf32, #tpu.memory_space<vmem>>, %arg5: memref<8x10xf32, #tpu.memory_space<vmem>>) attributes {dimension_semantics = [], scalar_prefetch = 0 : i64, scratch_operands = 0 : i64, tpu.core_type = #tpu.core_type<tc>} {
    %c0 = arith.constant 0 : index
    %c0_0 = arith.constant 0 : index
    %0 = vector.load %arg0[%c0, %c0_0] : memref<512x36xf32, #tpu.memory_space<vmem>>, vector<512x36xf32>
    %c0_1 = arith.constant 0 : index
    %c0_2 = arith.constant 0 : index
    %1 = vector.load %arg1[%c0_1, %c0_2] : memref<36x288xf32, #tpu.memory_space<vmem>>, vector<36x288xf32>
    %cst = arith.constant dense<0.000000e+00> : vector<512x288xf32>
    %2 = tpu.matmul %0, %1, %cst {dimension_numbers = #tpu.dot_dimension_numbers<[1], [0], [0], [1], [0, 0, 1, 1], [], []>} : vector<512x36xf32>, vector<36x288xf32>, vector<512x288xf32> -> vector<512x288xf32>
    %c0_3 = arith.constant 0 : index
    %c0_4 = arith.constant 0 : index
    %3 = vector.load %arg4[%c0_3, %c0_4] : memref<8x288xf32, #tpu.memory_space<vmem>>, vector<1x288xf32>
    %4 = vector.broadcast %3 : vector<1x288xf32> to vector<512x288xf32>
    %5 = arith.addf %2, %4 : vector<512x288xf32>
    %cst_5 = arith.constant 0.000000e+00 : f32
    %6 = vector.broadcast %cst_5 : f32 to vector<512x288xf32>
    %7 = arith.maximumf %5, %6 : vector<512x288xf32>
    %8 = vector.extract_strided_slice %7 {offsets = [0, 0], sizes = [512, 72], strides = [1, 1]} : vector<512x288xf32> to vector<512x72xf32>
    %9 = vector.extract_strided_slice %7 {offsets = [0, 72], sizes = [512, 72], strides = [1, 1]} : vector<512x288xf32> to vector<512x72xf32>
    %10 = arith.maximumf %8, %9 : vector<512x72xf32>
    %11 = vector.extract_strided_slice %7 {offsets = [0, 144], sizes = [512, 72], strides = [1, 1]} : vector<512x288xf32> to vector<512x72xf32>
    %12 = vector.extract_strided_slice %7 {offsets = [0, 216], sizes = [512, 72], strides = [1, 1]} : vector<512x288xf32> to vector<512x72xf32>
    %13 = arith.maximumf %11, %12 : vector<512x72xf32>
    %14 = arith.maximumf %10, %13 : vector<512x72xf32>
    %c0_6 = arith.constant 0 : index
    %c0_7 = arith.constant 0 : index
    %15 = vector.load %arg2[%c0_6, %c0_7] : memref<264x64xf32, #tpu.memory_space<vmem>>, vector<72x16xf32>
    %cst_8 = arith.constant dense<0.000000e+00> : vector<512x16xf32>
    %16 = tpu.matmul %14, %15, %cst_8 {dimension_numbers = #tpu.dot_dimension_numbers<[1], [0], [0], [1], [0, 0, 1, 1], [], []>} : vector<512x72xf32>, vector<72x16xf32>, vector<512x16xf32> -> vector<512x16xf32>
    %c1 = arith.constant 1 : index
    %c0_9 = arith.constant 0 : index
    %17 = vector.load %arg4[%c1, %c0_9] : memref<8x288xf32, #tpu.memory_space<vmem>>, vector<1x16xf32>
    %18 = vector.broadcast %17 : vector<1x16xf32> to vector<512x16xf32>
    %19 = arith.addf %16, %18 : vector<512x16xf32>
    %cst_10 = arith.constant 0.000000e+00 : f32
    %20 = vector.broadcast %cst_10 : f32 to vector<512x16xf32>
    %21 = arith.maximumf %19, %20 : vector<512x16xf32>
    %22 = vector.extract_strided_slice %21 {offsets = [0, 0], sizes = [128, 16], strides = [1, 1]} : vector<512x16xf32> to vector<128x16xf32>
    %23 = vector.extract_strided_slice %21 {offsets = [128, 0], sizes = [128, 16], strides = [1, 1]} : vector<512x16xf32> to vector<128x16xf32>
    %24 = arith.maximumf %22, %23 : vector<128x16xf32>
    %25 = vector.extract_strided_slice %21 {offsets = [256, 0], sizes = [128, 16], strides = [1, 1]} : vector<512x16xf32> to vector<128x16xf32>
    %26 = vector.extract_strided_slice %21 {offsets = [384, 0], sizes = [128, 16], strides = [1, 1]} : vector<512x16xf32> to vector<128x16xf32>
    %27 = arith.maximumf %25, %26 : vector<128x16xf32>
    %28 = arith.maximumf %24, %27 : vector<128x16xf32>
    %29 = vector.extract_strided_slice %28 {offsets = [0, 0], sizes = [32, 16], strides = [1, 1]} : vector<128x16xf32> to vector<32x16xf32>
    %c72 = arith.constant 72 : index
    %c0_11 = arith.constant 0 : index
    %30 = vector.load %arg2[%c72, %c0_11] : memref<264x64xf32, #tpu.memory_space<vmem>>, vector<16x32xf32>
    %cst_12 = arith.constant dense<0.000000e+00> : vector<32x32xf32>
    %31 = tpu.matmul %29, %30, %cst_12 {dimension_numbers = #tpu.dot_dimension_numbers<[1], [0], [0], [1], [0, 0, 1, 1], [], []>} : vector<32x16xf32>, vector<16x32xf32>, vector<32x32xf32> -> vector<32x32xf32>
    %32 = vector.extract_strided_slice %28 {offsets = [32, 0], sizes = [32, 16], strides = [1, 1]} : vector<128x16xf32> to vector<32x16xf32>
    %c88 = arith.constant 88 : index
    %c0_13 = arith.constant 0 : index
    %33 = vector.load %arg2[%c88, %c0_13] : memref<264x64xf32, #tpu.memory_space<vmem>>, vector<16x32xf32>
    %cst_14 = arith.constant dense<0.000000e+00> : vector<32x32xf32>
    %34 = tpu.matmul %32, %33, %cst_14 {dimension_numbers = #tpu.dot_dimension_numbers<[1], [0], [0], [1], [0, 0, 1, 1], [], []>} : vector<32x16xf32>, vector<16x32xf32>, vector<32x32xf32> -> vector<32x32xf32>
    %35 = arith.addf %31, %34 : vector<32x32xf32>
    %36 = vector.extract_strided_slice %28 {offsets = [64, 0], sizes = [32, 16], strides = [1, 1]} : vector<128x16xf32> to vector<32x16xf32>
    %c104 = arith.constant 104 : index
    %c0_15 = arith.constant 0 : index
    %37 = vector.load %arg2[%c104, %c0_15] : memref<264x64xf32, #tpu.memory_space<vmem>>, vector<16x32xf32>
    %cst_16 = arith.constant dense<0.000000e+00> : vector<32x32xf32>
    %38 = tpu.matmul %36, %37, %cst_16 {dimension_numbers = #tpu.dot_dimension_numbers<[1], [0], [0], [1], [0, 0, 1, 1], [], []>} : vector<32x16xf32>, vector<16x32xf32>, vector<32x32xf32> -> vector<32x32xf32>
    %39 = arith.addf %35, %38 : vector<32x32xf32>
    %40 = vector.extract_strided_slice %28 {offsets = [96, 0], sizes = [32, 16], strides = [1, 1]} : vector<128x16xf32> to vector<32x16xf32>
    %c120 = arith.constant 120 : index
    %c0_17 = arith.constant 0 : index
    %41 = vector.load %arg2[%c120, %c0_17] : memref<264x64xf32, #tpu.memory_space<vmem>>, vector<16x32xf32>
    %cst_18 = arith.constant dense<0.000000e+00> : vector<32x32xf32>
    %42 = tpu.matmul %40, %41, %cst_18 {dimension_numbers = #tpu.dot_dimension_numbers<[1], [0], [0], [1], [0, 0, 1, 1], [], []>} : vector<32x16xf32>, vector<16x32xf32>, vector<32x32xf32> -> vector<32x32xf32>
    %43 = arith.addf %39, %42 : vector<32x32xf32>
    %c2 = arith.constant 2 : index
    %c0_19 = arith.constant 0 : index
    %44 = vector.load %arg4[%c2, %c0_19] : memref<8x288xf32, #tpu.memory_space<vmem>>, vector<1x32xf32>
    %45 = vector.broadcast %44 : vector<1x32xf32> to vector<32x32xf32>
    %46 = arith.addf %43, %45 : vector<32x32xf32>
    %cst_20 = arith.constant 0.000000e+00 : f32
    %47 = vector.broadcast %cst_20 : f32 to vector<32x32xf32>
    %48 = arith.maximumf %46, %47 : vector<32x32xf32>
    %49 = vector.extract_strided_slice %48 {offsets = [0, 0], sizes = [8, 32], strides = [1, 1]} : vector<32x32xf32> to vector<8x32xf32>
    %50 = vector.extract_strided_slice %48 {offsets = [8, 0], sizes = [8, 32], strides = [1, 1]} : vector<32x32xf32> to vector<8x32xf32>
    %51 = arith.maximumf %49, %50 : vector<8x32xf32>
    %52 = vector.extract_strided_slice %48 {offsets = [16, 0], sizes = [8, 32], strides = [1, 1]} : vector<32x32xf32> to vector<8x32xf32>
    %53 = vector.extract_strided_slice %48 {offsets = [24, 0], sizes = [8, 32], strides = [1, 1]} : vector<32x32xf32> to vector<8x32xf32>
    %54 = arith.maximumf %52, %53 : vector<8x32xf32>
    %55 = arith.maximumf %51, %54 : vector<8x32xf32>
    %56 = vector.extract_strided_slice %55 {offsets = [0, 0], sizes = [2, 32], strides = [1, 1]} : vector<8x32xf32> to vector<2x32xf32>
    %c0_21 = arith.constant 0 : index
    %c0_22 = arith.constant 0 : index
    %57 = vector.load %arg3[%c0_21, %c0_22] : memref<128x256xf32, #tpu.memory_space<vmem>>, vector<32x256xf32>
    %cst_23 = arith.constant dense<0.000000e+00> : vector<2x256xf32>
    %58 = tpu.matmul %56, %57, %cst_23 {dimension_numbers = #tpu.dot_dimension_numbers<[1], [0], [0], [1], [0, 0, 1, 1], [], []>} : vector<2x32xf32>, vector<32x256xf32>, vector<2x256xf32> -> vector<2x256xf32>
    %59 = vector.extract_strided_slice %55 {offsets = [2, 0], sizes = [2, 32], strides = [1, 1]} : vector<8x32xf32> to vector<2x32xf32>
    %c32 = arith.constant 32 : index
    %c0_24 = arith.constant 0 : index
    %60 = vector.load %arg3[%c32, %c0_24] : memref<128x256xf32, #tpu.memory_space<vmem>>, vector<32x256xf32>
    %cst_25 = arith.constant dense<0.000000e+00> : vector<2x256xf32>
    %61 = tpu.matmul %59, %60, %cst_25 {dimension_numbers = #tpu.dot_dimension_numbers<[1], [0], [0], [1], [0, 0, 1, 1], [], []>} : vector<2x32xf32>, vector<32x256xf32>, vector<2x256xf32> -> vector<2x256xf32>
    %62 = arith.addf %58, %61 : vector<2x256xf32>
    %63 = vector.extract_strided_slice %55 {offsets = [4, 0], sizes = [2, 32], strides = [1, 1]} : vector<8x32xf32> to vector<2x32xf32>
    %c64 = arith.constant 64 : index
    %c0_26 = arith.constant 0 : index
    %64 = vector.load %arg3[%c64, %c0_26] : memref<128x256xf32, #tpu.memory_space<vmem>>, vector<32x256xf32>
    %cst_27 = arith.constant dense<0.000000e+00> : vector<2x256xf32>
    %65 = tpu.matmul %63, %64, %cst_27 {dimension_numbers = #tpu.dot_dimension_numbers<[1], [0], [0], [1], [0, 0, 1, 1], [], []>} : vector<2x32xf32>, vector<32x256xf32>, vector<2x256xf32> -> vector<2x256xf32>
    %66 = arith.addf %62, %65 : vector<2x256xf32>
    %67 = vector.extract_strided_slice %55 {offsets = [6, 0], sizes = [2, 32], strides = [1, 1]} : vector<8x32xf32> to vector<2x32xf32>
    %c96 = arith.constant 96 : index
    %c0_28 = arith.constant 0 : index
    %68 = vector.load %arg3[%c96, %c0_28] : memref<128x256xf32, #tpu.memory_space<vmem>>, vector<32x256xf32>
    %cst_29 = arith.constant dense<0.000000e+00> : vector<2x256xf32>
    %69 = tpu.matmul %67, %68, %cst_29 {dimension_numbers = #tpu.dot_dimension_numbers<[1], [0], [0], [1], [0, 0, 1, 1], [], []>} : vector<2x32xf32>, vector<32x256xf32>, vector<2x256xf32> -> vector<2x256xf32>
    %70 = arith.addf %66, %69 : vector<2x256xf32>
    %c3 = arith.constant 3 : index
    %c0_30 = arith.constant 0 : index
    %71 = vector.load %arg4[%c3, %c0_30] : memref<8x288xf32, #tpu.memory_space<vmem>>, vector<1x256xf32>
    %72 = vector.broadcast %71 : vector<1x256xf32> to vector<2x256xf32>
    %73 = arith.addf %70, %72 : vector<2x256xf32>
    %cst_31 = arith.constant 0.000000e+00 : f32
    %74 = vector.broadcast %cst_31 : f32 to vector<2x256xf32>
    %75 = arith.maximumf %73, %74 : vector<2x256xf32>
    %76 = vector.extract_strided_slice %75 {offsets = [0, 0], sizes = [2, 64], strides = [1, 1]} : vector<2x256xf32> to vector<2x64xf32>
    %c136 = arith.constant 136 : index
    %c0_32 = arith.constant 0 : index
    %77 = vector.load %arg2[%c136, %c0_32] : memref<264x64xf32, #tpu.memory_space<vmem>>, vector<64x64xf32>
    %cst_33 = arith.constant dense<0.000000e+00> : vector<2x64xf32>
    %78 = tpu.matmul %76, %77, %cst_33 {dimension_numbers = #tpu.dot_dimension_numbers<[1], [0], [0], [1], [0, 0, 1, 1], [], []>} : vector<2x64xf32>, vector<64x64xf32>, vector<2x64xf32> -> vector<2x64xf32>
    %c4 = arith.constant 4 : index
    %c0_34 = arith.constant 0 : index
    %79 = vector.load %arg4[%c4, %c0_34] : memref<8x288xf32, #tpu.memory_space<vmem>>, vector<1x64xf32>
    %80 = vector.broadcast %79 : vector<1x64xf32> to vector<2x64xf32>
    %81 = arith.addf %78, %80 : vector<2x64xf32>
    %cst_35 = arith.constant 0.000000e+00 : f32
    %82 = vector.broadcast %cst_35 : f32 to vector<2x64xf32>
    %83 = arith.maximumf %81, %82 : vector<2x64xf32>
    %c200 = arith.constant 200 : index
    %c0_36 = arith.constant 0 : index
    %84 = vector.load %arg2[%c200, %c0_36] : memref<264x64xf32, #tpu.memory_space<vmem>>, vector<64x10xf32>
    %cst_37 = arith.constant dense<0.000000e+00> : vector<2x10xf32>
    %85 = tpu.matmul %83, %84, %cst_37 {dimension_numbers = #tpu.dot_dimension_numbers<[1], [0], [0], [1], [0, 0, 1, 1], [], []>} : vector<2x64xf32>, vector<64x10xf32>, vector<2x10xf32> -> vector<2x10xf32>
    %c5 = arith.constant 5 : index
    %c0_38 = arith.constant 0 : index
    %86 = vector.load %arg4[%c5, %c0_38] : memref<8x288xf32, #tpu.memory_space<vmem>>, vector<1x10xf32>
    %87 = vector.broadcast %86 : vector<1x10xf32> to vector<2x10xf32>
    %88 = arith.addf %85, %87 : vector<2x10xf32>
    %89 = vector.extract_strided_slice %88 {offsets = [0, 0], sizes = [1, 10], strides = [1, 1]} : vector<2x10xf32> to vector<1x10xf32>
    %c0_39 = arith.constant 0 : index
    %c0_40 = arith.constant 0 : index
    %90 = vector.load %arg5[%c0_39, %c0_40] : memref<8x10xf32, #tpu.memory_space<vmem>>, vector<1x10xf32>
    tpu.vector_store %arg5[%c0_39, %c0_40], %89 {strides = array<i32>} : memref<8x10xf32, #tpu.memory_space<vmem>>, vector<1x10xf32>,
    %91 = vector.extract_strided_slice %88 {offsets = [1, 0], sizes = [1, 10], strides = [1, 1]} : vector<2x10xf32> to vector<1x10xf32>
    %c4_41 = arith.constant 4 : index
    %c0_42 = arith.constant 0 : index
    %92 = vector.load %arg5[%c4_41, %c0_42] : memref<8x10xf32, #tpu.memory_space<vmem>>, vector<1x10xf32>
    tpu.vector_store %arg5[%c4_41, %c0_42], %91 {strides = array<i32>} : memref<8x10xf32, #tpu.memory_space<vmem>>, vector<1x10xf32>,
    %93 = vector.extract_strided_slice %75 {offsets = [0, 64], sizes = [2, 64], strides = [1, 1]} : vector<2x256xf32> to vector<2x64xf32>
    %c136_43 = arith.constant 136 : index
    %c0_44 = arith.constant 0 : index
    %94 = vector.load %arg2[%c136_43, %c0_44] : memref<264x64xf32, #tpu.memory_space<vmem>>, vector<64x64xf32>
    %cst_45 = arith.constant dense<0.000000e+00> : vector<2x64xf32>
    %95 = tpu.matmul %93, %94, %cst_45 {dimension_numbers = #tpu.dot_dimension_numbers<[1], [0], [0], [1], [0, 0, 1, 1], [], []>} : vector<2x64xf32>, vector<64x64xf32>, vector<2x64xf32> -> vector<2x64xf32>
    %c4_46 = arith.constant 4 : index
    %c0_47 = arith.constant 0 : index
    %96 = vector.load %arg4[%c4_46, %c0_47] : memref<8x288xf32, #tpu.memory_space<vmem>>, vector<1x64xf32>
    %97 = vector.broadcast %96 : vector<1x64xf32> to vector<2x64xf32>
    %98 = arith.addf %95, %97 : vector<2x64xf32>
    %cst_48 = arith.constant 0.000000e+00 : f32
    %99 = vector.broadcast %cst_48 : f32 to vector<2x64xf32>
    %100 = arith.maximumf %98, %99 : vector<2x64xf32>
    %c200_49 = arith.constant 200 : index
    %c0_50 = arith.constant 0 : index
    %101 = vector.load %arg2[%c200_49, %c0_50] : memref<264x64xf32, #tpu.memory_space<vmem>>, vector<64x10xf32>
    %cst_51 = arith.constant dense<0.000000e+00> : vector<2x10xf32>
    %102 = tpu.matmul %100, %101, %cst_51 {dimension_numbers = #tpu.dot_dimension_numbers<[1], [0], [0], [1], [0, 0, 1, 1], [], []>} : vector<2x64xf32>, vector<64x10xf32>, vector<2x10xf32> -> vector<2x10xf32>
    %c5_52 = arith.constant 5 : index
    %c0_53 = arith.constant 0 : index
    %103 = vector.load %arg4[%c5_52, %c0_53] : memref<8x288xf32, #tpu.memory_space<vmem>>, vector<1x10xf32>
    %104 = vector.broadcast %103 : vector<1x10xf32> to vector<2x10xf32>
    %105 = arith.addf %102, %104 : vector<2x10xf32>
    %106 = vector.extract_strided_slice %105 {offsets = [0, 0], sizes = [1, 10], strides = [1, 1]} : vector<2x10xf32> to vector<1x10xf32>
    %c1_54 = arith.constant 1 : index
    %c0_55 = arith.constant 0 : index
    %107 = vector.load %arg5[%c1_54, %c0_55] : memref<8x10xf32, #tpu.memory_space<vmem>>, vector<1x10xf32>
    tpu.vector_store %arg5[%c1_54, %c0_55], %106 {strides = array<i32>} : memref<8x10xf32, #tpu.memory_space<vmem>>, vector<1x10xf32>,
    %108 = vector.extract_strided_slice %105 {offsets = [1, 0], sizes = [1, 10], strides = [1, 1]} : vector<2x10xf32> to vector<1x10xf32>
    %c5_56 = arith.constant 5 : index
    %c0_57 = arith.constant 0 : index
    %109 = vector.load %arg5[%c5_56, %c0_57] : memref<8x10xf32, #tpu.memory_space<vmem>>, vector<1x10xf32>
    tpu.vector_store %arg5[%c5_56, %c0_57], %108 {strides = array<i32>} : memref<8x10xf32, #tpu.memory_space<vmem>>, vector<1x10xf32>,
    %110 = vector.extract_strided_slice %75 {offsets = [0, 128], sizes = [2, 64], strides = [1, 1]} : vector<2x256xf32> to vector<2x64xf32>
    %c136_58 = arith.constant 136 : index
    %c0_59 = arith.constant 0 : index
    %111 = vector.load %arg2[%c136_58, %c0_59] : memref<264x64xf32, #tpu.memory_space<vmem>>, vector<64x64xf32>
    %cst_60 = arith.constant dense<0.000000e+00> : vector<2x64xf32>
    %112 = tpu.matmul %110, %111, %cst_60 {dimension_numbers = #tpu.dot_dimension_numbers<[1], [0], [0], [1], [0, 0, 1, 1], [], []>} : vector<2x64xf32>, vector<64x64xf32>, vector<2x64xf32> -> vector<2x64xf32>
    %c4_61 = arith.constant 4 : index
    %c0_62 = arith.constant 0 : index
    %113 = vector.load %arg4[%c4_61, %c0_62] : memref<8x288xf32, #tpu.memory_space<vmem>>, vector<1x64xf32>
    %114 = vector.broadcast %113 : vector<1x64xf32> to vector<2x64xf32>
    %115 = arith.addf %112, %114 : vector<2x64xf32>
    %cst_63 = arith.constant 0.000000e+00 : f32
    %116 = vector.broadcast %cst_63 : f32 to vector<2x64xf32>
    %117 = arith.maximumf %115, %116 : vector<2x64xf32>
    %c200_64 = arith.constant 200 : index
    %c0_65 = arith.constant 0 : index
    %118 = vector.load %arg2[%c200_64, %c0_65] : memref<264x64xf32, #tpu.memory_space<vmem>>, vector<64x10xf32>
    %cst_66 = arith.constant dense<0.000000e+00> : vector<2x10xf32>
    %119 = tpu.matmul %117, %118, %cst_66 {dimension_numbers = #tpu.dot_dimension_numbers<[1], [0], [0], [1], [0, 0, 1, 1], [], []>} : vector<2x64xf32>, vector<64x10xf32>, vector<2x10xf32> -> vector<2x10xf32>
    %c5_67 = arith.constant 5 : index
    %c0_68 = arith.constant 0 : index
    %120 = vector.load %arg4[%c5_67, %c0_68] : memref<8x288xf32, #tpu.memory_space<vmem>>, vector<1x10xf32>
    %121 = vector.broadcast %120 : vector<1x10xf32> to vector<2x10xf32>
    %122 = arith.addf %119, %121 : vector<2x10xf32>
    %123 = vector.extract_strided_slice %122 {offsets = [0, 0], sizes = [1, 10], strides = [1, 1]} : vector<2x10xf32> to vector<1x10xf32>
    %c2_69 = arith.constant 2 : index
    %c0_70 = arith.constant 0 : index
    %124 = vector.load %arg5[%c2_69, %c0_70] : memref<8x10xf32, #tpu.memory_space<vmem>>, vector<1x10xf32>
    tpu.vector_store %arg5[%c2_69, %c0_70], %123 {strides = array<i32>} : memref<8x10xf32, #tpu.memory_space<vmem>>, vector<1x10xf32>,
    %125 = vector.extract_strided_slice %122 {offsets = [1, 0], sizes = [1, 10], strides = [1, 1]} : vector<2x10xf32> to vector<1x10xf32>
    %c6 = arith.constant 6 : index
    %c0_71 = arith.constant 0 : index
    %126 = vector.load %arg5[%c6, %c0_71] : memref<8x10xf32, #tpu.memory_space<vmem>>, vector<1x10xf32>
    tpu.vector_store %arg5[%c6, %c0_71], %125 {strides = array<i32>} : memref<8x10xf32, #tpu.memory_space<vmem>>, vector<1x10xf32>,
    %127 = vector.extract_strided_slice %75 {offsets = [0, 192], sizes = [2, 64], strides = [1, 1]} : vector<2x256xf32> to vector<2x64xf32>
    %c136_72 = arith.constant 136 : index
    %c0_73 = arith.constant 0 : index
    %128 = vector.load %arg2[%c136_72, %c0_73] : memref<264x64xf32, #tpu.memory_space<vmem>>, vector<64x64xf32>
    %cst_74 = arith.constant dense<0.000000e+00> : vector<2x64xf32>
    %129 = tpu.matmul %127, %128, %cst_74 {dimension_numbers = #tpu.dot_dimension_numbers<[1], [0], [0], [1], [0, 0, 1, 1], [], []>} : vector<2x64xf32>, vector<64x64xf32>, vector<2x64xf32> -> vector<2x64xf32>
    %c4_75 = arith.constant 4 : index
    %c0_76 = arith.constant 0 : index
    %130 = vector.load %arg4[%c4_75, %c0_76] : memref<8x288xf32, #tpu.memory_space<vmem>>, vector<1x64xf32>
    %131 = vector.broadcast %130 : vector<1x64xf32> to vector<2x64xf32>
    %132 = arith.addf %129, %131 : vector<2x64xf32>
    %cst_77 = arith.constant 0.000000e+00 : f32
    %133 = vector.broadcast %cst_77 : f32 to vector<2x64xf32>
    %134 = arith.maximumf %132, %133 : vector<2x64xf32>
    %c200_78 = arith.constant 200 : index
    %c0_79 = arith.constant 0 : index
    %135 = vector.load %arg2[%c200_78, %c0_79] : memref<264x64xf32, #tpu.memory_space<vmem>>, vector<64x10xf32>
    %cst_80 = arith.constant dense<0.000000e+00> : vector<2x10xf32>
    %136 = tpu.matmul %134, %135, %cst_80 {dimension_numbers = #tpu.dot_dimension_numbers<[1], [0], [0], [1], [0, 0, 1, 1], [], []>} : vector<2x64xf32>, vector<64x10xf32>, vector<2x10xf32> -> vector<2x10xf32>
    %c5_81 = arith.constant 5 : index
    %c0_82 = arith.constant 0 : index
    %137 = vector.load %arg4[%c5_81, %c0_82] : memref<8x288xf32, #tpu.memory_space<vmem>>, vector<1x10xf32>
    %138 = vector.broadcast %137 : vector<1x10xf32> to vector<2x10xf32>
    %139 = arith.addf %136, %138 : vector<2x10xf32>
    %140 = vector.extract_strided_slice %139 {offsets = [0, 0], sizes = [1, 10], strides = [1, 1]} : vector<2x10xf32> to vector<1x10xf32>
    %c3_83 = arith.constant 3 : index
    %c0_84 = arith.constant 0 : index
    %141 = vector.load %arg5[%c3_83, %c0_84] : memref<8x10xf32, #tpu.memory_space<vmem>>, vector<1x10xf32>
    tpu.vector_store %arg5[%c3_83, %c0_84], %140 {strides = array<i32>} : memref<8x10xf32, #tpu.memory_space<vmem>>, vector<1x10xf32>,
    %142 = vector.extract_strided_slice %139 {offsets = [1, 0], sizes = [1, 10], strides = [1, 1]} : vector<2x10xf32> to vector<1x10xf32>
    %c7 = arith.constant 7 : index
    %c0_85 = arith.constant 0 : index
    %143 = vector.load %arg5[%c7, %c0_85] : memref<8x10xf32, #tpu.memory_space<vmem>>, vector<1x10xf32>
    tpu.vector_store %arg5[%c7, %c0_85], %142 {strides = array<i32>} : memref<8x10xf32, #tpu.memory_space<vmem>>, vector<1x10xf32>,
    return
  }
}

</mosaic_0001>

<bundles_post_ra>
// kernel: classifier_forward.1
= control target key start
LH: loop header
LB: loop body
LE: loop exit
PB: predicated region body
PF: predicated region fallthrough
CT: control target
= control target key end

     0   :  { %v9429_v7 = vmov 0.0   ;;  %vm117_vm0 = vcmask 293888   ;;  %vm310_vm1 = vcmask 1043456   ;;  %s9414_s0 = inlined_call_operand.vmem [shape: f32[512,36], index: 0, kind: input, shape index: {}]   ;;  %s9415_s1 = inlined_call_operand.vmem [shape: f32[36,288], index: 1, kind: input, shape index: {}]   ;;  %s9416_s2 = inlined_call_operand.vmem [shape: f32[264,64], index: 2, kind: input, shape index: {}]   ;;  %s9417_s3 = inlined_call_operand.vmem [shape: f32[128,256], index: 3, kind: input, shape index: {}]   ;;  %s9418_s4 = inlined_call_operand.vmem [shape: f32[8,288], index: 4, kind: input, shape index: {}]   ;;  %s9419_s5 = inlined_call_operand.hbm [shape: f32[8,10], index: 5, kind: output, shape index: {}]  }
   0x1   :  { %v86_v0 = vld [vmem:[%s9415_s1 + $0x8] sm:$0xff]  ;;  %v89_v1 = vld [vmem:[%s9415_s1 + $0x20] sm:$0xff]  ;;  %v87_v2 = vld [vmem:[%s9415_s1 + $0x10] sm:$0xff]  ;;  %384 = vmatprep.mubr.f32.mxu0 %v9429_v7 }
   0x2   :  { %v5655_v3 = vpack.c.bf16 %v89_v1, %v86_v0  ;;  %v90_v4 = vld [vmem:[%s9415_s1 + $0x28] sm:$0xff]  ;;  %v85_v5 = vld [vmem:[%s9415_s1] sm:$0xff]  ;;  %v88_v6 = vld [vmem:[%s9415_s1 + $0x18] sm:$0xff] }
   0x3   :  { %v5663_v8 = vpack.c.bf16 %v90_v4, %v87_v2  ;;  %v5657_v9 = vpack.c.bf16 %v88_v6, %v85_v5  ;;  %v92_v10 = vld [vmem:[%s9415_s1 + $0x38] sm:$0xff]  ;;  %v95_v11 = vld [vmem:[%s9415_s1 + $0x50] sm:$0xff]  ;;  %v93_v12 = vld [vmem:[%s9415_s1 + $0x40] sm:$0xff] }
   0x4   :  { %5656 = vmatprep.subr.bf16.mxu0 %v5655_v3  ;;  %v5659_v13 = vpack.c.bf16 %v95_v11, %v92_v10  ;;  %v96_v14 = vld [vmem:[%s9415_s1 + $0x58] sm:$0xff]  ;;  %v91_v15 = vld [vmem:[%s9415_s1 + $0x30] sm:$0xff]  ;;  %v94_v16 = vld [vmem:[%s9415_s1 + $0x48] sm:$0xff] }
   0x5   :  { %5664 = vmatprep.subr.bf16.mxu1 %v5663_v8  ;;  %5658 = vmatpush1.bf16.msra.mxu0 %v5657_v9  ;;  %v5667_v17 = vpack.c.bf16 %v96_v14, %v93_v12  ;;  %v5661_v18 = vpack.c.bf16 %v94_v16, %v91_v15  ;;  %v21_v19 = vld [vmem:[%s9414_s0] sm:$0xff]  ;;  %v98_v20 = vld [vmem:[%s9415_s1 + $0x68] sm:$0xf]  ;;  %v99_v21 = vld [vmem:[%s9415_s1 + $0x70] sm:$0xf] }
   0x6   :  { %5666 = vmatpush3.bf16.msra.mxu1 %v5663_v8  ;;  %5660 = vmatprep.subr.bf16.mxu0 %v5659_v13  ;;  %v97_v22 = vld [vmem:[%s9415_s1 + $0x60] sm:$0xf]  ;;  %v22_v23 = vld [vmem:[%s9414_s0 + $0x8] sm:$0xff]  ;;  %v23_v24 = vld [vmem:[%s9414_s0 + $0x10] sm:$0xff] }
   0x7   :  { %5668 = vmatprep.subr.bf16.mxu1 %v5667_v17  ;;  %5253 = vmatprep.mubr.msk.f32.mxu1 %vm117_vm0, %v21_v19  ;;  %v24_v25 = vld [vmem:[%s9414_s0 + $0x18] sm:$0xff]  ;;  %v25_v26 = vld [vmem:[%s9414_s0 + $0x20] sm:$0xff] }
   0x9   :  { %5662 = vmatpush1.bf16.msra.mxu0 %v5661_v18 }
   0xa   :  { %5670 = vmatpush3.bf16.msra.mxu1 %v5667_v17  ;;  %4781 = vmatprep.subr.msk.mxu0 %vm310_vm1, %v98_v20 }
   0xb   :  { %5251 = vmatprep.subr.msk.mxu1 %vm310_vm1, %v99_v21 }
   0xd   :  { %4782 = vmatpush1.msk.msra.mxu0 %vm310_vm1, %v97_v22 }
   0xe   :  { %5252 = vmatpush3.msk.msra.mxu1 %vm310_vm1, %v99_v21  ;;  %4783 = vmatmul.mubr.msk.f32.vlgmr.msra.gmra.mrb[0].mxu0 %vm117_vm0, %v21_v19 }
   0xf   :  { %5254 = vmatmul.mubr.msk.f32.vlgmr.msra.gmra.mrb[0].mxu1 %vm117_vm0, %v22_v23  ;;  %390 = vmatprep.mubr.f32.mxu0 %v9429_v7 }
  0x10   :  { %5256 = vmatprep.mubr.msk.f32.mxu1 %vm117_vm0, %v23_v24 }
  0x11   :  { %10 = vsyncpa [#allocation3], 0  ;;  %v26_v27 = vld [vmem:[%s9414_s0 + $0x28] sm:$0xff]  ;;  %v27_v28 = vld [vmem:[%s9414_s0 + $0x30] sm:$0xff]  ;;  %v102_v15 = vlaneseq  ;;  %s5881_s11 = smov 56   ;;  %vm1730_vm2 = vcmask 457728  }
  0x12   :  { %4784 = vmatmul.mubr.msk.f32.gmra.mrb[2].mxu0 %vm117_vm0, %v22_v23  ;;  %v28_v29 = vld [vmem:[%s9414_s0 + $0x38] sm:$0xff]  ;;  %v29_v30 = vld [vmem:[%s9414_s0 + $0x40] sm:$0xff]  ;;  %v30_v31 = vld [vmem:[%s9414_s0 + $0x48] sm:$0xff]  ;;  %s5882_s16 = smov 112   ;;  %vm2637_vm3 = vcmask 588800   ;;  %vm3331_vm4 = vcmask 130048  }
  0x13   :  { %5257 = vmatmul.mubr.msk.f32.gmra.mrb[2].mxu1 %vm117_vm0, %v24_v25  ;;  %396 = vmatprep.mubr.f32.mxu0 %v9429_v7  ;;  %v31_v32 = vld [vmem:[%s9414_s0 + $0x50] sm:$0xff]  ;;  %v32_v33 = vld [vmem:[%s9414_s0 + $0x58] sm:$0xff]  ;;  %v33_v34 = vld [vmem:[%s9414_s0 + $0x60] sm:$0xff]  ;;  %v6291_v16 = vshrl.u32 %v102_v15, 7  ;;  %vm3762_vm5 = vcmask 261120   ;;  %vm5884_vm6 = vmmov 0  }
  0x14   :  { %5259 = vmatprep.mubr.msk.f32.mxu1 %vm117_vm0, %v25_v26  ;;  %v34_v35 = vld [vmem:[%s9414_s0 + $0x68] sm:$0xff]  ;;  %v35_v36 = vld [vmem:[%s9414_s0 + $0x70] sm:$0xff]  ;;  %v36_v37 = vld [vmem:[%s9414_s0 + $0x78] sm:$0xff]  ;;  %vm4103_vm7 = vcmask 523264   ;;  %s5885_s9 = smov 64   ;;  %vm4260_vm8 = vcmask 73728  }
  0x15   :  { %v37_v38 = vld [vmem:[%s9414_s0 + $0x80] sm:$0xff]  ;;  %v38_v39 = vld [vmem:[%s9414_s0 + $0x88] sm:$0xff]  ;;  %v39_v40 = vld [vmem:[%s9414_s0 + $0x90] sm:$0xff]  ;;  %9648 = vst [vmem:[#allocation5_spill] sm:$0xff] %v6291_v16  ;;  %v9421_v17 = vsub.s32 0, %v6291_v16  ;;  %v112_v19 = vsub.s32 2, %v6291_v16 }
  0x16   :  { %4785 = vmatmul.mubr.msk.f32.gmra.mrb[4].mxu0 %vm117_vm0, %v23_v24  ;;  %v40_v41 = vld [vmem:[%s9414_s0 + $0x98] sm:$0xff]  ;;  %v6065_v42 = vld [vmem:[%s9414_s0 + $0xa0] sm:$0xff]  ;;  %v42_v43 = vld [vmem:[%s9414_s0 + $0xa8] sm:$0xff]  ;;  %v9420_v21 = vsub.s32 1, %v6291_v16  ;;  %vm4262_vm9 = vcmask 74753  }
  0x17   :  { %402 = vmatprep.mubr.f32.mxu0 %v9429_v7  ;;  %5260 = vmatmul.mubr.msk.f32.gmra.mrb[4].mxu1 %vm117_vm0, %v26_v27  ;;  %v43_v44 = vld [vmem:[%s9414_s0 + $0xb0] sm:$0xff]  ;;  %v44_v45 = vld [vmem:[%s9414_s0 + $0xb8] sm:$0xff]  ;;  %v45_v46 = vld [vmem:[%s9414_s0 + $0xc0] sm:$0xff] }
  0x18   :  { %5262 = vmatprep.mubr.msk.f32.mxu1 %vm117_vm0, %v27_v28  ;;  %v46_v47 = vld [vmem:[%s9414_s0 + $0xc8] sm:$0xff]  ;;  %v47_v48 = vld [vmem:[%s9414_s0 + $0xd0] sm:$0xff]  ;;  %v48_v49 = vld [vmem:[%s9414_s0 + $0xd8] sm:$0xff] }
  0x19   :  { %v49_v50 = vld [vmem:[%s9414_s0 + $0xe0] sm:$0xff]  ;;  %v50_v51 = vld [vmem:[%s9414_s0 + $0xe8] sm:$0xff]  ;;  %v51_v52 = vld [vmem:[%s9414_s0 + $0xf0] sm:$0xff] }
  0x1a   :  { %4786 = vmatmul.mubr.msk.f32.gmra.mrb[6].mxu0 %vm117_vm0, %v24_v25  ;;  %v52_v53 = vld [vmem:[%s9414_s0 + $0xf8] sm:$0xff]  ;;  %v53_v54 = vld [vmem:[%s9414_s0 + $0x100] sm:$0xff]  ;;  %v54_v55 = vld [vmem:[%s9414_s0 + $0x108] sm:$0xff] }
  0x1b   :  { %408 = vmatprep.mubr.f32.mxu0 %v9429_v7  ;;  %5263 = vmatmul.mubr.msk.f32.gmra.mrb[6].mxu1 %vm117_vm0, %v28_v29  ;;  %v55_v56 = vld [vmem:[%s9414_s0 + $0x110] sm:$0xff]  ;;  %v56_v57 = vld [vmem:[%s9414_s0 + $0x118] sm:$0xff]  ;;  %v57_v58 = vld [vmem:[%s9414_s0 + $0x120] sm:$0xff] }
  0x1c   :  { %5265 = vmatprep.mubr.msk.f32.mxu1 %vm117_vm0, %v29_v30  ;;  %v58_v59 = vld [vmem:[%s9414_s0 + $0x128] sm:$0xff]  ;;  %v59_v60 = vld [vmem:[%s9414_s0 + $0x130] sm:$0xff]  ;;  %v60_v61 = vld [vmem:[%s9414_s0 + $0x138] sm:$0xff] }
  0x1d   :  { %v61_v62 = vld [vmem:[%s9414_s0 + $0x140] sm:$0xff]  ;;  %v62_v63 = vld [vmem:[%s9414_s0 + $0x148] sm:$0xff]  ;;  %v63_v0 = vld [vmem:[%s9414_s0 + $0x150] sm:$0xff] }
  0x1e   :  { %4787 = vmatmul.mubr.msk.f32.gmra.mrb[8].mxu0 %vm117_vm0, %v25_v26  ;;  %v64_v1 = vld [vmem:[%s9414_s0 + $0x158] sm:$0xff]  ;;  %v65_v2 = vld [vmem:[%s9414_s0 + $0x160] sm:$0xff]  ;;  %v66_v3 = vld [vmem:[%s9414_s0 + $0x168] sm:$0xff] }
  0x1f   :  { %414 = vmatprep.mubr.f32.mxu0 %v9429_v7  ;;  %5266 = vmatmul.mubr.msk.f32.gmra.mrb[8].mxu1 %vm117_vm0, %v30_v31  ;;  %v67_v4 = vld [vmem:[%s9414_s0 + $0x170] sm:$0xff]  ;;  %v68_v5 = vld [vmem:[%s9414_s0 + $0x178] sm:$0xff]  ;;  %v69_v6 = vld [vmem:[%s9414_s0 + $0x180] sm:$0xff] }
  0x20   :  { %5268 = vmatprep.mubr.msk.f32.mxu1 %vm117_vm0, %v31_v32  ;;  %v70_v8 = vld [vmem:[%s9414_s0 + $0x188] sm:$0xff]  ;;  %v71_v9 = vld [vmem:[%s9414_s0 + $0x190] sm:$0xff]  ;;  %v72_v10 = vld [vmem:[%s9414_s0 + $0x198] sm:$0xff] }
  0x21   :  { %v73_v11 = vld [vmem:[%s9414_s0 + $0x1a0] sm:$0xff]  ;;  %v74_v12 = vld [vmem:[%s9414_s0 + $0x1a8] sm:$0xff]  ;;  %v75_v13 = vld [vmem:[%s9414_s0 + $0x1b0] sm:$0xff] }
  0x22   :  { %4788 = vmatmul.mubr.msk.f32.gmra.mrb[10].mxu0 %vm117_vm0, %v26_v27  ;;  %v76_v14 = vld [vmem:[%s9414_s0 + $0x1b8] sm:$0xff]  ;;  %v100_v18 = vld [vmem:[%s9418_s4] ss:$8 sm:$0x7] }
  0x23   :  { %420 = vmatprep.mubr.f32.mxu0 %v9429_v7  ;;  %5269 = vmatmul.mubr.msk.f32.gmra.mrb[10].mxu1 %vm117_vm0, %v32_v33  ;;  %v77_v20 = vld [vmem:[%s9414_s0 + $0x1c0] sm:$0xff]  ;;  %v78_v22 = vld [vmem:[%s9414_s0 + $0x1c8] sm:$0xff]  ;;  %v6312_v23 = vrot.slane %v100_v18, %v9421_v17  ;;  %v6316_v24 = vrot.slane %v100_v18, %v112_v19  ;;  %v6321_v25 = vrot.slane %v100_v18, %v9420_v21 }
  0x24   :  { %5271 = vmatprep.mubr.msk.f32.mxu1 %vm117_vm0, %v33_v34 }
  0x26   :  { %4789 = vmatmul.mubr.msk.f32.gmra.mrb[12].mxu0 %vm117_vm0, %v27_v28 }
  0x27   :  { %426 = vmatprep.mubr.f32.mxu0 %v9429_v7  ;;  %5272 = vmatmul.mubr.msk.f32.gmra.mrb[12].mxu1 %vm117_vm0, %v34_v35 }
  0x28   :  { %5274 = vmatprep.mubr.msk.f32.mxu1 %vm117_vm0, %v35_v36 }
  0x2a   :  { %4790 = vmatmul.mubr.msk.f32.gmra.mrb[14].mxu0 %vm117_vm0, %v28_v29 }
  0x2b   :  { %432 = vmatprep.mubr.f32.mxu0 %v9429_v7  ;;  %5275 = vmatmul.mubr.msk.f32.gmra.mrb[14].mxu1 %vm117_vm0, %v36_v37 }
  0x2c   :  { %5277 = vmatprep.mubr.msk.f32.mxu1 %vm117_vm0, %v37_v38 }
  0x2e   :  { %4791 = vmatmul.mubr.msk.f32.gmra.mrb[16].mxu0 %vm117_vm0, %v29_v30 }
  0x2f   :  { %438 = vmatprep.mubr.f32.mxu0 %v9429_v7  ;;  %5278 = vmatmul.mubr.msk.f32.gmra.mrb[16].mxu1 %vm117_vm0, %v38_v39 }
  0x30   :  { %5280 = vmatprep.mubr.msk.f32.mxu1 %vm117_vm0, %v39_v40 }
  0x32   :  { %4792 = vmatmul.mubr.msk.f32.gmra.mrb[18].mxu0 %vm117_vm0, %v30_v31 }
  0x33   :  { %444 = vmatprep.mubr.f32.mxu0 %v9429_v7  ;;  %5281 = vmatmul.mubr.msk.f32.gmra.mrb[18].mxu1 %vm117_vm0, %v40_v41 }
  0x34   :  { %5283 = vmatprep.mubr.msk.f32.mxu1 %vm117_vm0, %v6065_v42 }
  0x36   :  { %4793 = vmatmul.mubr.msk.f32.gmra.mrb[20].mxu0 %vm117_vm0, %v31_v32 }
  0x37   :  { %450 = vmatprep.mubr.f32.mxu0 %v9429_v7  ;;  %5284 = vmatmul.mubr.msk.f32.gmra.mrb[20].mxu1 %vm117_vm0, %v42_v43 }
  0x38   :  { %5286 = vmatprep.mubr.msk.f32.mxu1 %vm117_vm0, %v43_v44 }
  0x3a   :  { %4794 = vmatmul.mubr.msk.f32.gmra.mrb[22].mxu0 %vm117_vm0, %v32_v33 }
  0x3b   :  { %456 = vmatprep.mubr.f32.mxu0 %v9429_v7  ;;  %5287 = vmatmul.mubr.msk.f32.gmra.mrb[22].mxu1 %vm117_vm0, %v44_v45 }
  0x3c   :  { %5289 = vmatprep.mubr.msk.f32.mxu1 %vm117_vm0, %v45_v46 }
  0x3e   :  { %4795 = vmatmul.mubr.msk.f32.gmra.mrb[24].mxu0 %vm117_vm0, %v33_v34 }
  0x3f   :  { %462 = vmatprep.mubr.f32.mxu0 %v9429_v7  ;;  %5290 = vmatmul.mubr.msk.f32.gmra.mrb[24].mxu1 %vm117_vm0, %v46_v47 }
  0x40   :  { %5292 = vmatprep.mubr.msk.f32.mxu1 %vm117_vm0, %v47_v48 }
  0x42   :  { %4796 = vmatmul.mubr.msk.f32.gmra.mrb[26].mxu0 %vm117_vm0, %v34_v35 }
  0x43   :  { %468 = vmatprep.mubr.f32.mxu0 %v9429_v7  ;;  %5293 = vmatmul.mubr.msk.f32.gmra.mrb[26].mxu1 %vm117_vm0, %v48_v49 }
  0x44   :  { %5295 = vmatprep.mubr.msk.f32.mxu1 %vm117_vm0, %v49_v50 }
  0x46   :  { %4797 = vmatmul.mubr.msk.f32.gmra.mrb[28].mxu0 %vm117_vm0, %v35_v36 }
  0x47   :  { %474 = vmatprep.mubr.f32.mxu0 %v9429_v7  ;;  %5296 = vmatmul.mubr.msk.f32.gmra.mrb[28].mxu1 %vm117_vm0, %v50_v51 }
  0x48   :  { %5298 = vmatprep.mubr.msk.f32.mxu1 %vm117_vm0, %v51_v52 }
  0x4a   :  { %4798 = vmatmul.mubr.msk.f32.gmra.mrb[30].mxu0 %vm117_vm0, %v36_v37 }
  0x4b   :  { %480 = vmatprep.mubr.f32.mxu0 %v9429_v7  ;;  %5299 = vmatmul.mubr.msk.f32.gmra.mrb[30].mxu1 %vm117_vm0, %v52_v53 }
  0x4c   :  { %5301 = vmatprep.mubr.msk.f32.mxu1 %vm117_vm0, %v53_v54 }
  0x4e   :  { %4799 = vmatmul.mubr.msk.f32.gmra.mrb[32].mxu0 %vm117_vm0, %v37_v38 }
  0x4f   :  { %486 = vmatprep.mubr.f32.mxu0 %v9429_v7  ;;  %5302 = vmatmul.mubr.msk.f32.gmra.mrb[32].mxu1 %vm117_vm0, %v54_v55 }
  0x50   :  { %5304 = vmatprep.mubr.msk.f32.mxu1 %vm117_vm0, %v55_v56 }
  0x52   :  { %4800 = vmatmul.mubr.msk.f32.gmra.mrb[34].mxu0 %vm117_vm0, %v38_v39 }
  0x53   :  { %492 = vmatprep.mubr.f32.mxu0 %v9429_v7  ;;  %5305 = vmatmul.mubr.msk.f32.gmra.mrb[34].mxu1 %vm117_vm0, %v56_v57 }
  0x54   :  { %5307 = vmatprep.mubr.msk.f32.mxu1 %vm117_vm0, %v57_v58 }
  0x56   :  { %4801 = vmatmul.mubr.msk.f32.gmra.mrb[36].mxu0 %vm117_vm0, %v39_v40 }
  0x57   :  { %498 = vmatprep.mubr.f32.mxu0 %v9429_v7  ;;  %5308 = vmatmul.mubr.msk.f32.gmra.mrb[36].mxu1 %vm117_vm0, %v58_v59 }
  0x58   :  { %5310 = vmatprep.mubr.msk.f32.mxu1 %vm117_vm0, %v59_v60 }
  0x5a   :  { %4802 = vmatmul.mubr.msk.f32.gmra.mrb[38].mxu0 %vm117_vm0, %v40_v41 }
  0x5b   :  { %504 = vmatprep.mubr.f32.mxu0 %v9429_v7  ;;  %5311 = vmatmul.mubr.msk.f32.gmra.mrb[38].mxu1 %vm117_vm0, %v60_v61 }
  0x5c   :  { %5313 = vmatprep.mubr.msk.f32.mxu1 %vm117_vm0, %v61_v62 }
  0x5e   :  { %4803 = vmatmul.mubr.msk.f32.gmra.mrb[40].mxu0 %vm117_vm0, %v6065_v42 }
  0x5f   :  { %510 = vmatprep.mubr.f32.mxu0 %v9429_v7  ;;  %5314 = vmatmul.mubr.msk.f32.gmra.mrb[40].mxu1 %vm117_vm0, %v62_v63 }
  0x60   :  { %5316 = vmatprep.mubr.msk.f32.mxu1 %vm117_vm0, %v63_v0 }
  0x62   :  { %4804 = vmatmul.mubr.msk.f32.gmra.mrb[42].mxu0 %vm117_vm0, %v42_v43 }
  0x63   :  { %516 = vmatprep.mubr.f32.mxu0 %v9429_v7  ;;  %5317 = vmatmul.mubr.msk.f32.gmra.mrb[42].mxu1 %vm117_vm0, %v64_v1 }
  0x64   :  { %5319 = vmatprep.mubr.msk.f32.mxu1 %vm117_vm0, %v65_v2 }
  0x66   :  { %4805 = vmatmul.mubr.msk.f32.gmra.mrb[44].mxu0 %vm117_vm0, %v43_v44 }
  0x67   :  { %522 = vmatprep.mubr.f32.mxu0 %v9429_v7  ;;  %5320 = vmatmul.mubr.msk.f32.gmra.mrb[44].mxu1 %vm117_vm0, %v66_v3 }
  0x68   :  { %5322 = vmatprep.mubr.msk.f32.mxu1 %vm117_vm0, %v67_v4 }
  0x6a   :  { %4806 = vmatmul.mubr.msk.f32.gmra.mrb[46].mxu0 %vm117_vm0, %v44_v45 }
  0x6b   :  { %528 = vmatprep.mubr.f32.mxu0 %v9429_v7  ;;  %5323 = vmatmul.mubr.msk.f32.gmra.mrb[46].mxu1 %vm117_vm0, %v68_v5 }
  0x6c   :  { %5325 = vmatprep.mubr.msk.f32.mxu1 %vm117_vm0, %v69_v6 }
  0x6e   :  { %4807 = vmatmul.mubr.msk.f32.gmra.mrb[48].mxu0 %vm117_vm0, %v45_v46 }
  0x6f   :  { %534 = vmatprep.mubr.f32.mxu0 %v9429_v7  ;;  %5326 = vmatmul.mubr.msk.f32.gmra.mrb[48].mxu1 %vm117_vm0, %v70_v8 }
  0x70   :  { %5328 = vmatprep.mubr.msk.f32.mxu1 %vm117_vm0, %v71_v9 }
  0x72   :  { %4808 = vmatmul.mubr.msk.f32.gmra.mrb[50].mxu0 %vm117_vm0, %v46_v47 }
  0x73   :  { %540 = vmatprep.mubr.f32.mxu0 %v9429_v7  ;;  %5329 = vmatmul.mubr.msk.f32.gmra.mrb[50].mxu1 %vm117_vm0, %v72_v10 }
  0x74   :  { %5331 = vmatprep.mubr.msk.f32.mxu1 %vm117_vm0, %v73_v11 }
  0x76   :  { %4809 = vmatmul.mubr.msk.f32.gmra.mrb[52].mxu0 %vm117_vm0, %v47_v48 }
  0x77   :  { %546 = vmatprep.mubr.f32.mxu0 %v9429_v7  ;;  %5332 = vmatmul.mubr.msk.f32.gmra.mrb[52].mxu1 %vm117_vm0, %v74_v12 }
  0x78   :  { %5334 = vmatprep.mubr.msk.f32.mxu1 %vm117_vm0, %v75_v13 }
  0x7a   :  { %4810 = vmatmul.mubr.msk.f32.gmra.mrb[54].mxu0 %vm117_vm0, %v48_v49 }
  0x7b   :  { %552 = vmatprep.mubr.f32.mxu0 %v9429_v7  ;;  %5335 = vmatmul.mubr.msk.f32.gmra.mrb[54].mxu1 %vm117_vm0, %v76_v14 }
  0x7c   :  { %5337 = vmatprep.mubr.msk.f32.mxu1 %vm117_vm0, %v77_v20 }
  0x7e   :  { %4811 = vmatmul.mubr.msk.f32.gmra.mrb[56].mxu0 %vm117_vm0, %v49_v50 }
  0x7f   :  { %558 = vmatprep.mubr.f32.mxu0 %v9429_v7  ;;  %5338 = vmatmul.mubr.msk.f32.gmra.mrb[56].mxu1 %vm117_vm0, %v78_v22 }
  0x82   :  { %4812 = vmatmul.mubr.msk.f32.gmra.mrb[58].mxu0 %vm117_vm0, %v50_v51 }
  0x83   :  { %564 = vmatprep.mubr.f32.mxu0 %v9429_v7 }
  0x86   :  { %4813 = vmatmul.mubr.msk.f32.gmra.mrb[60].mxu0 %vm117_vm0, %v51_v52 }
  0x87   :  { %570 = vmatprep.mubr.f32.mxu0 %v9429_v7 }
  0x8a   :  { %4814 = vmatmul.mubr.msk.f32.gmra.mrb[62].mxu0 %vm117_vm0, %v52_v53 }
  0x8b   :  { %576 = vmatprep.mubr.f32.mxu0 %v9429_v7 }
  0x8e   :  { %4815 = vmatmul.mubr.msk.f32.gmra.mrb[64].mxu0 %vm117_vm0, %v53_v54 }
  0x8f   :  { %582 = vmatprep.mubr.f32.mxu0 %v9429_v7 }
  0x92   :  { %4816 = vmatmul.mubr.msk.f32.gmra.mrb[66].mxu0 %vm117_vm0, %v54_v55 }
  0x93   :  { %588 = vmatprep.mubr.f32.mxu0 %v9429_v7 }
  0x96   :  { %4817 = vmatmul.mubr.msk.f32.gmra.mrb[68].mxu0 %vm117_vm0, %v55_v56 }
  0x97   :  { %594 = vmatprep.mubr.f32.mxu0 %v9429_v7 }
  0x9a   :  { %4818 = vmatmul.mubr.msk.f32.gmra.mrb[70].mxu0 %vm117_vm0, %v56_v57 }
  0x9b   :  { %600 = vmatprep.mubr.f32.mxu0 %v9429_v7 }
  0x9e   :  { %4819 = vmatmul.mubr.msk.f32.gmra.mrb[72].mxu0 %vm117_vm0, %v57_v58 }
  0x9f   :  { %606 = vmatprep.mubr.f32.mxu0 %v9429_v7 }
  0xa2   :  { %4820 = vmatmul.mubr.msk.f32.gmra.mrb[74].mxu0 %vm117_vm0, %v58_v59 }
  0xa3   :  { %612 = vmatprep.mubr.f32.mxu0 %v9429_v7 }
  0xa6   :  { %4821 = vmatmul.mubr.msk.f32.gmra.mrb[76].mxu0 %vm117_vm0, %v59_v60 }
  0xa7   :  { %618 = vmatprep.mubr.f32.mxu0 %v9429_v7 }
  0xaa   :  { %4822 = vmatmul.mubr.msk.f32.gmra.mrb[78].mxu0 %vm117_vm0, %v60_v61 }
  0xab   :  { %624 = vmatprep.mubr.f32.mxu0 %v9429_v7 }
  0xae   :  { %4823 = vmatmul.mubr.msk.f32.gmra.mrb[80].mxu0 %vm117_vm0, %v61_v62 }
  0xaf   :  { %630 = vmatprep.mubr.f32.mxu0 %v9429_v7 }
  0xb2   :  { %4824 = vmatmul.mubr.msk.f32.gmra.mrb[82].mxu0 %vm117_vm0, %v62_v63 }
  0xb3   :  { %636 = vmatprep.mubr.f32.mxu0 %v9429_v7 }
  0xb6   :  { %4825 = vmatmul.mubr.msk.f32.gmra.mrb[84].mxu0 %vm117_vm0, %v63_v0 }
  0xb7   :  { %642 = vmatprep.mubr.f32.mxu0 %v9429_v7 }
  0xba   :  { %4826 = vmatmul.mubr.msk.f32.gmra.mrb[86].mxu0 %vm117_vm0, %v64_v1 }
  0xbb   :  { %648 = vmatprep.mubr.f32.mxu0 %v9429_v7 }
  0xbe   :  { %4827 = vmatmul.mubr.msk.f32.gmra.mrb[88].mxu0 %vm117_vm0, %v65_v2 }
  0xbf   :  { %654 = vmatprep.mubr.f32.mxu0 %v9429_v7 }
  0xc2   :  { %4828 = vmatmul.mubr.msk.f32.gmra.mrb[90].mxu0 %vm117_vm0, %v66_v3  ;;  %v79_v3 = vld [vmem:[%s9414_s0 + $0x1d0] sm:$0xff] }
  0xc3   :  { %660 = vmatprep.mubr.f32.mxu0 %v9429_v7  ;;  %5340 = vmatprep.mubr.msk.f32.mxu1 %vm117_vm0, %v79_v3 }
  0xc6   :  { %4829 = vmatmul.mubr.msk.f32.gmra.mrb[92].mxu0 %vm117_vm0, %v67_v4 }
  0xc7   :  { %666 = vmatprep.mubr.f32.mxu0 %v9429_v7 }
  0xca   :  { %4830 = vmatmul.mubr.msk.f32.gmra.mrb[94].mxu0 %vm117_vm0, %v68_v5 }
  0xcb   :  { %672 = vmatprep.mubr.f32.mxu0 %v9429_v7 }
  0xce   :  { %4831 = vmatmul.mubr.msk.f32.gmra.mrb[96].mxu0 %vm117_vm0, %v69_v6 }
  0xcf   :  { %678 = vmatprep.mubr.f32.mxu0 %v9429_v7 }
  0xd2   :  { %4832 = vmatmul.mubr.msk.f32.gmra.mrb[98].mxu0 %vm117_vm0, %v70_v8 }
  0xd3   :  { %684 = vmatprep.mubr.f32.mxu0 %v9429_v7 }
  0xd6   :  { %4833 = vmatmul.mubr.msk.f32.gmra.mrb[100].mxu0 %vm117_vm0, %v71_v9 }
  0xd7   :  { %690 = vmatprep.mubr.f32.mxu0 %v9429_v7 }
  0xda   :  { %4834 = vmatmul.mubr.msk.f32.gmra.mrb[102].mxu0 %vm117_vm0, %v72_v10 }
  0xdb   :  { %696 = vmatprep.mubr.f32.mxu0 %v9429_v7 }
  0xde   :  { %4835 = vmatmul.mubr.msk.f32.gmra.mrb[104].mxu0 %vm117_vm0, %v73_v11 }
  0xdf   :  { %702 = vmatprep.mubr.f32.mxu0 %v9429_v7 }
  0xe1   :  { %v386_v26 = vpop.f32.mrb[0].mxu0 }
  0xe2   :  { %v6324_v27 = vadd.f32 %v386_v26, %v6312_v23  ;;  %v5255_v28 = vpop.f32.mrb[0].mxu1  ;;  %v388_v29 = vpop.f32.mrb[1].mxu0  ;;  %4836 = vmatmul.mubr.msk.f32.gmra.mrb[106].mxu0 %vm117_vm0, %v74_v12 }
  0xe3   :  { %v841_v30 = vadd.f32 %v5255_v28, %v6316_v24  ;;  %v835_v31 = vpop.f32.mrb[1].mxu1  ;;  %708 = vmatprep.mubr.f32.mxu0 %v9429_v7  ;;  %v6331_v33 = vadd.f32 %v388_v29, %v6321_v25 }
  0xe4   :  { %9649 = vst [vmem:[#allocation6_spill] sm:$0xff] %v6324_v27  ;;  %v9425_v32 = vmax.f32 %v6324_v27, 0.0  ;;  %v836_v41 = vadd.f32 %v835_v31, %v6316_v24 }
  0xe5   :  { %v1159_v34 = vmax.f32 %v841_v30, 0.0  ;;  %v392_v35 = vpop.f32.mrb[2].mxu0  ;;  %v9441_v42 = vmax.f32 %v6331_v33, 0.0 }
  0xe6   :  { %v5258_v36 = vpop.f32.mrb[2].mxu1  ;;  %1474 = vrot.lane.b32.xlu0 %v9425_v32, %s5881_s11  ;;  %v394_v37 = vpop.f32.mrb[3].mxu0  ;;  %4837 = vmatmul.mubr.msk.f32.gmra.mrb[108].mxu0 %vm117_vm0, %v75_v13  ;;  %v6340_v40 = vadd.f32 %v392_v35, %v6312_v23  ;;  %v1156_v50 = vmax.f32 %v836_v41, 0.0  ;;  %v80_v13 = vld [vmem:[%s9414_s0 + $0x1d8] sm:$0xff] }
  0xe7   :  { %v851_v38 = vadd.f32 %v5258_v36, %v6316_v24  ;;  %1989 = vrot.lane.b32.xlu1 %v1159_v34, %s5881_s11  ;;  %v845_v39 = vpop.f32.mrb[3].mxu1  ;;  %714 = vmatprep.mubr.f32.mxu0 %v9429_v7  ;;  %v6356_v51 = vadd.f32 %v394_v37, %v6321_v25 }
  0xe8   :  { %9650 = vst [vmem:[#allocation7_spill] sm:$0xff] %v6340_v40  ;;  %v9424_v47 = vmax.f32 %v6340_v40, 0.0  ;;  %v846_v58 = vadd.f32 %v845_v39, %v6316_v24  ;;  %5341 = vmatmul.mubr.msk.f32.gmra.mrb[58].mxu1 %vm117_vm0, %v80_v13 }
  0xe9   :  { %v1165_v43 = vmax.f32 %v851_v38, 0.0  ;;  %v398_v44 = vpop.f32.mrb[4].mxu0  ;;  %v9440_v59 = vmax.f32 %v6356_v51, 0.0 }
  0xea   :  { %1476 = vrot.lane.b32.xlu0 %v9441_v42, %s5881_s11  ;;  %v400_v45 = vpop.f32.mrb[5].mxu0  ;;  %v5261_v46 = vpop.f32.mrb[4].mxu1  ;;  %4838 = vmatmul.mubr.msk.f32.gmra.mrb[110].mxu0 %vm117_vm0, %v76_v14  ;;  %v1162_v4 = vmax.f32 %v846_v58, 0.0  ;;  %v6418_v14 = vadd.f32 %v398_v44, %v6312_v23 }
  0xeb   :  { %1993 = vrot.lane.b32.xlu1 %v1165_v43, %s5881_s11  ;;  %v6352_v48 = vadd.f32 %v400_v45, %v6321_v25  ;;  %v855_v49 = vpop.f32.mrb[5].mxu1  ;;  %720 = vmatprep.mubr.f32.mxu0 %v9429_v7  ;;  %v861_v0 = vadd.f32 %v5261_v46, %v6316_v24 }
  0xec   :  { %9651 = vst [vmem:[#allocation8_spill] sm:$0xff] %v6418_v14  ;;  %v9423_v28 = vmax.f32 %v6418_v14, 0.0  ;;  %v856_v29 = vadd.f32 %v855_v49, %v6316_v24 }
  0xed   :  { %v6358_v52 = vpop.f32.mrb[6].mxu0  ;;  %v9438_v53 = vmax.f32 %v6352_v48, 0.0  ;;  %v1171_v10 = vmax.f32 %v861_v0, 0.0 }
  0xee   :  { %1987 = vrot.lane.b32.xlu0 %v1156_v50, %s5881_s11  ;;  %v406_v54 = vpop.f32.mrb[7].mxu0  ;;  %v5264_v55 = vpop.f32.mrb[6].mxu1  ;;  %4839 = vmatmul.mubr.msk.f32.gmra.mrb[112].mxu0 %vm117_vm0, %v77_v20  ;;  %v1168_v39 = vmax.f32 %v856_v29, 0.0 }
  0xef   :  { %1478 = vrot.lane.b32.xlu1 %v9424_v47, %s5881_s11  ;;  %v6367_v56 = vadd.f32 %v406_v54, %v6321_v25  ;;  %v6369_v57 = vpop.f32.mrb[7].mxu1  ;;  %726 = vmatprep.mubr.f32.mxu0 %v9429_v7  ;;  %v871_v36 = vadd.f32 %v5264_v55, %v6316_v24  ;;  %v81_v54 = vld [vmem:[%s9414_s0 + $0x1e0] sm:$0xff]  ;;  %v6476_v55 = vadd.f32 %v6358_v52, %v6312_v23 }
  0xf0   :  { %5343 = vmatprep.mubr.msk.f32.mxu1 %vm117_vm0, %v81_v54 }
  0xf1   :  { %v6374_v60 = vpop.f32.mrb[8].mxu0  ;;  %v9437_v61 = vmax.f32 %v6367_v56, 0.0  ;;  %v1177_v46 = vmax.f32 %v871_v36, 0.0  ;;  %9652 = vst [vmem:[#allocation9_spill] sm:$0xff] %v6476_v55 }
  0xf2   :  { %1484 = vrot.lane.b32.xlu0 %v9438_v53, %s5881_s11  ;;  %v412_v62 = vpop.f32.mrb[9].mxu0  ;;  %v6380_v63 = vpop.f32.mrb[8].mxu1  ;;  %4840 = vmatmul.mubr.msk.f32.gmra.mrb[114].mxu0 %vm117_vm0, %v78_v22 }
  0xf3   :  { %1480 = vrot.lane.b32.xlu1 %v9440_v59, %s5881_s11  ;;  %v6388_v1 = vadd.f32 %v412_v62, %v6321_v25  ;;  %v6390_v2 = vpop.f32.mrb[9].mxu1  ;;  %732 = vmatprep.mubr.f32.mxu0 %v9429_v7 }
  0xf5   :  { %v6397_v5 = vpop.f32.mrb[10].mxu0  ;;  %v9436_v6 = vmax.f32 %v6388_v1, 0.0 }
  0xf6   :  { %1488 = vrot.lane.b32.xlu0 %v9437_v61, %s5881_s11  ;;  %v418_v8 = vpop.f32.mrb[11].mxu0  ;;  %v6403_v9 = vpop.f32.mrb[10].mxu1  ;;  %4841 = vmatmul.mubr.msk.f32.gmra.mrb[116].mxu0 %vm117_vm0, %v79_v3 }
  0xf7   :  { %1991 = vrot.lane.b32.xlu1 %v1162_v4, %s5881_s11  ;;  %v6408_v11 = vadd.f32 %v418_v8, %v6321_v25  ;;  %v6410_v12 = vpop.f32.mrb[11].mxu1  ;;  %738 = vmatprep.mubr.f32.mxu0 %v9429_v7  ;;  %v82_v8 = vld [vmem:[%s9414_s0 + $0x1e8] sm:$0xff] }
  0xf8   :  { %5344 = vmatmul.mubr.msk.f32.gmra.mrb[60].mxu1 %vm117_vm0, %v82_v8  ;;  %v886_v59 = vadd.f32 %v6410_v12, %v6316_v24 }
  0xf9   :  { %v6420_v15 = vpop.f32.mrb[12].mxu0  ;;  %v9435_v18 = vmax.f32 %v6408_v11, 0.0 }
  0xfa   :  { %1492 = vrot.lane.b32.xlu0 %v9436_v6, %s5881_s11  ;;  %v424_v19 = vpop.f32.mrb[13].mxu0  ;;  %v6426_v20 = vpop.f32.mrb[12].mxu1  ;;  %4842 = vmatmul.mubr.msk.f32.gmra.mrb[118].mxu0 %vm117_vm0, %v80_v13  ;;  %v866_v13 = vadd.f32 %v6369_v57, %v6316_v24  ;;  %v881_v57 = vadd.f32 %v6380_v63, %v6316_v24  ;;  %v1186_v53 = vmax.f32 %v886_v59, 0.0  ;;  %v6651_v59 = vadd.f32 %v6420_v15, %v6312_v23 }
  0xfb   :  { %1997 = vrot.lane.b32.xlu1 %v1171_v10, %s5881_s11  ;;  %v6431_v22 = vadd.f32 %v424_v19, %v6321_v25  ;;  %v6433_v26 = vpop.f32.mrb[13].mxu1  ;;  %744 = vmatprep.mubr.f32.mxu0 %v9429_v7  ;;  %v9422_v10 = vmax.f32 %v6476_v55, 0.0 }
  0xfc   :  { %v1183_v17 = vmax.f32 %v881_v57, 0.0  ;;  %9662 = vst [vmem:[#allocation17_spill] sm:$0xff] %v6651_v59  ;;  %v896_v15 = vadd.f32 %v6433_v26, %v6316_v24 }
  0xfd   :  { %v6438_v30 = vpop.f32.mrb[14].mxu0  ;;  %v9433_v31 = vmax.f32 %v6431_v22, 0.0 }
  0xfe   :  { %1496 = vrot.lane.b32.xlu0 %v9435_v18, %s5881_s11  ;;  %v430_v34 = vpop.f32.mrb[15].mxu0  ;;  %v6444_v35 = vpop.f32.mrb[14].mxu1  ;;  %4843 = vmatmul.mubr.msk.f32.gmra.mrb[120].mxu0 %vm117_vm0, %v81_v54  ;;  %v1192_v26 = vmax.f32 %v896_v15, 0.0 }
  0xff   :  { %1482 = vrot.lane.b32.xlu1 %v9423_v28, %s5881_s11  ;;  %v6451_v37 = vadd.f32 %v430_v34, %v6321_v25  ;;  %v6453_v38 = vpop.f32.mrb[15].mxu1  ;;  %750 = vmatprep.mubr.f32.mxu0 %v9429_v7 }
 0x101   :  { %v6455_v41 = vpop.f32.mrb[16].mxu0  ;;  %v9431_v43 = vmax.f32 %v6451_v37, 0.0 }
 0x102   :  { %1500 = vrot.lane.b32.xlu0 %v9433_v31, %s5881_s11  ;;  %v436_v44 = vpop.f32.mrb[17].mxu0  ;;  %v6461_v45 = vpop.f32.mrb[16].mxu1  ;;  %4844 = vmatmul.mubr.msk.f32.gmra.mrb[122].mxu0 %vm117_vm0, %v82_v8 }
 0x103   :  { %1995 = vrot.lane.b32.xlu1 %v1168_v39, %s5881_s11  ;;  %v6465_v49 = vadd.f32 %v436_v44, %v6321_v25  ;;  %v6467_v50 = vpop.f32.mrb[17].mxu1  ;;  %756 = vmatprep.mubr.f32.mxu0 %v9429_v7 }
 0x105   :  { %v6478_v58 = vpop.f32.mrb[18].mxu0  ;;  %v9428_v62 = vmax.f32 %v6465_v49, 0.0 }
 0x106   :  { %1504 = vrot.lane.b32.xlu0 %v9431_v43, %s5881_s11  ;;  %v442_v0 = vpop.f32.mrb[19].mxu0  ;;  %v6485_v3 = vpop.f32.mrb[18].mxu1  ;;  %v84_v43 = vld [vmem:[%s9414_s0 + $0x1f8] sm:$0xff] }
 0x107   :  { %2001 = vrot.lane.b32.xlu1 %v1177_v46, %s5881_s11  ;;  %v6489_v4 = vadd.f32 %v442_v0, %v6321_v25  ;;  %v6491_v52 = vpop.f32.mrb[19].mxu1  ;;  %v1174_v46 = vmax.f32 %v866_v13, 0.0  ;;  %v6536_v13 = vadd.f32 %v6374_v60, %v6312_v23  ;;  %v83_v60 = vld [vmem:[%s9414_s0 + $0x1f0] sm:$0xff] }
 0x108   :  { %4845 = vmatmul.mubr.msk.f32.gmra.mrb[124].mxu0 %vm117_vm0, %v83_v60  ;;  %5346 = vmatprep.mubr.msk.f32.mxu1 %vm117_vm0, %v83_v60 }
 0x109   :  { %v6501_v19 = vpop.f32.mrb[20].mxu0  ;;  %v9427_v29 = vmax.f32 %v6489_v4, 0.0  ;;  %9653 = vst [vmem:[#allocation10_spill] sm:$0xff] %v6536_v13  ;;  %v9434_v32 = vmax.f32 %v6536_v13, 0.0  ;;  %762 = vmatprep.mubr.f32.mxu0 %v9429_v7  ;;  %5347 = vmatmul.mubr.msk.f32.gmra.mrb[62].mxu1 %vm117_vm0, %v84_v43 }
 0x10a   :  { %1508 = vrot.lane.b32.xlu0 %v9428_v62, %s5881_s11  ;;  %v448_v34 = vpop.f32.mrb[21].mxu0  ;;  %v6508_v36 = vpop.f32.mrb[20].mxu1 }
 0x10b   :  { %1486 = vrot.lane.b32.xlu1 %v9422_v10, %s5881_s11  ;;  %v6516_v39 = vadd.f32 %v448_v34, %v6321_v25  ;;  %v6518_v44 = vpop.f32.mrb[21].mxu1 }
 0x10c   :  { %4846 = vmatmul.mubr.msk.f32.gmra.mrb[126].mxu0 %vm117_vm0, %v84_v43  ;;  %v6600_v43 = vadd.f32 %v6397_v5, %v6312_v23 }
 0x10d   :  { %v6520_v54 = vpop.f32.mrb[22].mxu0  ;;  %v9426_v0 = vmax.f32 %v6516_v39, 0.0 }
 0x10e   :  { %1512 = vrot.lane.b32.xlu0 %v9427_v29, %s5881_s11  ;;  %v454_v8 = vpop.f32.mrb[23].mxu0  ;;  %v6526_v21 = vpop.f32.mrb[22].mxu1  ;;  %9656 = vst [vmem:[#allocation13_spill] sm:$0xff] %v6600_v43  ;;  %v9450_v5 = vmax.f32 %v6600_v43, 0.0 }
 0x10f   :  { %1999 = vrot.lane.b32.xlu1 %v1174_v46, %s5881_s11  ;;  %v6530_v63 = vadd.f32 %v454_v8, %v6321_v25  ;;  %v6532_v34 = vpop.f32.mrb[23].mxu1 }
 0x111   :  { %v6538_v10 = vpop.f32.mrb[24].mxu0  ;;  %v9432_v28 = vmax.f32 %v6530_v63, 0.0 }
 0x112   :  { %1516 = vrot.lane.b32.xlu0 %v9426_v0, %s5881_s11  ;;  %v460_v57 = vpop.f32.mrb[25].mxu0  ;;  %v6544_v47 = vpop.f32.mrb[24].mxu1  ;;  %v876_v0 = vadd.f32 %v6390_v2, %v6316_v24  ;;  %v891_v2 = vadd.f32 %v6403_v9, %v6316_v24 }
 0x113   :  { %2005 = vrot.lane.b32.xlu1 %v1183_v17, %s5881_s11  ;;  %v6548_v46 = vadd.f32 %v460_v57, %v6321_v25  ;;  %v6550_v8 = vpop.f32.mrb[25].mxu1 }
 0x114   :  { %v1189_v18 = vmax.f32 %v891_v2, 0.0 }
 0x115   :  { %v6560_v29 = vpop.f32.mrb[26].mxu0  ;;  %v9439_v17 = vmax.f32 %v6548_v46, 0.0 }
 0x116   :  { %1520 = vrot.lane.b32.xlu0 %v9432_v28, %s5881_s11  ;;  %v466_v57 = vpop.f32.mrb[27].mxu0  ;;  %v6567_v62 = vpop.f32.mrb[26].mxu1  ;;  %v1180_v28 = vmax.f32 %v876_v0, 0.0 }
 0x117   :  { %1490 = vrot.lane.b32.xlu1 %v9434_v32, %s5881_s11  ;;  %v6575_v60 = vadd.f32 %v466_v57, %v6321_v25  ;;  %v6577_v7 = vpop.f32.mrb[27].mxu1 }
 0x119   :  { %9654 = vst [vmem:[#allocation11_spill] sm:$0xff] %v6575_v60  ;;  %v6584_v31 = vpop.f32.mrb[28].mxu0  ;;  %v9442_v32 = vmax.f32 %v6575_v60, 0.0 }
 0x11a   :  { %1524 = vrot.lane.b32.xlu0 %v9439_v17, %s5881_s11  ;;  %v472_v9 = vpop.f32.mrb[29].mxu0  ;;  %v6590_v57 = vpop.f32.mrb[28].mxu1 }
 0x11b   :  { %2003 = vrot.lane.b32.xlu1 %v1180_v28, %s5881_s11  ;;  %v6594_v6 = vadd.f32 %v472_v9, %v6321_v25  ;;  %v6596_v61 = vpop.f32.mrb[29].mxu1 }
 0x11d   :  { %9655 = vst [vmem:[#allocation12_spill] sm:$0xff] %v6594_v6  ;;  %v6602_v0 = vpop.f32.mrb[30].mxu0 }
 0x11e   :  { %1528 = vrot.lane.b32.xlu0 %v9442_v32, %s5881_s11  ;;  %v478_v2 = vpop.f32.mrb[31].mxu0  ;;  %v6608_v17 = vpop.f32.mrb[30].mxu1  ;;  %v9658_v32 = vmax.f32 %v6594_v6, 0.0 }
 0x11f   :  { %2009 = vrot.lane.b32.xlu1 %v1189_v18, %s5881_s11  ;;  %v6612_v28 = vadd.f32 %v478_v2, %v6321_v25  ;;  %v6614_v9 = vpop.f32.mrb[31].mxu1  ;;  %v901_v2 = vadd.f32 %v6426_v20, %v6316_v24 }
 0x121   :  { %9657 = vst [vmem:[#allocation14_spill] sm:$0xff] %v6612_v28  ;;  %v6619_v42 = vpop.f32.mrb[32].mxu0  ;;  %v9660_v14 = vmax.f32 %v6612_v28, 0.0  ;;  %v1195_v43 = vmax.f32 %v901_v2, 0.0 }
 0x122   :  { %1532 = vrot.lane.b32.xlu0 %v9658_v32, %s5881_s11  ;;  %v484_v16 = vpop.f32.mrb[33].mxu0  ;;  %v6625_v18 = vpop.f32.mrb[32].mxu1  ;;  %v2627_v32 = vld [vmem:[%s9416_s2] sm:$0xff] }
 0x123   :  { %1494 = vrot.lane.b32.xlu1 %v9450_v5, %s5881_s11  ;;  %v6633_v12 = vadd.f32 %v484_v16, %v6321_v25  ;;  %v6635_v13 = vpop.f32.mrb[33].mxu1 }
 0x125   :  { %9659 = vst [vmem:[#allocation15_spill] sm:$0xff] %v6633_v12  ;;  %v6637_v55 = vpop.f32.mrb[34].mxu0 }
 0x126   :  { %1536 = vrot.lane.b32.xlu0 %v9660_v14, %s5881_s11  ;;  %v490_v40 = vpop.f32.mrb[35].mxu0  ;;  %v6647_v16 = vpop.f32.mrb[34].mxu1  ;;  %v9663_v14 = vmax.f32 %v6633_v12, 0.0 }
 0x127   :  { %2007 = vrot.lane.b32.xlu1 %v1186_v53, %s5881_s11  ;;  %v6645_v20 = vadd.f32 %v490_v40, %v6321_v25  ;;  %v6659_v28 = vpop.f32.mrb[35].mxu1  ;;  %v9457_v53 = vmax.f32 %v6651_v59, 0.0 }
 0x129   :  { %9661 = vst [vmem:[#allocation16_spill] sm:$0xff] %v6645_v20  ;;  %v6653_v5 = vpop.f32.mrb[36].mxu0 }
 0x12a   :  { %1540 = vrot.lane.b32.xlu0 %v9663_v14, %s5881_s11  ;;  %v496_v2 = vpop.f32.mrb[37].mxu0  ;;  %v9665_v14 = vmax.f32 %v6645_v20, 0.0 }
 0x12b   :  { %2013 = vrot.lane.b32.xlu1 %v1195_v43, %s5881_s11  ;;  %v6663_v40 = vadd.f32 %v496_v2, %v6321_v25  ;;  %v911_v43 = vadd.f32 %v6444_v35, %v6316_v24  ;;  %v6692_v35 = vpop.f32.mrb[36].mxu1 }
 0x12c   :  { %v6704_v59 = vpop.f32.mrb[37].mxu1 }
 0x12d   :  { %9664 = vst [vmem:[#allocation18_spill] sm:$0xff] %v6663_v40  ;;  %v6668_v27 = vpop.f32.mrb[38].mxu0  ;;  %v9667_v20 = vmax.f32 %v6663_v40, 0.0  ;;  %v1201_v60 = vmax.f32 %v911_v43, 0.0 }
 0x12e   :  { %1544 = vrot.lane.b32.xlu0 %v9665_v14, %s5881_s11  ;;  %v502_v12 = vpop.f32.mrb[39].mxu0 }
 0x12f   :  { %1498 = vrot.lane.b32.xlu1 %v9457_v53, %s5881_s11  ;;  %v6680_v2 = vadd.f32 %v502_v12, %v6321_v25  ;;  %v6696_v12 = vadd.f32 %v6438_v30, %v6312_v23  ;;  %v906_v30 = vadd.f32 %v6453_v38, %v6316_v24 }
 0x131   :  { %9666 = vst [vmem:[#allocation19_spill] sm:$0xff] %v6680_v2  ;;  %v6682_v6 = vpop.f32.mrb[40].mxu0  ;;  %9669 = vst [vmem:[#allocation21_spill] sm:$0xff] %v6696_v12  ;;  %v1198_v38 = vmax.f32 %v906_v30, 0.0 }
 0x132   :  { %1548 = vrot.lane.b32.xlu0 %v9667_v20, %s5881_s11  ;;  %v508_v14 = vpop.f32.mrb[41].mxu0  ;;  %v9671_v20 = vmax.f32 %v6680_v2, 0.0 }
 0x133   :  { %2011 = vrot.lane.b32.xlu1 %v1192_v26, %s5881_s11  ;;  %v6690_v53 = vadd.f32 %v508_v14, %v6321_v25  ;;  %v9462_v14 = vmax.f32 %v6696_v12, 0.0 }
 0x135   :  { %9668 = vst [vmem:[#allocation20_spill] sm:$0xff] %v6690_v53  ;;  %v6698_v15 = vpop.f32.mrb[42].mxu0 }
 0x136   :  { %9670 = vst [vmem:[#allocation22_spill] sm:$0xff] %v6698_v15  ;;  %1552 = vrot.lane.b32.xlu0 %v9671_v20, %s5881_s11  ;;  %v514_v43 = vpop.f32.mrb[43].mxu0  ;;  %v9674_v20 = vmax.f32 %v6690_v53, 0.0 }
 0x137   :  { %2017 = vrot.lane.b32.xlu1 %v1201_v60, %s5881_s11  ;;  %v6708_v26 = vadd.f32 %v514_v43, %v6321_v25  ;;  %v921_v60 = vadd.f32 %v6461_v45, %v6316_v24  ;;  %v6737_v45 = vpop.f32.mrb[38].mxu1 }
 0x138   :  { %v6749_v12 = vpop.f32.mrb[39].mxu1 }
 0x139   :  { %9672 = vst [vmem:[#allocation23_spill] sm:$0xff] %v6708_v26  ;;  %v6713_v40 = vpop.f32.mrb[44].mxu0  ;;  %v9677_v53 = vmax.f32 %v6708_v26, 0.0 }
 0x13a   :  { %9673 = vst [vmem:[#allocation24_spill] sm:$0xff] %v6713_v40  ;;  %1556 = vrot.lane.b32.xlu0 %v9674_v20, %s5881_s11  ;;  %v520_v2 = vpop.f32.mrb[45].mxu0  ;;  %v1207_v40 = vmax.f32 %v921_v60, 0.0 }
 0x13b   :  { %1502 = vrot.lane.b32.xlu1 %v9462_v14, %s5881_s11  ;;  %v6725_v43 = vadd.f32 %v520_v2, %v6321_v25  ;;  %v6741_v2 = vadd.f32 %v6455_v41, %v6312_v23  ;;  %v916_v41 = vadd.f32 %v6467_v50, %v6316_v24 }
 0x13d   :  { %9675 = vst [vmem:[#allocation25_spill] sm:$0xff] %v6725_v43  ;;  %v6727_v15 = vpop.f32.mrb[46].mxu0  ;;  %9679 = vst [vmem:[#allocation28_spill] sm:$0xff] %v6741_v2  ;;  %v1204_v50 = vmax.f32 %v916_v41, 0.0 }
 0x13e   :  { %9676 = vst [vmem:[#allocation26_spill] sm:$0xff] %v6727_v15  ;;  %1560 = vrot.lane.b32.xlu0 %v9677_v53, %s5881_s11  ;;  %v526_v20 = vpop.f32.mrb[47].mxu0  ;;  %v9681_v53 = vmax.f32 %v6725_v43, 0.0 }
 0x13f   :  { %2015 = vrot.lane.b32.xlu1 %v1198_v38, %s5881_s11  ;;  %v6735_v14 = vadd.f32 %v526_v20, %v6321_v25  ;;  %v9467_v20 = vmax.f32 %v6741_v2, 0.0  ;;  %v926_v2 = vadd.f32 %v6491_v52, %v6316_v24 }
 0x141   :  { %9678 = vst [vmem:[#allocation27_spill] sm:$0xff] %v6735_v14  ;;  %v6743_v30 = vpop.f32.mrb[48].mxu0 }
 0x142   :  { %9680 = vst [vmem:[#allocation29_spill] sm:$0xff] %v6743_v30  ;;  %1564 = vrot.lane.b32.xlu0 %v9681_v53, %s5881_s11  ;;  %v532_v60 = vpop.f32.mrb[49].mxu0  ;;  %v9684_v53 = vmax.f32 %v6735_v14, 0.0 }
 0x143   :  { %2021 = vrot.lane.b32.xlu1 %v1207_v40, %s5881_s11  ;;  %v6753_v38 = vadd.f32 %v532_v60, %v6321_v25  ;;  %v931_v40 = vadd.f32 %v6485_v3, %v6316_v24  ;;  %v6782_v3 = vpop.f32.mrb[40].mxu1 }
 0x145   :  { %9682 = vst [vmem:[#allocation30_spill] sm:$0xff] %v6753_v38  ;;  %v6758_v26 = vpop.f32.mrb[50].mxu0  ;;  %v9687_v14 = vmax.f32 %v6753_v38, 0.0  ;;  %v6800_v38 = vpop.f32.mrb[41].mxu1 }
 0x146   :  { %9683 = vst [vmem:[#allocation31_spill] sm:$0xff] %v6758_v26  ;;  %1568 = vrot.lane.b32.xlu0 %v9684_v53, %s5881_s11  ;;  %v538_v43 = vpop.f32.mrb[51].mxu0  ;;  %v1213_v26 = vmax.f32 %v931_v40, 0.0  ;;  %9692 = vst [vmem:[#allocation37_spill] sm:$0xff] %v6800_v38 }
 0x147   :  { %1506 = vrot.lane.b32.xlu1 %v9467_v20, %s5881_s11  ;;  %v6770_v60 = vadd.f32 %v538_v43, %v6321_v25  ;;  %v6786_v43 = vadd.f32 %v6478_v58, %v6312_v23 }
 0x149   :  { %9685 = vst [vmem:[#allocation32_spill] sm:$0xff] %v6770_v60  ;;  %v6772_v30 = vpop.f32.mrb[52].mxu0  ;;  %9689 = vst [vmem:[#allocation35_spill] sm:$0xff] %v6786_v43  ;;  %v9696_v52 = vmax.f32 %v6786_v43, 0.0  ;;  %v936_v43 = vadd.f32 %v6518_v44, %v6316_v24  ;;  %v2635_v44 = vld [vmem:[%s9416_s2 + $0x40] sm:$0xff] }
 0x14a   :  { %9686 = vst [vmem:[#allocation33_spill] sm:$0xff] %v6772_v30  ;;  %1572 = vrot.lane.b32.xlu0 %v9687_v14, %s5881_s11  ;;  %v544_v53 = vpop.f32.mrb[53].mxu0  ;;  %v2628_v14 = vld [vmem:[%s9416_s2 + $0x8] sm:$0xff] }
 0x14b   :  { %2019 = vrot.lane.b32.xlu1 %v1204_v50, %s5881_s11  ;;  %v6780_v20 = vadd.f32 %v544_v53, %v6321_v25  ;;  %v9691_v50 = vmax.f32 %v6770_v60, 0.0  ;;  %v5671_v58 = vpack.c.bf16 %v2628_v14, %v2627_v32  ;;  %v2630_v32 = vld [vmem:[%s9416_s2 + $0x18] sm:$0xff]  ;;  %v1210_v60 = vmax.f32 %v926_v2, 0.0 }
 0x14d   :  { %9688 = vst [vmem:[#allocation34_spill] sm:$0xff] %v6780_v20  ;;  %v6788_v41 = vpop.f32.mrb[54].mxu0  ;;  %5672 = vmatprep.subr.bf16.mxu1 %v5671_v58  ;;  %v9695_v14 = vmax.f32 %v6780_v20, 0.0 }
 0x14e   :  { %9690 = vst [vmem:[#allocation36_spill] sm:$0xff] %v6788_v41  ;;  %1576 = vrot.lane.b32.xlu0 %v9691_v50, %s5881_s11  ;;  %v550_v53 = vpop.f32.mrb[55].mxu0  ;;  %5674 = vmatpush3.bf16.msra.mxu1 %v5671_v58  ;;  %v2629_v50 = vld [vmem:[%s9416_s2 + $0x10] sm:$0xff]  ;;  %v941_v58 = vadd.f32 %v6508_v36, %v6316_v24 }
 0x14f   :  { %2025 = vrot.lane.b32.xlu1 %v1213_v26, %s5881_s11  ;;  %v6804_v41 = vadd.f32 %v550_v53, %v6321_v25  ;;  %v5675_v30 = vpack.c.bf16 %v2630_v32, %v2629_v50  ;;  %v2632_v50 = vld [vmem:[%s9416_s2 + $0x28] sm:$0xff]  ;;  %v6851_v32 = vadd.f32 %v6501_v19, %v6312_v23 }
 0x150   :  { %v1219_v2 = vmax.f32 %v941_v58, 0.0  ;;  %v2634_v58 = vld [vmem:[%s9416_s2 + $0x38] sm:$0xff] }
 0x151   :  { %9693 = vst [vmem:[#allocation38_spill] sm:$0xff] %v6804_v41  ;;  %v6809_v40 = vpop.f32.mrb[56].mxu0  ;;  %v9473_v26 = vmax.f32 %v6804_v41, 0.0  ;;  %5676 = vmatprep.subr.bf16.mxu1 %v5675_v30  ;;  %9701 = vst [vmem:[#allocation44_spill] sm:$0xff] %v6851_v32 }
 0x152   :  { %9694 = vst [vmem:[#allocation39_spill] sm:$0xff] %v6809_v40  ;;  %1580 = vrot.lane.b32.xlu0 %v9695_v14, %s5881_s11  ;;  %v556_v53 = vpop.f32.mrb[57].mxu0  ;;  %5678 = vmatpush3.bf16.msra.mxu1 %v5675_v30  ;;  %v2631_v14 = vld [vmem:[%s9416_s2 + $0x20] sm:$0xff] }
 0x153   :  { %1510 = vrot.lane.b32.xlu1 %v9696_v52, %s5881_s11  ;;  %v6827_v40 = vadd.f32 %v556_v53, %v6321_v25  ;;  %v5679_v53 = vpack.c.bf16 %v2632_v50, %v2631_v14  ;;  %v6845_v52 = vpop.f32.mrb[42].mxu1 }
 0x154   :  { %9700 = vst [vmem:[#allocation43_spill] sm:$0xff] %v6845_v52 }
 0x155   :  { %9697 = vst [vmem:[#allocation40_spill] sm:$0xff] %v6827_v40  ;;  %v6829_v15 = vpop.f32.mrb[58].mxu0  ;;  %5680 = vmatprep.subr.bf16.mxu1 %v5679_v53  ;;  %v9703_v50 = vmax.f32 %v6827_v40, 0.0 }
 0x156   :  { %9698 = vst [vmem:[#allocation41_spill] sm:$0xff] %v6829_v15  ;;  %1584 = vrot.lane.b32.xlu0 %v9473_v26, %s5881_s11  ;;  %v562_v36 = vpop.f32.mrb[59].mxu0  ;;  %5682 = vmatpush3.bf16.msra.mxu1 %v5679_v53 }
 0x157   :  { %2023 = vrot.lane.b32.xlu1 %v1210_v60, %s5881_s11  ;;  %v6843_v30 = vadd.f32 %v562_v36, %v6321_v25  ;;  %v2633_v60 = vld [vmem:[%s9416_s2 + $0x30] sm:$0xff]  ;;  %v6865_v36 = vpop.f32.mrb[43].mxu1 }
 0x158   :  { %v6847_v15 = vpop.permute.xlu0 %1474  ;;  %9704 = vst [vmem:[#allocation46_spill] sm:$0xff] %v6865_v36  ;;  %v5683_v26 = vpack.c.bf16 %v2634_v58, %v2633_v60  ;;  %v6900_v38 = vpop.f32.mrb[44].mxu1 }
 0x159   :  { %9699 = vst [vmem:[#allocation42_spill] sm:$0xff] %v6843_v30  ;;  %v1990_v20 = vpop.permute.xlu1 %1989  ;;  %v6853_v41 = vpop.f32.mrb[60].mxu0  ;;  %9711 = vst [vmem:[#allocation51_spill] sm:$0xff] %v6900_v38 }
 0x15a   :  { %9702 = vst [vmem:[#allocation45_spill] sm:$0xff] %v6853_v41  ;;  %1588 = vrot.lane.b32.xlu0 %v9703_v50, %s5881_s11  ;;  %v568_v19 = vpop.f32.mrb[61].mxu0  ;;  %5684 = vmatprep.subr.bf16.mxu1 %v5683_v26  ;;  %v9477_v41 = vmax.f32 %v6851_v32, 0.0  ;;  %v9706_v50 = vmax.f32 %v6843_v30, 0.0  ;;  %v1216_v30 = vmax.f32 %v936_v43, 0.0 }
 0x15b   :  { %2029 = vrot.lane.b32.xlu1 %v1219_v2, %s5881_s11  ;;  %5686 = vmatpush3.bf16.msra.mxu1 %v5683_v26  ;;  %v951_v2 = vadd.f32 %v6526_v21, %v6316_v24  ;;  %v6889_v26 = vadd.f32 %v568_v19, %v6321_v25  ;;  %v9710_v21 = vmax.f32 %v6331_v33, 0.0 }
 0x15c   :  { %v6868_v53 = vpop.permute.xlu0 %1476  ;;  %5365 = vmatprep.subr.mxu1 %v2635_v44 }
 0x15d   :  { %v6873_v52 = vpop.permute.xlu1 %1993  ;;  %v6875_v14 = vpop.f32.mrb[62].mxu0  ;;  %9707 = vst [vmem:[#allocation48_spill] sm:$0xff] %v6889_v26  ;;  %v1225_v36 = vmax.f32 %v951_v2, 0.0  ;;  %v9479_v19 = vmax.f32 %v6889_v26, 0.0 }
 0x15e   :  { %9705 = vst [vmem:[#allocation47_spill] sm:$0xff] %v6875_v14  ;;  %1592 = vrot.lane.b32.xlu0 %v9706_v50, %s5881_s11  ;;  %v574_v60 = vpop.f32.mrb[63].mxu0  ;;  %v6914_v2 = vpop.f32.mrb[45].mxu1 }
 0x15f   :  { %1514 = vrot.lane.b32.xlu1 %v9477_v41, %s5881_s11  ;;  %5366 = vmatpush3.msra.mxu1 %v2635_v44  ;;  %9714 = vst [vmem:[#allocation54_spill] sm:$0xff] %v6914_v2 }
 0x160   :  { %v1988_v58 = vpop.permute.xlu0 %1987 }
 0x161   :  { %v6891_v50 = vpop.permute.xlu1 %1478  ;;  %v2115_v40 = vsel %vm1730_vm2, %v6868_v53, %v1988_v58  ;;  %v6895_v41 = vpop.f32.mrb[64].mxu0  ;;  %v6908_v58 = vadd.f32 %v6520_v54, %v6312_v23  ;;  %v6925_v54 = vadd.f32 %v574_v60, %v6321_v25  ;;  %v961_v60 = vadd.f32 %v6544_v47, %v6316_v24 }
 0x162   :  { %9708 = vst [vmem:[#allocation49_spill] sm:$0xff] %v6891_v50  ;;  %9709 = vst [vmem:[#allocation50_spill] sm:$0xff] %v6895_v41  ;;  %v2243_v14 = vmax.f32 %v9710_v21, %v2115_v40  ;;  %v580_v32 = vpop.f32.mrb[65].mxu0  ;;  %v6952_v47 = vpop.f32.mrb[46].mxu1 }
 0x163   :  { %2027 = vrot.lane.b32.xlu1 %v1216_v30, %s5881_s11  ;;  %9712 = vst [vmem:[#allocation52_spill] sm:$0xff] %v6908_v58  ;;  %9716 = vst [vmem:[#allocation56_spill] sm:$0xff] %v6925_v54  ;;  %v9481_v21 = vmax.f32 %v6908_v58, 0.0 }
 0x164   :  { %2371 = vrot.lane.b32.xlu0 %v2243_v14, %s5882_s16  ;;  %v6904_v43 = vpop.permute.xlu0 %1484  ;;  %9721 = vst [vmem:[#allocation60_spill] sm:$0xff] %v6952_v47 }
 0x165   :  { %v6910_v44 = vpop.permute.xlu1 %1480  ;;  %v6912_v33 = vpop.f32.mrb[66].mxu0 }
 0x166   :  { %9713 = vst [vmem:[#allocation53_spill] sm:$0xff] %v6912_v33  ;;  %v586_v40 = vpop.f32.mrb[67].mxu0  ;;  %v2116_v30 = vsel %vm1730_vm2, %v6910_v44, %v1990_v20  ;;  %v946_v33 = vadd.f32 %v6532_v34, %v6316_v24  ;;  %v9718_v20 = vmax.f32 %v6356_v51, 0.0 }
 0x167   :  { %2033 = vrot.lane.b32.xlu1 %v1225_v36, %s5881_s11 }
 0x168   :  { %1596 = vrot.lane.b32.xlu0 %v9479_v19, %s5881_s11  ;;  %v6922_v14 = vpop.permute.xlu0 %1488  ;;  %v2244_v36 = vmax.f32 %v9718_v20, %v2116_v30  ;;  %v9484_v19 = vmax.f32 %v6925_v54, 0.0  ;;  %v1222_v34 = vmax.f32 %v946_v33, 0.0  ;;  %v1231_v20 = vmax.f32 %v961_v60, 0.0  ;;  %v6974_v54 = vpop.f32.mrb[47].mxu1 }
 0x169   :  { %9715 = vst [vmem:[#allocation55_spill] sm:$0xff] %v6922_v14  ;;  %v1992_v41 = vpop.permute.xlu1 %1991  ;;  %v6930_v2 = vpop.f32.mrb[68].mxu0  ;;  %v6960_v33 = vadd.f32 %v580_v32, %v6321_v25  ;;  %v9726_v60 = vmax.f32 %v6352_v48, 0.0  ;;  %9727 = vst [vmem:[#allocation65_spill] sm:$0xff] %v6974_v54 }
 0x16a   :  { %9717 = vst [vmem:[#allocation57_spill] sm:$0xff] %v6930_v2  ;;  %v592_v38 = vpop.f32.mrb[69].mxu0  ;;  %v2117_v30 = vsel %vm1730_vm2, %v6904_v43, %v1992_v41 }
 0x16b   :  { %1518 = vrot.lane.b32.xlu1 %v9481_v21, %s5881_s11  ;;  %9723 = vst [vmem:[#allocation62_spill] sm:$0xff] %v6960_v33  ;;  %v6964_v21 = vadd.f32 %v6538_v10, %v6312_v23  ;;  %v9489_v32 = vmax.f32 %v6960_v33, 0.0  ;;  %v7013_v33 = vpop.f32.mrb[48].mxu1 }
 0x16c   :  { %2373 = vrot.lane.b32.xlu0 %v2244_v36, %s5882_s16  ;;  %v6941_v26 = vpop.permute.xlu0 %1492  ;;  %9734 = vst [vmem:[#allocation71_spill] sm:$0xff] %v7013_v33 }
 0x16d   :  { %9719 = vst [vmem:[#allocation58_spill] sm:$0xff] %v6941_v26  ;;  %v6943_v50 = vpop.permute.xlu1 %1997  ;;  %v6945_v2 = vpop.f32.mrb[70].mxu0  ;;  %9724 = vst [vmem:[#allocation63_spill] sm:$0xff] %v6964_v21  ;;  %v9486_v10 = vmax.f32 %v6964_v21, 0.0  ;;  %v9733_v21 = vmax.f32 %v6367_v56, 0.0 }
 0x16e   :  { %9720 = vst [vmem:[#allocation59_spill] sm:$0xff] %v6945_v2  ;;  %v6947_v51 = vpop.f32.mrb[71].mxu0 }
 0x16f   :  { %2031 = vrot.lane.b32.xlu1 %v1222_v34, %s5881_s11  ;;  %v2245_v34 = vmax.f32 %v9726_v60, %v2117_v30  ;;  %v971_v60 = vadd.f32 %v6567_v62, %v6316_v24 }
 0x170   :  { %1600 = vrot.lane.b32.xlu0 %v9484_v19, %s5881_s11  ;;  %v6957_v36 = vpop.permute.xlu0 %1496 }
 0x171   :  { %9722 = vst [vmem:[#allocation61_spill] sm:$0xff] %v6957_v36  ;;  %v6966_v2 = vpop.permute.xlu1 %1482  ;;  %v6968_v41 = vpop.f32.mrb[72].mxu0  ;;  %v1237_v62 = vmax.f32 %v971_v60, 0.0 }
 0x172   :  { %9725 = vst [vmem:[#allocation64_spill] sm:$0xff] %v6968_v41  ;;  %v6972_v58 = vpop.f32.mrb[73].mxu0  ;;  %v956_v41 = vadd.f32 %v6550_v8, %v6316_v24 }
 0x173   :  { %2037 = vrot.lane.b32.xlu1 %v1231_v20, %s5881_s11  ;;  %v2118_v20 = vsel %vm1730_vm2, %v6922_v14, %v6873_v52 }
 0x174   :  { %2375 = vrot.lane.b32.xlu0 %v2245_v34, %s5882_s16  ;;  %v6979_v19 = vpop.permute.xlu0 %1500  ;;  %v7002_v34 = vadd.f32 %v586_v40, %v6321_v25 }
 0x175   :  { %9728 = vst [vmem:[#allocation66_spill] sm:$0xff] %v6979_v19  ;;  %v1996_v47 = vpop.permute.xlu1 %1995  ;;  %v6984_v48 = vpop.f32.mrb[74].mxu0 }
 0x176   :  { %9729 = vst [vmem:[#allocation67_spill] sm:$0xff] %v6984_v48  ;;  %v6986_v30 = vpop.f32.mrb[75].mxu0  ;;  %9731 = vst [vmem:[#allocation69_spill] sm:$0xff] %v7002_v34  ;;  %v1228_v48 = vmax.f32 %v956_v41, 0.0  ;;  %v7021_v41 = vadd.f32 %v6560_v29, %v6312_v23  ;;  %v7040_v29 = vadd.f32 %v592_v38, %v6321_v25  ;;  %v981_v38 = vadd.f32 %v6590_v57, %v6316_v24 }
 0x177   :  { %1522 = vrot.lane.b32.xlu1 %v9486_v10, %s5881_s11  ;;  %v2246_v10 = vmax.f32 %v9733_v21, %v2118_v20  ;;  %v7029_v20 = vpop.f32.mrb[49].mxu1 }
 0x178   :  { %1604 = vrot.lane.b32.xlu0 %v9489_v32, %s5881_s11  ;;  %v6999_v8 = vpop.permute.xlu0 %1504  ;;  %v9491_v32 = vmax.f32 %v7002_v34, 0.0  ;;  %9736 = vst [vmem:[#allocation73_spill] sm:$0xff] %v7021_v41  ;;  %9738 = vst [vmem:[#allocation75_spill] sm:$0xff] %v7029_v20  ;;  %v9493_v60 = vmax.f32 %v7021_v41, 0.0  ;;  %v7070_v57 = vpop.f32.mrb[50].mxu1 }
 0x179   :  { %9730 = vst [vmem:[#allocation68_spill] sm:$0xff] %v6999_v8  ;;  %v7004_v54 = vpop.permute.xlu1 %2001  ;;  %v7006_v52 = vpop.f32.mrb[76].mxu0  ;;  %9740 = vst [vmem:[#allocation77_spill] sm:$0xff] %v7040_v29 }
 0x17a   :  { %9732 = vst [vmem:[#allocation70_spill] sm:$0xff] %v7006_v52  ;;  %v7010_v14 = vpop.f32.mrb[77].mxu0  ;;  %9745 = vst [vmem:[#allocation81_spill] sm:$0xff] %v7070_v57 }
 0x17b   :  { %2035 = vrot.lane.b32.xlu1 %v1228_v48, %s5881_s11  ;;  %v2119_v48 = vsel %vm1730_vm2, %v6941_v26, %v1996_v47  ;;  %v9742_v47 = vmax.f32 %v6388_v1, 0.0 }
 0x17c   :  { %2377 = vrot.lane.b32.xlu0 %v2246_v10, %s5882_s16  ;;  %v7017_v40 = vpop.permute.xlu0 %1508 }
 0x17d   :  { %9735 = vst [vmem:[#allocation72_spill] sm:$0xff] %v7017_v40  ;;  %v7023_v52 = vpop.permute.xlu1 %1486  ;;  %v7025_v56 = vpop.f32.mrb[78].mxu0 }
 0x17e   :  { %9737 = vst [vmem:[#allocation74_spill] sm:$0xff] %v7025_v56  ;;  %v7027_v21 = vpop.f32.mrb[79].mxu0  ;;  %v966_v56 = vadd.f32 %v6577_v7, %v6316_v24 }
 0x17f   :  { %2041 = vrot.lane.b32.xlu1 %v1237_v62, %s5881_s11  ;;  %v2247_v62 = vmax.f32 %v9742_v47, %v2119_v48  ;;  %v2120_v47 = vsel %vm1730_vm2, %v6957_v36, %v6943_v50 }
 0x180   :  { %1608 = vrot.lane.b32.xlu0 %v9491_v32, %s5881_s11  ;;  %v7037_v10 = vpop.permute.xlu0 %1512  ;;  %v9495_v32 = vmax.f32 %v7040_v29, 0.0  ;;  %v1234_v34 = vmax.f32 %v966_v56, 0.0 }
 0x181   :  { %9739 = vst [vmem:[#allocation76_spill] sm:$0xff] %v7037_v10  ;;  %v2000_v20 = vpop.permute.xlu1 %1999  ;;  %v7045_v33 = vpop.f32.mrb[80].mxu0 }
 0x182   :  { %9741 = vst [vmem:[#allocation78_spill] sm:$0xff] %v7045_v33  ;;  %v7049_v26 = vpop.f32.mrb[81].mxu0 }
 0x183   :  { %1526 = vrot.lane.b32.xlu1 %v9493_v60, %s5881_s11  ;;  %v1243_v60 = vmax.f32 %v981_v38, 0.0 }
 0x184   :  { %2379 = vrot.lane.b32.xlu0 %v2247_v62, %s5882_s16  ;;  %v7058_v7 = vpop.permute.xlu0 %1516  ;;  %v7079_v62 = vadd.f32 %v6947_v51, %v6321_v25 }
 0x185   :  { %9743 = vst [vmem:[#allocation79_spill] sm:$0xff] %v7058_v7  ;;  %v7060_v33 = vpop.permute.xlu1 %2005  ;;  %v7062_v1 = vpop.f32.mrb[82].mxu0 }
 0x186   :  { %9744 = vst [vmem:[#allocation80_spill] sm:$0xff] %v7062_v1  ;;  %v7064_v48 = vpop.f32.mrb[83].mxu0  ;;  %9747 = vst [vmem:[#allocation83_spill] sm:$0xff] %v7079_v62  ;;  %v7083_v1 = vadd.f32 %v6584_v31, %v6312_v23  ;;  %v9501_v51 = vmax.f32 %v7079_v62, 0.0 }
 0x187   :  { %2039 = vrot.lane.b32.xlu1 %v1234_v34, %s5881_s11  ;;  %v9750_v34 = vmax.f32 %v6408_v11, 0.0 }
 0x188   :  { %1612 = vrot.lane.b32.xlu0 %v9495_v32, %s5881_s11  ;;  %v7075_v56 = vpop.permute.xlu0 %1520  ;;  %9748 = vst [vmem:[#allocation84_spill] sm:$0xff] %v7083_v1  ;;  %v7093_v32 = vpop.f32.mrb[51].mxu1  ;;  %v9498_v31 = vmax.f32 %v7083_v1, 0.0 }
 0x189   :  { %9746 = vst [vmem:[#allocation82_spill] sm:$0xff] %v7075_v56  ;;  %v7085_v50 = vpop.permute.xlu1 %1490  ;;  %v7087_v38 = vpop.f32.mrb[84].mxu0  ;;  %v2248_v41 = vmax.f32 %v9750_v34, %v2120_v47  ;;  %9751 = vst [vmem:[#allocation86_spill] sm:$0xff] %v7093_v32  ;;  %v2121_v34 = vsel %vm1730_vm2, %v6979_v19, %v2000_v20 }
 0x18a   :  { %9749 = vst [vmem:[#allocation85_spill] sm:$0xff] %v7087_v38  ;;  %v7091_v57 = vpop.f32.mrb[85].mxu0  ;;  %v976_v38 = vadd.f32 %v6596_v61, %v6316_v24 }
 0x18b   :  { %2045 = vrot.lane.b32.xlu1 %v1243_v60, %s5881_s11  ;;  %v7121_v60 = vadd.f32 %v6972_v58, %v6321_v25  ;;  %v7136_v58 = vpop.f32.mrb[52].mxu1 }
 0x18c   :  { %2381 = vrot.lane.b32.xlu0 %v2248_v41, %s5882_s16  ;;  %v7098_v29 = vpop.permute.xlu0 %1524  ;;  %v991_v41 = vadd.f32 %v6608_v17, %v6316_v24  ;;  %9757 = vst [vmem:[#allocation91_spill] sm:$0xff] %v7136_v58 }
 0x18d   :  { %9752 = vst [vmem:[#allocation87_spill] sm:$0xff] %v7098_v29  ;;  %v2004_v36 = vpop.permute.xlu1 %2003  ;;  %v7103_v11 = vpop.f32.mrb[86].mxu0  ;;  %9754 = vst [vmem:[#allocation89_spill] sm:$0xff] %v7121_v60 }
 0x18e   :  { %9753 = vst [vmem:[#allocation88_spill] sm:$0xff] %v7103_v11  ;;  %v7105_v47 = vpop.f32.mrb[87].mxu0  ;;  %v1240_v11 = vmax.f32 %v976_v38, 0.0  ;;  %v1249_v17 = vmax.f32 %v991_v41, 0.0  ;;  %v7140_v38 = vadd.f32 %v6602_v0, %v6312_v23 }
 0x18f   :  { %1530 = vrot.lane.b32.xlu1 %v9498_v31, %s5881_s11  ;;  %v9756_v31 = vmax.f32 %v6431_v22, 0.0 }
 0x190   :  { %1616 = vrot.lane.b32.xlu0 %v9501_v51, %s5881_s11  ;;  %v7117_v61 = vpop.permute.xlu0 %1528  ;;  %v9504_v51 = vmax.f32 %v7121_v60, 0.0  ;;  %9758 = vst [vmem:[#allocation92_spill] sm:$0xff] %v7140_v38  ;;  %v9506_v41 = vmax.f32 %v7140_v38, 0.0 }
 0x191   :  { %v7123_v32 = vpop.permute.xlu1 %2009  ;;  %v7125_v20 = vpop.f32.mrb[88].mxu0  ;;  %v2249_v1 = vmax.f32 %v9756_v31, %v2121_v34 }
 0x192   :  { %9755 = vst [vmem:[#allocation90_spill] sm:$0xff] %v7125_v20  ;;  %v7129_v19 = vpop.f32.mrb[89].mxu0  ;;  %v7148_v34 = vpop.f32.mrb[53].mxu1 }
 0x193   :  { %2043 = vrot.lane.b32.xlu1 %v1240_v11, %s5881_s11  ;;  %9760 = vst [vmem:[#allocation94_spill] sm:$0xff] %v7148_v34  ;;  %v7161_v11 = vadd.f32 %v6986_v30, %v6321_v25  ;;  %v1001_v30 = vadd.f32 %v6625_v18, %v6316_v24 }
 0x194   :  { %2383 = vrot.lane.b32.xlu0 %v2249_v1, %s5882_s16  ;;  %v7134_v62 = vpop.permute.xlu0 %1532  ;;  %v2122_v1 = vsel %vm1730_vm2, %v6999_v8, %v7004_v54  ;;  %v9763_v54 = vmax.f32 %v6451_v37, 0.0 }
 0x195   :  { %v7142_v20 = vpop.permute.xlu1 %1494  ;;  %v7144_v22 = vpop.f32.mrb[90].mxu0  ;;  %9761 = vst [vmem:[#allocation95_spill] sm:$0xff] %v7161_v11 }
 0x196   :  { %9759 = vst [vmem:[#allocation93_spill] sm:$0xff] %v7144_v22  ;;  %v7146_v31 = vpop.f32.mrb[91].mxu0  ;;  %v986_v22 = vadd.f32 %v6614_v9, %v6316_v24 }
 0x197   :  { %2049 = vrot.lane.b32.xlu1 %v1249_v17, %s5881_s11  ;;  %v2250_v17 = vmax.f32 %v9763_v54, %v2122_v1  ;;  %v2123_v54 = vsel %vm1730_vm2, %v7017_v40, %v2004_v36 }
 0x198   :  { %1620 = vrot.lane.b32.xlu0 %v9504_v51, %s5881_s11  ;;  %v7157_v0 = vpop.permute.xlu0 %1536  ;;  %v9508_v51 = vmax.f32 %v7161_v11, 0.0  ;;  %v1246_v60 = vmax.f32 %v986_v22, 0.0  ;;  %v7197_v22 = vadd.f32 %v7010_v14, %v6321_v25 }
 0x199   :  { %v2008_v34 = vpop.permute.xlu1 %2007  ;;  %v7166_v58 = vpop.f32.mrb[92].mxu0 }
 0x19a   :  { %9762 = vst [vmem:[#allocation96_spill] sm:$0xff] %v7166_v58  ;;  %v7170_v8 = vpop.f32.mrb[93].mxu0  ;;  %9765 = vst [vmem:[#allocation98_spill] sm:$0xff] %v7197_v22  ;;  %v9514_v14 = vmax.f32 %v7197_v22, 0.0 }
 0x19b   :  { %1534 = vrot.lane.b32.xlu1 %v9506_v41, %s5881_s11  ;;  %v1255_v41 = vmax.f32 %v1001_v30, 0.0 }
 0x19c   :  { %2385 = vrot.lane.b32.xlu0 %v2250_v17, %s5882_s16  ;;  %v7179_v9 = vpop.permute.xlu0 %1540  ;;  %v7199_v17 = vpop.f32.mrb[54].mxu1 }
 0x19d   :  { %v7181_v58 = vpop.permute.xlu1 %2013  ;;  %v7183_v37 = vpop.f32.mrb[94].mxu0  ;;  %9766 = vst [vmem:[#allocation99_spill] sm:$0xff] %v7199_v17 }
 0x19e   :  { %9764 = vst [vmem:[#allocation97_spill] sm:$0xff] %v7183_v37  ;;  %v7185_v1 = vpop.f32.mrb[95].mxu0  ;;  %v7203_v37 = vadd.f32 %v6619_v42, %v6312_v23  ;;  %v7213_v38 = vpop.f32.mrb[55].mxu1 }
 0x19f   :  { %2047 = vrot.lane.b32.xlu1 %v1246_v60, %s5881_s11  ;;  %v9769_v60 = vmax.f32 %v6465_v49, 0.0  ;;  %9770 = vst [vmem:[#allocation102_spill] sm:$0xff] %v7213_v38 }
 0x1a0   :  { %1624 = vrot.lane.b32.xlu0 %v9508_v51, %s5881_s11  ;;  %v7193_v18 = vpop.permute.xlu0 %1544  ;;  %9767 = vst [vmem:[#allocation100_spill] sm:$0xff] %v7203_v37  ;;  %v9511_v42 = vmax.f32 %v7203_v37, 0.0 }
 0x1a1   :  { %v7205_v36 = vpop.permute.xlu1 %1498  ;;  %v7207_v30 = vpop.f32.mrb[96].mxu0  ;;  %v2251_v11 = vmax.f32 %v9769_v60, %v2123_v54  ;;  %v7244_v60 = vadd.f32 %v7027_v21, %v6321_v25  ;;  %v7261_v21 = vadd.f32 %v6637_v55, %v6312_v23  ;;  %v7279_v55 = vadd.f32 %v7049_v26, %v6321_v25 }
 0x1a2   :  { %9768 = vst [vmem:[#allocation101_spill] sm:$0xff] %v7207_v30  ;;  %v7211_v51 = vpop.f32.mrb[97].mxu0  ;;  %v996_v30 = vadd.f32 %v6635_v13, %v6316_v24  ;;  %v1021_v26 = vadd.f32 %v6692_v35, %v6316_v24 }
 0x1a3   :  { %2053 = vrot.lane.b32.xlu1 %v1255_v41, %s5881_s11  ;;  %v2124_v41 = vsel %vm1730_vm2, %v7037_v10, %v7060_v33  ;;  %9772 = vst [vmem:[#allocation104_spill] sm:$0xff] %v7244_v60  ;;  %9775 = vst [vmem:[#allocation106_spill] sm:$0xff] %v7261_v21 }
 0x1a4   :  { %2387 = vrot.lane.b32.xlu0 %v2251_v11, %s5882_s16  ;;  %v7218_v17 = vpop.permute.xlu0 %1548  ;;  %v1011_v11 = vadd.f32 %v6647_v16, %v6316_v24  ;;  %9777 = vst [vmem:[#allocation108_spill] sm:$0xff] %v7279_v55  ;;  %v1267_v35 = vmax.f32 %v1021_v26, 0.0  ;;  %v9786_v26 = vmax.f32 %v6530_v63, 0.0 }
 0x1a5   :  { %v7223_v40 = vpop.permute.xlu1 %2011  ;;  %v7225_v49 = vpop.f32.mrb[98].mxu0 }
 0x1a6   :  { %9771 = vst [vmem:[#allocation103_spill] sm:$0xff] %v7225_v49  ;;  %v7227_v54 = vpop.f32.mrb[99].mxu0  ;;  %v1252_v49 = vmax.f32 %v996_v30, 0.0  ;;  %v1261_v16 = vmax.f32 %v1011_v11, 0.0 }
 0x1a7   :  { %1538 = vrot.lane.b32.xlu1 %v9511_v42, %s5881_s11  ;;  %v9774_v42 = vmax.f32 %v6489_v4, 0.0 }
 0x1a8   :  { %1628 = vrot.lane.b32.xlu0 %v9514_v14, %s5881_s11  ;;  %v7240_v13 = vpop.permute.xlu0 %1552  ;;  %v9517_v14 = vmax.f32 %v7244_v60, 0.0 }
 0x1a9   :  { %v7246_v38 = vpop.permute.xlu1 %2017  ;;  %v7248_v33 = vpop.f32.mrb[100].mxu0  ;;  %v2252_v37 = vmax.f32 %v9774_v42, %v2124_v41  ;;  %v2125_v42 = vsel %vm1730_vm2, %v7058_v7, %v2008_v34  ;;  %v1006_v41 = vadd.f32 %v6659_v28, %v6316_v24  ;;  %v9521_v28 = vmax.f32 %v7279_v55, 0.0 }
 0x1aa   :  { %9773 = vst [vmem:[#allocation105_spill] sm:$0xff] %v7248_v33  ;;  %v7252_v10 = vpop.f32.mrb[101].mxu0  ;;  %v1016_v55 = vadd.f32 %v6704_v59, %v6316_v24 }
 0x1ab   :  { %2051 = vrot.lane.b32.xlu1 %v1252_v49, %s5881_s11  ;;  %v9519_v49 = vmax.f32 %v7261_v21, 0.0 }
 0x1ac   :  { %2389 = vrot.lane.b32.xlu0 %v2252_v37, %s5882_s16  ;;  %v7257_v22 = vpop.permute.xlu0 %1556 }
 0x1ad   :  { %v7263_v30 = vpop.permute.xlu1 %1502  ;;  %v7265_v33 = vpop.f32.mrb[102].mxu0 }
 0x1ae   :  { %9776 = vst [vmem:[#allocation107_spill] sm:$0xff] %v7265_v33  ;;  %v7267_v4 = vpop.f32.mrb[103].mxu0 }
 0x1af   :  { %2057 = vrot.lane.b32.xlu1 %v1261_v16, %s5881_s11  ;;  %v9779_v16 = vmax.f32 %v6516_v39, 0.0  ;;  %v1258_v39 = vmax.f32 %v1006_v41, 0.0  ;;  %v7322_v41 = vadd.f32 %v7064_v48, %v6321_v25 }
 0x1b0   :  { %1632 = vrot.lane.b32.xlu0 %v9517_v14, %s5881_s11  ;;  %v7275_v37 = vpop.permute.xlu0 %1560  ;;  %v7292_v14 = vpop.f32.mrb[56].mxu1 }
 0x1b1   :  { %v7284_v11 = vpop.permute.xlu1 %2015  ;;  %v7286_v34 = vpop.f32.mrb[104].mxu0  ;;  %v2253_v33 = vmax.f32 %v9779_v16, %v2125_v42  ;;  %9780 = vst [vmem:[#allocation110_spill] sm:$0xff] %v7292_v14  ;;  %9783 = vst [vmem:[#allocation113_spill] sm:$0xff] %v7322_v41 }
 0x1b2   :  { %9778 = vst [vmem:[#allocation109_spill] sm:$0xff] %v7286_v34  ;;  %v7290_v60 = vpop.f32.mrb[105].mxu0  ;;  %v7299_v7 = vpop.f32.mrb[57].mxu1 }
 0x1b3   :  { %1542 = vrot.lane.b32.xlu1 %v9519_v49, %s5881_s11  ;;  %9781 = vst [vmem:[#allocation111_spill] sm:$0xff] %v7299_v7  ;;  %v2126_v49 = vsel %vm1730_vm2, %v7075_v56, %v7123_v32 }
 0x1b4   :  { %2391 = vrot.lane.b32.xlu0 %v2253_v33, %s5882_s16  ;;  %v7303_v34 = vpop.permute.xlu0 %1564 }
 0x1b5   :  { %v7305_v42 = vpop.permute.xlu1 %2021  ;;  %v7307_v16 = vpop.f32.mrb[106].mxu0 }
 0x1b6   :  { %9782 = vst [vmem:[#allocation112_spill] sm:$0xff] %v7307_v16  ;;  %v7309_v14 = vpop.f32.mrb[107].mxu0  ;;  %v7326_v16 = vadd.f32 %v6653_v5, %v6312_v23 }
 0x1b7   :  { %2055 = vrot.lane.b32.xlu1 %v1258_v39, %s5881_s11  ;;  %v2254_v39 = vmax.f32 %v9786_v26, %v2126_v49  ;;  %v2127_v49 = vsel %vm1730_vm2, %v7098_v29, %v7223_v40  ;;  %v7365_v26 = vadd.f32 %v7091_v57, %v6321_v25  ;;  %v7382_v57 = vadd.f32 %v6668_v27, %v6312_v23 }
 0x1b8   :  { %1636 = vrot.lane.b32.xlu0 %v9521_v28, %s5881_s11  ;;  %v7318_v33 = vpop.permute.xlu0 %1568  ;;  %9784 = vst [vmem:[#allocation114_spill] sm:$0xff] %v7326_v16  ;;  %v9527_v28 = vmax.f32 %v7322_v41, 0.0  ;;  %v9524_v5 = vmax.f32 %v7326_v16, 0.0  ;;  %v7401_v27 = vadd.f32 %v7105_v47, %v6321_v25  ;;  %v1041_v47 = vadd.f32 %v6782_v3, %v6316_v24 }
 0x1b9   :  { %v7328_v21 = vpop.permute.xlu1 %1506  ;;  %v7330_v32 = vpop.f32.mrb[108].mxu0  ;;  %9788 = vst [vmem:[#allocation117_spill] sm:$0xff] %v7365_v26  ;;  %9792 = vst [vmem:[#allocation120_spill] sm:$0xff] %v7382_v57 }
 0x1ba   :  { %9785 = vst [vmem:[#allocation115_spill] sm:$0xff] %v7330_v32  ;;  %v7334_v7 = vpop.f32.mrb[109].mxu0  ;;  %9796 = vst [vmem:[#allocation124_spill] sm:$0xff] %v7401_v27 }
 0x1bb   :  { %2061 = vrot.lane.b32.xlu1 %v1267_v35, %s5881_s11  ;;  %v1031_v35 = vadd.f32 %v6737_v45, %v6316_v24 }
 0x1bc   :  { %2393 = vrot.lane.b32.xlu0 %v2254_v39, %s5882_s16  ;;  %v7339_v48 = vpop.permute.xlu0 %1572  ;;  %v1264_v39 = vmax.f32 %v1016_v55, 0.0 }
 0x1bd   :  { %v7344_v56 = vpop.permute.xlu1 %2019  ;;  %v7346_v32 = vpop.f32.mrb[110].mxu0  ;;  %v1273_v45 = vmax.f32 %v1031_v35, 0.0  ;;  %v1026_v35 = vadd.f32 %v6749_v12, %v6316_v24  ;;  %v9534_v12 = vmax.f32 %v7401_v27, 0.0 }
 0x1be   :  { %9787 = vst [vmem:[#allocation116_spill] sm:$0xff] %v7346_v32  ;;  %v7348_v63 = vpop.f32.mrb[111].mxu0 }
 0x1bf   :  { %1546 = vrot.lane.b32.xlu1 %v9524_v5, %s5881_s11  ;;  %v9790_v5 = vmax.f32 %v6548_v46, 0.0 }
 0x1c0   :  { %1640 = vrot.lane.b32.xlu0 %v9527_v28, %s5881_s11  ;;  %v7361_v59 = vpop.permute.xlu0 %1576  ;;  %v9530_v28 = vmax.f32 %v7365_v26, 0.0 }
 0x1c1   :  { %v7367_v32 = vpop.permute.xlu1 %2025  ;;  %v7369_v40 = vpop.f32.mrb[112].mxu0  ;;  %v2255_v16 = vmax.f32 %v9790_v5, %v2127_v49  ;;  %v2128_v5 = vsel %vm1730_vm2, %v7117_v61, %v7181_v58  ;;  %v9532_v49 = vmax.f32 %v7382_v57, 0.0 }
 0x1c2   :  { %9789 = vst [vmem:[#allocation118_spill] sm:$0xff] %v7369_v40  ;;  %v7373_v29 = vpop.f32.mrb[113].mxu0 }
 0x1c3   :  { %2059 = vrot.lane.b32.xlu1 %v1264_v39, %s5881_s11 }
 0x1c4   :  { %2395 = vrot.lane.b32.xlu0 %v2255_v16, %s5882_s16  ;;  %v7378_v41 = vpop.permute.xlu0 %1580 }
 0x1c5   :  { %9791 = vst [vmem:[#allocation119_spill] sm:$0xff] %v7378_v41  ;;  %v7384_v55 = vpop.permute.xlu1 %1510  ;;  %v7386_v40 = vpop.f32.mrb[114].mxu0 }
 0x1c6   :  { %9793 = vst [vmem:[#allocation121_spill] sm:$0xff] %v7386_v40  ;;  %v7388_v46 = vpop.f32.mrb[115].mxu0 }
 0x1c7   :  { %9794 = vst [vmem:[#allocation122_spill] sm:$0xff] %v7388_v46  ;;  %2065 = vrot.lane.b32.xlu1 %v1273_v45, %s5881_s11  ;;  %v9798_v45 = vld [vmem:[#allocation11_spill] sm:$0xff] }
 0x1c8   :  { %1644 = vrot.lane.b32.xlu0 %v9530_v28, %s5881_s11  ;;  %v7397_v16 = vpop.permute.xlu0 %1584  ;;  %v9799_v40 = vmax.f32 %v9798_v45, 0.0  ;;  %v7419_v28 = vpop.f32.mrb[58].mxu1  ;;  %v2129_v45 = vsel %vm1730_vm2, %v7134_v62, %v7284_v11  ;;  %v7448_v11 = vadd.f32 %v6682_v6, %v6312_v23  ;;  %v9811_v6 = vld [vmem:[#allocation37_spill] sm:$0xff] }
 0x1c9   :  { %9795 = vst [vmem:[#allocation123_spill] sm:$0xff] %v7397_v16  ;;  %v7406_v39 = vpop.permute.xlu1 %2023  ;;  %v7408_v58 = vpop.f32.mrb[116].mxu0  ;;  %9801 = vst [vmem:[#allocation126_spill] sm:$0xff] %v7419_v28 }
 0x1ca   :  { %9797 = vst [vmem:[#allocation125_spill] sm:$0xff] %v7408_v58  ;;  %v2256_v46 = vmax.f32 %v9799_v40, %v2128_v5  ;;  %v7412_v26 = vpop.f32.mrb[117].mxu0  ;;  %v7425_v58 = vpop.f32.mrb[59].mxu1  ;;  %v1270_v40 = vmax.f32 %v1026_v35, 0.0  ;;  %v7442_v35 = vadd.f32 %v7129_v19, %v6321_v25  ;;  %9808 = vst [vmem:[#allocation133_spill] sm:$0xff] %v7448_v11  ;;  %v9538_v28 = vmax.f32 %v7448_v11, 0.0 }
 0x1cb   :  { %9800 = vst [vmem:[#allocation11_spill] sm:$0xff] %v7412_v26  ;;  %1550 = vrot.lane.b32.xlu1 %v9532_v49, %s5881_s11  ;;  %9803 = vst [vmem:[#allocation128_spill] sm:$0xff] %v7425_v58  ;;  %v1279_v49 = vmax.f32 %v1041_v47, 0.0 }
 0x1cc   :  { %2397 = vrot.lane.b32.xlu0 %v2256_v46, %s5882_s16  ;;  %v7423_v16 = vpop.permute.xlu0 %1588  ;;  %9806 = vst [vmem:[#allocation131_spill] sm:$0xff] %v7442_v35  ;;  %v9539_v19 = vmax.f32 %v7442_v35, 0.0 }
 0x1cd   :  { %9802 = vst [vmem:[#allocation127_spill] sm:$0xff] %v7423_v16  ;;  %v7427_v5 = vpop.permute.xlu1 %2029  ;;  %v7433_v3 = vpop.f32.mrb[118].mxu0 }
 0x1ce   :  { %9804 = vst [vmem:[#allocation129_spill] sm:$0xff] %v7433_v3  ;;  %v7444_v57 = vpop.f32.mrb[119].mxu0  ;;  %v9809_v3 = vld [vmem:[#allocation12_spill] sm:$0xff] }
 0x1cf   :  { %2063 = vrot.lane.b32.xlu1 %v1270_v40, %s5881_s11  ;;  %9807 = vst [vmem:[#allocation132_spill] sm:$0xff] %v7444_v57  ;;  %v1731_v40 = vsel %vm1730_vm2, %v6847_v15, %v6868_v53  ;;  %v1036_v57 = vadd.f32 %v9811_v6, %v6316_v24  ;;  %v2130_v53 = vsel %vm1730_vm2, %v7157_v0, %v7246_v38  ;;  %v9818_v6 = vld [vmem:[#allocation14_spill] sm:$0xff] }
 0x1d0   :  { %1648 = vrot.lane.b32.xlu0 %v9534_v12, %s5881_s11  ;;  %v7438_v46 = vpop.permute.xlu0 %1592  ;;  %v9810_v12 = vmax.f32 %v9809_v3, 0.0 }
 0x1d1   :  { %9805 = vst [vmem:[#allocation130_spill] sm:$0xff] %v7438_v46  ;;  %v7450_v47 = vpop.permute.xlu1 %1514  ;;  %v9812_v46 = vld [vmem:[#allocation6_spill] sm:$0xff]  ;;  %v1276_v38 = vmax.f32 %v1036_v57, 0.0 }
 0x1d2   :  { %v2257_v27 = vmax.f32 %v9810_v12, %v2129_v45  ;;  %v9813_v26 = vmax.f32 %v9812_v46, 0.0  ;;  %v7475_v45 = vpop.f32.mrb[120].mxu0 }
 0x1d3   :  { %2069 = vrot.lane.b32.xlu1 %v1279_v49, %s5881_s11  ;;  %v9814_v49 = vld [vmem:[#allocation43_spill] sm:$0xff]  ;;  %9815 = vst [vmem:[#allocation12_spill] sm:$0xff] %v7475_v45  ;;  %v7484_v3 = vpop.f32.mrb[121].mxu0 }
 0x1d4   :  { %2399 = vrot.lane.b32.xlu0 %v2257_v27, %s5882_s16  ;;  %v1859_v16 = vmax.f32 %v9813_v26, %v1731_v40  ;;  %v1051_v12 = vadd.f32 %v9814_v49, %v6316_v24  ;;  %v7482_v26 = vadd.f32 %v7146_v31, %v6321_v25  ;;  %v7497_v31 = vpop.f32.mrb[60].mxu1 }
 0x1d5   :  { %v7463_v58 = vpop.permute.xlu1 %2027  ;;  %9820 = vst [vmem:[#allocation6_spill] sm:$0xff] %v7497_v31  ;;  %v7501_v45 = vpop.f32.mrb[61].mxu1 }
 0x1d6   :  { %v2372_v15 = vpop.permute.xlu0 %2371  ;;  %9816 = vst [vmem:[#allocation37_spill] sm:$0xff] %v7482_v26  ;;  %v9542_v57 = vmax.f32 %v7482_v26, 0.0 }
 0x1d7   :  { %1554 = vrot.lane.b32.xlu1 %v9538_v28, %s5881_s11  ;;  %v2563_v27 = vmax.f32 %v1859_v16, %v2372_v15  ;;  %v9817_v16 = vld [vmem:[#allocation49_spill] sm:$0xff]  ;;  %v9819_v15 = vmax.f32 %v9818_v6, 0.0 }
 0x1d8   :  { %1652 = vrot.lane.b32.xlu0 %v9539_v19, %s5881_s11  ;;  %v1732_v40 = vsel %vm1730_vm2, %v9817_v16, %v6910_v44  ;;  %v1285_v19 = vmax.f32 %v1051_v12, 0.0 }
 0x1d9   :  { %v7486_v46 = vpop.permute.xlu1 %2033  ;;  %5367 = vmatprep.mubr.msk.f32.mxu1 %vm2637_vm3, %v2563_v27  ;;  %v2258_v49 = vmax.f32 %v9819_v15, %v2130_v53  ;;  %v9821_v27 = vld [vmem:[#allocation22_spill] sm:$0xff]  ;;  %v9823_v53 = vld [vmem:[#allocation7_spill] sm:$0xff] }
 0x1da   :  { %v7494_v28 = vpop.permute.xlu0 %1596  ;;  %v7505_v35 = vadd.f32 %v9821_v27, %v6312_v23  ;;  %v9824_v16 = vmax.f32 %v9823_v53, 0.0  ;;  %v7522_v27 = vadd.f32 %v7170_v8, %v6321_v25 }
 0x1db   :  { %2067 = vrot.lane.b32.xlu1 %v1276_v38, %s5881_s11  ;;  %v2131_v38 = vsel %vm1730_vm2, %v7179_v9, %v7344_v56 }
 0x1dc   :  { %2401 = vrot.lane.b32.xlu0 %v2258_v49, %s5882_s16  ;;  %9822 = vst [vmem:[#allocation43_spill] sm:$0xff] %v7505_v35  ;;  %v1860_v6 = vmax.f32 %v9824_v16, %v1732_v40  ;;  %v7515_v49 = vpop.f32.mrb[122].mxu0  ;;  %9826 = vst [vmem:[#allocation14_spill] sm:$0xff] %v7522_v27  ;;  %v9544_v40 = vmax.f32 %v7505_v35, 0.0  ;;  %v9828_v16 = vld [vmem:[#allocation46_spill] sm:$0xff]  ;;  %v9545_v26 = vmax.f32 %v7522_v27, 0.0 }
 0x1dd   :  { %v7507_v44 = vpop.permute.xlu1 %1518  ;;  %9825 = vst [vmem:[#allocation49_spill] sm:$0xff] %v7515_v49  ;;  %v7524_v53 = vpop.f32.mrb[123].mxu0  ;;  %v1046_v56 = vadd.f32 %v9828_v16, %v6316_v24  ;;  %v9831_v49 = vld [vmem:[#allocation51_spill] sm:$0xff]  ;;  %v9844_v27 = vld [vmem:[#allocation9_spill] sm:$0xff] }
 0x1de   :  { %v2374_v12 = vpop.permute.xlu0 %2373  ;;  %9827 = vst [vmem:[#allocation22_spill] sm:$0xff] %v7524_v53  ;;  %v1061_v16 = vadd.f32 %v9831_v49, %v6316_v24  ;;  %v7554_v49 = vpop.f32.mrb[124].mxu0  ;;  %v9845_v35 = vmax.f32 %v9844_v27, 0.0 }
 0x1df   :  { %2073 = vrot.lane.b32.xlu1 %v1285_v19, %s5881_s11  ;;  %v2564_v15 = vmax.f32 %v1860_v6, %v2374_v12  ;;  %v1733_v19 = vsel %vm1730_vm2, %v6966_v2, %v6904_v43  ;;  %v9829_v6 = vld [vmem:[#allocation15_spill] sm:$0xff]  ;;  %v1282_v43 = vmax.f32 %v1046_v56, 0.0  ;;  %9834 = vst [vmem:[#allocation7_spill] sm:$0xff] %v7554_v49  ;;  %v9837_v56 = vld [vmem:[#allocation24_spill] sm:$0xff] }
 0x1e0   :  { %1656 = vrot.lane.b32.xlu0 %v9542_v57, %s5881_s11  ;;  %v9830_v12 = vmax.f32 %v9829_v6, 0.0  ;;  %v2132_v6 = vsel %vm1730_vm2, %v7193_v18, %v7305_v42 }
 0x1e1   :  { %v7529_v11 = vpop.permute.xlu1 %2031  ;;  %5368 = vmatmul.mubr.msk.f32.vlgmr.msra.gmra.mrb[64].mxu1 %vm2637_vm3, %v2564_v15  ;;  %v9832_v15 = vld [vmem:[#allocation8_spill] sm:$0xff] }
 0x1e2   :  { %v2259_v57 = vmax.f32 %v9830_v12, %v2131_v38  ;;  %v7537_v8 = vpop.permute.xlu0 %1600  ;;  %v9833_v31 = vmax.f32 %v9832_v15, 0.0  ;;  %v1291_v12 = vmax.f32 %v1061_v16, 0.0  ;;  %v9840_v15 = vld [vmem:[#allocation16_spill] sm:$0xff] }
 0x1e3   :  { %1558 = vrot.lane.b32.xlu1 %v9544_v40, %s5881_s11 }
 0x1e4   :  { %2403 = vrot.lane.b32.xlu0 %v2259_v57, %s5882_s16  ;;  %v1861_v53 = vmax.f32 %v9833_v31, %v1733_v19  ;;  %v7561_v31 = vadd.f32 %v7185_v1, %v6321_v25  ;;  %v7563_v57 = vpop.f32.mrb[125].mxu0  ;;  %v7567_v19 = vadd.f32 %v9837_v56, %v6312_v23  ;;  %v7580_v1 = vpop.f32.mrb[62].mxu1  ;;  %v9847_v56 = vld [vmem:[#allocation60_spill] sm:$0xff] }
 0x1e5   :  { %v7548_v2 = vpop.permute.xlu1 %2037  ;;  %9836 = vst [vmem:[#allocation15_spill] sm:$0xff] %v7563_v57  ;;  %9842 = vst [vmem:[#allocation8_spill] sm:$0xff] %v7580_v1  ;;  %v7584_v49 = vpop.f32.mrb[63].mxu1  ;;  %v1071_v1 = vadd.f32 %v9847_v56, %v6316_v24 }
 0x1e6   :  { %v2376_v38 = vpop.permute.xlu0 %2375  ;;  %9835 = vst [vmem:[#allocation46_spill] sm:$0xff] %v7561_v31  ;;  %9838 = vst [vmem:[#allocation51_spill] sm:$0xff] %v7567_v19  ;;  %v7601_v27 = vpop.f32.mrb[126].mxu0 }
 0x1e7   :  { %2071 = vrot.lane.b32.xlu1 %v1282_v43, %s5881_s11  ;;  %v2565_v40 = vmax.f32 %v1861_v53, %v2376_v38  ;;  %v9839_v53 = vld [vmem:[#allocation55_spill] sm:$0xff]  ;;  %v9841_v43 = vmax.f32 %v9840_v15, 0.0  ;;  %9843 = vst [vmem:[#allocation24_spill] sm:$0xff] %v7584_v49 }
 0x1e8   :  { %1660 = vrot.lane.b32.xlu0 %v9545_v26, %s5881_s11  ;;  %v1734_v16 = vsel %vm1730_vm2, %v7023_v52, %v9839_v53  ;;  %v9846_v53 = vld [vmem:[#allocation54_spill] sm:$0xff]  ;;  %9848 = vst [vmem:[#allocation55_spill] sm:$0xff] %v7601_v27 }
 0x1e9   :  { %v7569_v42 = vpop.permute.xlu1 %1522  ;;  %5370 = vmatprep.mubr.msk.f32.mxu1 %vm2637_vm3, %v2565_v40  ;;  %v2260_v38 = vmax.f32 %v9841_v43, %v2132_v6  ;;  %v9548_v40 = vmax.f32 %v7567_v19, 0.0  ;;  %v1862_v52 = vmax.f32 %v9845_v35, %v1734_v16  ;;  %v1056_v6 = vadd.f32 %v9846_v53, %v6316_v24  ;;  %v7610_v53 = vpop.f32.mrb[127].mxu0 }
 0x1ea   :  { %v7577_v26 = vpop.permute.xlu0 %1604  ;;  %v9849_v35 = vmax.f32 %v7561_v31, 0.0  ;;  %v7608_v16 = vadd.f32 %v7211_v51, %v6321_v25  ;;  %9851 = vst [vmem:[#allocation9_spill] sm:$0xff] %v7610_v53 }
 0x1eb   :  { %2077 = vrot.lane.b32.xlu1 %v1291_v12, %s5881_s11  ;;  %v2133_v12 = vsel %vm1730_vm2, %v7218_v17, %v7406_v39  ;;  %v1288_v39 = vmax.f32 %v1056_v6, 0.0  ;;  %v9855_v6 = vld [vmem:[#allocation26_spill] sm:$0xff] }
 0x1ec   :  { %2405 = vrot.lane.b32.xlu0 %v2260_v38, %s5882_s16  ;;  %9850 = vst [vmem:[#allocation16_spill] sm:$0xff] %v7608_v16  ;;  %v9551_v51 = vmax.f32 %v7608_v16, 0.0  ;;  %v7627_v19 = vadd.f32 %v9855_v6, %v6312_v23 }
 0x1ed   :  { %v7591_v15 = vpop.permute.xlu1 %2035 }
 0x1ee   :  { %v2378_v43 = vpop.permute.xlu0 %2377  ;;  %9856 = vst [vmem:[#allocation54_spill] sm:$0xff] %v7627_v19 }
 0x1ef   :  { %1562 = vrot.lane.b32.xlu1 %v9548_v40, %s5881_s11  ;;  %v2566_v38 = vmax.f32 %v1862_v52, %v2378_v43  ;;  %v9852_v52 = vld [vmem:[#allocation58_spill] sm:$0xff] }
 0x1f0   :  { %1664 = vrot.lane.b32.xlu0 %v9849_v35, %s5881_s11  ;;  %v1735_v56 = vsel %vm1730_vm2, %v7085_v50, %v9852_v52  ;;  %v9853_v43 = vld [vmem:[#allocation18_spill] sm:$0xff]  ;;  %v1297_v35 = vmax.f32 %v1071_v1, 0.0  ;;  %v2134_v1 = vsel %vm1730_vm2, %v7240_v13, %v7367_v32  ;;  %v9861_v32 = vld [vmem:[#allocation61_spill] sm:$0xff] }
 0x1f1   :  { %v7612_v49 = vpop.permute.xlu1 %2041  ;;  %5371 = vmatmul.mubr.msk.f32.gmra.mrb[66].mxu1 %vm2637_vm3, %v2566_v38  ;;  %v9854_v40 = vmax.f32 %v9853_v43, 0.0  ;;  %v9857_v38 = vld [vmem:[#allocation10_spill] sm:$0xff]  ;;  %v9862_v43 = vld [vmem:[#allocation19_spill] sm:$0xff] }
 0x1f2   :  { %v7620_v31 = vpop.permute.xlu0 %1608  ;;  %v9858_v53 = vmax.f32 %v9857_v38, 0.0 }
 0x1f3   :  { %v2261_v27 = vmax.f32 %v9854_v40, %v2133_v12  ;;  %2075 = vrot.lane.b32.xlu1 %v1288_v39, %s5881_s11  ;;  %v7642_v12 = vadd.f32 %v7227_v54, %v6321_v25  ;;  %v9864_v54 = vld [vmem:[#allocation71_spill] sm:$0xff] }
 0x1f4   :  { %v1863_v57 = vmax.f32 %v9858_v53, %v1735_v56  ;;  %v9860_v53 = vld [vmem:[#allocation65_spill] sm:$0xff] }
 0x1f5   :  { %2407 = vrot.lane.b32.xlu0 %v2261_v27, %s5882_s16  ;;  %v7631_v50 = vpop.permute.xlu1 %1526  ;;  %9859 = vst [vmem:[#allocation60_spill] sm:$0xff] %v7642_v12  ;;  %v9553_v27 = vmax.f32 %v7627_v19, 0.0  ;;  %v1066_v39 = vadd.f32 %v9860_v53, %v6316_v24  ;;  %v9554_v53 = vmax.f32 %v7642_v12, 0.0  ;;  %v9875_v12 = vld [vmem:[#allocation75_spill] sm:$0xff] }
 0x1f6   :  { %v2380_v52 = vpop.permute.xlu0 %2379  ;;  %v1076_v19 = vadd.f32 %v9875_v12, %v6316_v24  ;;  %v7716_v12 = vadd.f32 %v7267_v4, %v6321_v25 }
 0x1f7   :  { %2081 = vrot.lane.b32.xlu1 %v1297_v35, %s5881_s11  ;;  %v2567_v40 = vmax.f32 %v1863_v57, %v2380_v52  ;;  %v1736_v57 = vsel %vm1730_vm2, %v7142_v20, %v9861_v32  ;;  %v9863_v35 = vmax.f32 %v9862_v43, 0.0  ;;  %v1081_v52 = vadd.f32 %v9864_v54, %v6316_v24  ;;  %v9871_v54 = vld [vmem:[#allocation20_spill] sm:$0xff] }
 0x1f8   :  { %v1294_v20 = vmax.f32 %v1066_v39, 0.0  ;;  %v2135_v43 = vsel %vm1730_vm2, %v7257_v22, %v7463_v58  ;;  %v9870_v58 = vld [vmem:[#allocation66_spill] sm:$0xff]  ;;  %9877 = vst [vmem:[#allocation26_spill] sm:$0xff] %v7716_v12  ;;  %v9561_v4 = vmax.f32 %v7716_v12, 0.0 }
 0x1f9   :  { %1668 = vrot.lane.b32.xlu0 %v9551_v51, %s5881_s11  ;;  %v7647_v56 = vpop.permute.xlu1 %2039  ;;  %5373 = vmatprep.mubr.msk.f32.mxu1 %vm2637_vm3, %v2567_v40  ;;  %v2262_v6 = vmax.f32 %v9863_v35, %v2134_v1  ;;  %v9865_v40 = vld [vmem:[#allocation13_spill] sm:$0xff]  ;;  %v1303_v35 = vmax.f32 %v1081_v52, 0.0  ;;  %v9872_v52 = vmax.f32 %v9871_v54, 0.0 }
 0x1fa   :  { %v7655_v38 = vpop.permute.xlu0 %1612  ;;  %v9866_v51 = vmax.f32 %v9865_v40, 0.0  ;;  %v9876_v54 = vld [vmem:[#allocation81_spill] sm:$0xff] }
 0x1fb   :  { %1566 = vrot.lane.b32.xlu1 %v9553_v27, %s5881_s11  ;;  %v2263_v40 = vmax.f32 %v9872_v52, %v2135_v43  ;;  %v2136_v43 = vsel %vm1730_vm2, %v7275_v37, %v7427_v5  ;;  %v1091_v52 = vadd.f32 %v9876_v54, %v6316_v24  ;;  %v9878_v5 = vld [vmem:[#allocation68_spill] sm:$0xff] }
 0x1fc   :  { %v1864_v16 = vmax.f32 %v9866_v51, %v1736_v57  ;;  %v9868_v51 = vld [vmem:[#allocation29_spill] sm:$0xff] }
 0x1fd   :  { %2409 = vrot.lane.b32.xlu0 %v2262_v6, %s5882_s16  ;;  %v7666_v32 = vpop.permute.xlu1 %2045  ;;  %v7677_v6 = vadd.f32 %v7252_v10, %v6321_v25  ;;  %v7681_v39 = vadd.f32 %v9868_v51, %v6312_v23  ;;  %v9873_v51 = vld [vmem:[#allocation17_spill] sm:$0xff] }
 0x1fe   :  { %v2382_v1 = vpop.permute.xlu0 %2381 }
 0x1ff   :  { %2079 = vrot.lane.b32.xlu1 %v1294_v20, %s5881_s11  ;;  %v2568_v27 = vmax.f32 %v1864_v16, %v2382_v1  ;;  %9867 = vst [vmem:[#allocation58_spill] sm:$0xff] %v7677_v6  ;;  %9869 = vst [vmem:[#allocation18_spill] sm:$0xff] %v7681_v39  ;;  %v1737_v16 = vsel %vm1730_vm2, %v7205_v36, %v9870_v58  ;;  %v9558_v10 = vmax.f32 %v7677_v6, 0.0  ;;  %v9557_v1 = vmax.f32 %v7681_v39, 0.0 }
 0x201   :  { %1672 = vrot.lane.b32.xlu0 %v9554_v53, %s5881_s11  ;;  %v7683_v57 = vpop.permute.xlu1 %1530  ;;  %5374 = vmatmul.mubr.msk.f32.gmra.mrb[68].mxu1 %vm2637_vm3, %v2568_v27  ;;  %v9874_v53 = vmax.f32 %v9873_v51, 0.0  ;;  %v9879_v51 = vld [vmem:[#allocation23_spill] sm:$0xff] }
 0x202   :  { %v7691_v20 = vpop.permute.xlu0 %1616 }
 0x203   :  { %2085 = vrot.lane.b32.xlu1 %v1303_v35, %s5881_s11  ;;  %v1865_v27 = vmax.f32 %v9874_v53, %v1737_v16  ;;  %v1300_v53 = vmax.f32 %v1076_v19, 0.0  ;;  %v9881_v19 = vld [vmem:[#allocation31_spill] sm:$0xff] }
 0x205   :  { %2411 = vrot.lane.b32.xlu0 %v2263_v40, %s5882_s16  ;;  %v7701_v36 = vpop.permute.xlu1 %2043  ;;  %v1738_v40 = vsel %vm1730_vm2, %v7263_v30, %v9878_v5 }
 0x206   :  { %v2384_v58 = vpop.permute.xlu0 %2383 }
 0x207   :  { %1570 = vrot.lane.b32.xlu1 %v9557_v1, %s5881_s11  ;;  %v2569_v35 = vmax.f32 %v1865_v27, %v2384_v58  ;;  %v9880_v27 = vmax.f32 %v9879_v51, 0.0  ;;  %v1309_v1 = vmax.f32 %v1091_v52, 0.0 }
 0x209   :  { %1676 = vrot.lane.b32.xlu0 %v9558_v10, %s5881_s11  ;;  %v7718_v16 = vpop.permute.xlu1 %2049  ;;  %5376 = vmatprep.mubr.msk.f32.mxu1 %vm2637_vm3, %v2569_v35  ;;  %v2264_v58 = vmax.f32 %v9880_v27, %v2136_v43  ;;  %v7733_v10 = vadd.f32 %v9881_v19, %v6312_v23  ;;  %v9883_v35 = vld [vmem:[#allocation21_spill] sm:$0xff]  ;;  %v2137_v43 = vsel %vm1730_vm2, %v7303_v34, %v7529_v11  ;;  %v9887_v11 = vld [vmem:[#allocation72_spill] sm:$0xff] }
 0x20a   :  { %v7726_v54 = vpop.permute.xlu0 %1620  ;;  %v9884_v6 = vmax.f32 %v9883_v35, 0.0 }
 0x20b   :  { %2083 = vrot.lane.b32.xlu1 %v1300_v53, %s5881_s11  ;;  %9882 = vst [vmem:[#allocation10_spill] sm:$0xff] %v7733_v10  ;;  %v7748_v53 = vadd.f32 %v7290_v60, %v6321_v25  ;;  %v9890_v60 = vld [vmem:[#allocation91_spill] sm:$0xff] }
 0x20c   :  { %v1866_v39 = vmax.f32 %v9884_v6, %v1738_v40  ;;  %v9563_v6 = vmax.f32 %v7733_v10, 0.0  ;;  %v9886_v40 = vld [vmem:[#allocation86_spill] sm:$0xff] }
 0x20d   :  { %2413 = vrot.lane.b32.xlu0 %v2264_v58, %s5882_s16  ;;  %v7737_v30 = vpop.permute.xlu1 %1534  ;;  %9885 = vst [vmem:[#allocation65_spill] sm:$0xff] %v7748_v53  ;;  %v1086_v51 = vadd.f32 %v9886_v40, %v6316_v24  ;;  %v9564_v40 = vmax.f32 %v7748_v53, 0.0  ;;  %v9901_v53 = vld [vmem:[#allocation94_spill] sm:$0xff] }
 0x20e   :  { %v2386_v5 = vpop.permute.xlu0 %2385  ;;  %v1096_v10 = vadd.f32 %v9901_v53, %v6316_v24  ;;  %v7822_v53 = vadd.f32 %v7334_v7, %v6321_v25 }
 0x20f   :  { %2089 = vrot.lane.b32.xlu1 %v1309_v1, %s5881_s11  ;;  %v2570_v52 = vmax.f32 %v1866_v39, %v2386_v5  ;;  %v1739_v39 = vsel %vm1730_vm2, %v7328_v21, %v9887_v11  ;;  %v9888_v1 = vld [vmem:[#allocation25_spill] sm:$0xff]  ;;  %v1101_v5 = vadd.f32 %v9890_v60, %v6316_v24  ;;  %v1306_v21 = vmax.f32 %v1086_v51, 0.0  ;;  %v9897_v60 = vld [vmem:[#allocation27_spill] sm:$0xff] }
 0x210   :  { %v9889_v58 = vmax.f32 %v9888_v1, 0.0  ;;  %v2138_v1 = vsel %vm1730_vm2, %v7318_v33, %v7486_v46  ;;  %v9896_v46 = vld [vmem:[#allocation76_spill] sm:$0xff]  ;;  %9903 = vst [vmem:[#allocation71_spill] sm:$0xff] %v7822_v53  ;;  %v9571_v7 = vmax.f32 %v7822_v53, 0.0 }
 0x211   :  { %1680 = vrot.lane.b32.xlu0 %v9561_v4, %s5881_s11  ;;  %v7753_v27 = vpop.permute.xlu1 %2047  ;;  %5377 = vmatmul.mubr.msk.f32.gmra.mrb[70].mxu1 %vm2637_vm3, %v2570_v52  ;;  %v9891_v52 = vld [vmem:[#allocation28_spill] sm:$0xff] }
 0x212   :  { %v2265_v19 = vmax.f32 %v9889_v58, %v2137_v43  ;;  %v7761_v35 = vpop.permute.xlu0 %1624  ;;  %v9892_v4 = vmax.f32 %v9891_v52, 0.0  ;;  %v1315_v58 = vmax.f32 %v1101_v5, 0.0  ;;  %v9898_v5 = vmax.f32 %v9897_v60, 0.0  ;;  %v9902_v60 = vld [vmem:[#allocation99_spill] sm:$0xff] }
 0x213   :  { %1574 = vrot.lane.b32.xlu1 %v9563_v6, %s5881_s11 }
 0x214   :  { %v1867_v12 = vmax.f32 %v9892_v4, %v1739_v39  ;;  %v9894_v4 = vld [vmem:[#allocation33_spill] sm:$0xff]  ;;  %v2266_v52 = vmax.f32 %v9898_v5, %v2138_v1  ;;  %v2139_v1 = vsel %vm1730_vm2, %v7339_v48, %v7591_v15  ;;  %v1111_v5 = vadd.f32 %v9902_v60, %v6316_v24  ;;  %v9904_v15 = vld [vmem:[#allocation79_spill] sm:$0xff] }
 0x215   :  { %2415 = vrot.lane.b32.xlu0 %v2265_v19, %s5882_s16  ;;  %v7772_v11 = vpop.permute.xlu1 %2053  ;;  %v7783_v19 = vadd.f32 %v7309_v14, %v6321_v25  ;;  %v7787_v51 = vadd.f32 %v9894_v4, %v6312_v23  ;;  %v9899_v4 = vld [vmem:[#allocation35_spill] sm:$0xff] }
 0x216   :  { %v2388_v43 = vpop.permute.xlu0 %2387 }
 0x217   :  { %2087 = vrot.lane.b32.xlu1 %v1306_v21, %s5881_s11  ;;  %v2571_v6 = vmax.f32 %v1867_v12, %v2388_v43  ;;  %9893 = vst [vmem:[#allocation61_spill] sm:$0xff] %v7783_v19  ;;  %9895 = vst [vmem:[#allocation19_spill] sm:$0xff] %v7787_v51  ;;  %v1740_v12 = vsel %vm1730_vm2, %v7384_v55, %v9896_v46  ;;  %v9568_v14 = vmax.f32 %v7783_v19, 0.0  ;;  %v9567_v43 = vmax.f32 %v7787_v51, 0.0 }
 0x219   :  { %1684 = vrot.lane.b32.xlu0 %v9564_v40, %s5881_s11  ;;  %v7789_v39 = vpop.permute.xlu1 %1538  ;;  %5379 = vmatprep.mubr.msk.f32.mxu1 %vm2637_vm3, %v2571_v6  ;;  %v9900_v40 = vmax.f32 %v9899_v4, 0.0  ;;  %v9905_v4 = vld [vmem:[#allocation30_spill] sm:$0xff] }
 0x21a   :  { %v7797_v21 = vpop.permute.xlu0 %1628 }
 0x21b   :  { %2093 = vrot.lane.b32.xlu1 %v1315_v58, %s5881_s11  ;;  %v1868_v6 = vmax.f32 %v9900_v40, %v1740_v12  ;;  %v1312_v40 = vmax.f32 %v1096_v10, 0.0  ;;  %v9907_v10 = vld [vmem:[#allocation36_spill] sm:$0xff] }
 0x21d   :  { %2417 = vrot.lane.b32.xlu0 %v2266_v52, %s5882_s16  ;;  %v7807_v55 = vpop.permute.xlu1 %2051  ;;  %v1741_v52 = vsel %vm1730_vm2, %v7450_v47, %v9904_v15 }
 0x21e   :  { %v2390_v46 = vpop.permute.xlu0 %2389 }
 0x21f   :  { %1578 = vrot.lane.b32.xlu1 %v9567_v43, %s5881_s11  ;;  %v2572_v58 = vmax.f32 %v1868_v6, %v2390_v46  ;;  %v9906_v6 = vmax.f32 %v9905_v4, 0.0  ;;  %v1321_v43 = vmax.f32 %v1111_v5, 0.0 }
 0x221   :  { %1688 = vrot.lane.b32.xlu0 %v9568_v14, %s5881_s11  ;;  %v7824_v12 = vpop.permute.xlu1 %2057  ;;  %5380 = vmatmul.mubr.msk.f32.gmra.mrb[72].mxu1 %vm2637_vm3, %v2572_v58  ;;  %v2267_v46 = vmax.f32 %v9906_v6, %v2139_v1  ;;  %v7839_v14 = vadd.f32 %v9907_v10, %v6312_v23  ;;  %v9909_v58 = vld [vmem:[#allocation44_spill] sm:$0xff]  ;;  %v2140_v1 = vsel %vm1730_vm2, %v7361_v59, %v7548_v2  ;;  %v9913_v2 = vld [vmem:[#allocation82_spill] sm:$0xff] }
 0x222   :  { %v7832_v60 = vpop.permute.xlu0 %1632  ;;  %v9910_v19 = vmax.f32 %v9909_v58, 0.0 }
 0x223   :  { %2091 = vrot.lane.b32.xlu1 %v1312_v40, %s5881_s11  ;;  %9908 = vst [vmem:[#allocation13_spill] sm:$0xff] %v7839_v14  ;;  %v7854_v40 = vadd.f32 %v7348_v63, %v6321_v25 }
 0x224   :  { %v1869_v51 = vmax.f32 %v9910_v19, %v1741_v52  ;;  %v9572_v19 = vmax.f32 %v7839_v14, 0.0  ;;  %v9912_v52 = vld [vmem:[#allocation102_spill] sm:$0xff] }
 0x225   :  { %2419 = vrot.lane.b32.xlu0 %v2267_v46, %s5882_s16  ;;  %v7843_v47 = vpop.permute.xlu1 %1542  ;;  %9911 = vst [vmem:[#allocation29_spill] sm:$0xff] %v7854_v40  ;;  %v1106_v4 = vadd.f32 %v9912_v52, %v6316_v24  ;;  %v9918_v52 = vld [vmem:[#allocation52_spill] sm:$0xff] }
 0x226   :  { %v2392_v15 = vpop.permute.xlu0 %2391 }
 0x227   :  { %2097 = vrot.lane.b32.xlu1 %v1321_v43, %s5881_s11  ;;  %v2573_v5 = vmax.f32 %v1869_v51, %v2392_v15  ;;  %v1742_v51 = vsel %vm1730_vm2, %v7507_v44, %v9913_v2  ;;  %v9914_v43 = vld [vmem:[#allocation32_spill] sm:$0xff]  ;;  %v9916_v15 = vld [vmem:[#allocation39_spill] sm:$0xff]  ;;  %v1318_v2 = vmax.f32 %v1106_v4, 0.0 }
 0x228   :  { %v9915_v46 = vmax.f32 %v9914_v43, 0.0 }
 0x229   :  { %1692 = vrot.lane.b32.xlu0 %v9571_v7, %s5881_s11  ;;  %v7859_v6 = vpop.permute.xlu1 %2055  ;;  %5382 = vmatprep.mubr.msk.f32.mxu1 %vm2637_vm3, %v2573_v5  ;;  %v7876_v5 = vadd.f32 %v9916_v15, %v6312_v23  ;;  %v9919_v7 = vmax.f32 %v9918_v52, 0.0  ;;  %v9921_v15 = vmax.f32 %v7854_v40, 0.0  ;;  %v9927_v40 = vld [vmem:[#allocation63_spill] sm:$0xff] }
 0x22a   :  { %v2268_v10 = vmax.f32 %v9915_v46, %v2140_v1  ;;  %v7867_v58 = vpop.permute.xlu0 %1636  ;;  %v2141_v46 = vsel %vm1730_vm2, %v7378_v41, %v7647_v56  ;;  %v9924_v56 = vld [vmem:[#allocation87_spill] sm:$0xff] }
 0x22b   :  { %1582 = vrot.lane.b32.xlu1 %v9572_v19, %s5881_s11  ;;  %9917 = vst [vmem:[#allocation66_spill] sm:$0xff] %v7876_v5  ;;  %v1870_v44 = vmax.f32 %v9919_v7, %v1742_v51  ;;  %v9922_v7 = vld [vmem:[#allocation118_spill] sm:$0xff]  ;;  %v9578_v51 = vmax.f32 %v7876_v5, 0.0  ;;  %v9929_v41 = vld [vmem:[#allocation111_spill] sm:$0xff] }
 0x22c   :  { %v7893_v4 = vadd.f32 %v9922_v7, %v6312_v23 }
 0x22d   :  { %2421 = vrot.lane.b32.xlu0 %v2268_v10, %s5882_s16  ;;  %v7880_v43 = vpop.permute.xlu1 %2061  ;;  %v9920_v10 = vld [vmem:[#allocation110_spill] sm:$0xff] }
 0x22e   :  { %v2394_v1 = vpop.permute.xlu0 %2393  ;;  %v1121_v63 = vadd.f32 %v9920_v10, %v6316_v24  ;;  %9923 = vst [vmem:[#allocation20_spill] sm:$0xff] %v7893_v4  ;;  %v9577_v7 = vmax.f32 %v7893_v4, 0.0 }
 0x22f   :  { %2095 = vrot.lane.b32.xlu1 %v1318_v2, %s5881_s11  ;;  %v2574_v19 = vmax.f32 %v1870_v44, %v2394_v1  ;;  %v1743_v44 = vsel %vm1730_vm2, %v7569_v42, %v9924_v56  ;;  %v9925_v2 = vld [vmem:[#allocation34_spill] sm:$0xff]  ;;  %v1116_v42 = vadd.f32 %v9929_v41, %v6316_v24 }
 0x230   :  { %v9926_v1 = vmax.f32 %v9925_v2, 0.0 }
 0x231   :  { %1696 = vrot.lane.b32.xlu0 %v9921_v15, %s5881_s11  ;;  %v7896_v52 = vpop.permute.xlu1 %1546  ;;  %5383 = vmatmul.mubr.msk.f32.gmra.mrb[74].mxu1 %vm2637_vm3, %v2574_v19  ;;  %v1327_v15 = vmax.f32 %v1121_v63, 0.0  ;;  %v9928_v19 = vmax.f32 %v9927_v40, 0.0  ;;  %v9931_v40 = vld [vmem:[#allocation41_spill] sm:$0xff] }
 0x232   :  { %v2269_v10 = vmax.f32 %v9926_v1, %v2141_v46  ;;  %v7904_v53 = vpop.permute.xlu0 %1640  ;;  %v7919_v46 = vadd.f32 %v7373_v29, %v6321_v25  ;;  %v1324_v1 = vmax.f32 %v1116_v42, 0.0  ;;  %v1744_v29 = vsel %vm1730_vm2, %v7631_v50, %v7117_v61  ;;  %v9934_v42 = vld [vmem:[#allocation122_spill] sm:$0xff]  ;;  %v9936_v50 = vld [vmem:[#allocation45_spill] sm:$0xff] }
 0x233   :  { %1586 = vrot.lane.b32.xlu1 %v9578_v51, %s5881_s11  ;;  %v1871_v14 = vmax.f32 %v9928_v19, %v1743_v44  ;;  %v7927_v44 = vadd.f32 %v9931_v40, %v6312_v23  ;;  %v9938_v40 = vld [vmem:[#allocation73_spill] sm:$0xff] }
 0x234   :  { %9930 = vst [vmem:[#allocation17_spill] sm:$0xff] %v7919_v46 }
 0x235   :  { %2423 = vrot.lane.b32.xlu0 %v2269_v10, %s5882_s16  ;;  %v7915_v56 = vpop.permute.xlu1 %2059  ;;  %9932 = vst [vmem:[#allocation75_spill] sm:$0xff] %v7927_v44  ;;  %v9582_v10 = vmax.f32 %v7919_v46, 0.0  ;;  %v9583_v61 = vmax.f32 %v7927_v44, 0.0 }
 0x236   :  { %v2396_v63 = vpop.permute.xlu0 %2395 }
 0x237   :  { %2101 = vrot.lane.b32.xlu1 %v1327_v15, %s5881_s11  ;;  %v2575_v2 = vmax.f32 %v1871_v14, %v2396_v63  ;;  %v9933_v15 = vld [vmem:[#allocation123_spill] sm:$0xff]  ;;  %v7947_v63 = vadd.f32 %v9934_v42, %v6321_v25 }
 0x238   :  { %v2142_v19 = vsel %vm1730_vm2, %v9933_v15, %v7612_v49 }
 0x239   :  { %1698 = vrot.lane.b32.xlu0 %v9577_v7, %s5881_s11  ;;  %v7929_v41 = vpop.permute.xlu1 %2065  ;;  %5385 = vmatprep.mubr.msk.f32.mxu1 %vm2637_vm3, %v2575_v2  ;;  %9935 = vst [vmem:[#allocation81_spill] sm:$0xff] %v7947_v63  ;;  %v7952_v2 = vadd.f32 %v9936_v50, %v6312_v23  ;;  %v9939_v7 = vmax.f32 %v9938_v40, 0.0  ;;  %v9942_v40 = vld [vmem:[#allocation47_spill] sm:$0xff] }
 0x23a   :  { %v7936_v14 = vpop.permute.xlu0 %1644 }
 0x23b   :  { %2099 = vrot.lane.b32.xlu1 %v1324_v1, %s5881_s11  ;;  %9937 = vst [vmem:[#allocation68_spill] sm:$0xff] %v7952_v2  ;;  %v1872_v51 = vmax.f32 %v9939_v7, %v1744_v29  ;;  %v9940_v1 = vld [vmem:[#allocation38_spill] sm:$0xff]  ;;  %v9585_v50 = vmax.f32 %v7952_v2, 0.0  ;;  %v7968_v7 = vadd.f32 %v9942_v40, %v6312_v23  ;;  %v9949_v40 = vld [vmem:[#allocation84_spill] sm:$0xff] }
 0x23c   :  { %v9941_v4 = vmax.f32 %v9940_v1, 0.0 }
 0x23d   :  { %1700 = vrot.lane.b32.xlu0 %v9582_v10, %s5881_s11  ;;  %v7956_v49 = vpop.permute.xlu1 %1550  ;;  %v9588_v10 = vmax.f32 %v7947_v63, 0.0  ;;  %9943 = vst [vmem:[#allocation23_spill] sm:$0xff] %v7968_v7 }
 0x23e   :  { %v2270_v5 = vmax.f32 %v9941_v4, %v2142_v19  ;;  %v2398_v46 = vpop.permute.xlu0 %2397  ;;  %v1745_v4 = vsel %vm1730_vm2, %v7683_v57, %v7134_v62  ;;  %v9589_v62 = vmax.f32 %v7968_v7, 0.0  ;;  %v9947_v57 = vld [vmem:[#allocation50_spill] sm:$0xff] }
 0x23f   :  { %1590 = vrot.lane.b32.xlu1 %v9583_v61, %s5881_s11  ;;  %v2576_v42 = vmax.f32 %v1872_v51, %v2398_v46  ;;  %v9944_v51 = vld [vmem:[#allocation127_spill] sm:$0xff] }
 0x240   :  { %v9945_v46 = vld [vmem:[#allocation11_spill] sm:$0xff] }
 0x241   :  { %2425 = vrot.lane.b32.xlu0 %v2270_v5, %s5882_s16  ;;  %v7970_v29 = vpop.permute.xlu1 %2063  ;;  %5386 = vmatmul.mubr.msk.f32.gmra.mrb[76].mxu1 %vm2637_vm3, %v2576_v42  ;;  %v2143_v5 = vsel %vm1730_vm2, %v9944_v51, %v7701_v36  ;;  %v7989_v1 = vadd.f32 %v9945_v46, %v6321_v25  ;;  %v7994_v42 = vadd.f32 %v9947_v57, %v6312_v23  ;;  %v9950_v36 = vmax.f32 %v9949_v40, 0.0  ;;  %v9953_v40 = vld [vmem:[#allocation53_spill] sm:$0xff] }
 0x242   :  { %v7976_v19 = vpop.permute.xlu0 %1648 }
 0x243   :  { %1594 = vrot.lane.b32.xlu1 %v9585_v50, %s5881_s11  ;;  %9946 = vst [vmem:[#allocation31_spill] sm:$0xff] %v7989_v1  ;;  %9948 = vst [vmem:[#allocation21_spill] sm:$0xff] %v7994_v42  ;;  %v1873_v61 = vmax.f32 %v9950_v36, %v1745_v4  ;;  %v9951_v50 = vld [vmem:[#allocation40_spill] sm:$0xff]  ;;  %v9592_v57 = vmax.f32 %v7994_v42, 0.0  ;;  %v8010_v4 = vadd.f32 %v9953_v40, %v6312_v23  ;;  %v9960_v42 = vld [vmem:[#allocation42_spill] sm:$0xff] }
 0x244   :  { %v9952_v2 = vmax.f32 %v9951_v50, 0.0  ;;  %v9958_v40 = vld [vmem:[#allocation92_spill] sm:$0xff] }
 0x245   :  { %1704 = vrot.lane.b32.xlu0 %v9588_v10, %s5881_s11  ;;  %v7998_v44 = vpop.permute.xlu1 %2069  ;;  %v9593_v10 = vmax.f32 %v7989_v1, 0.0  ;;  %9954 = vst [vmem:[#allocation86_spill] sm:$0xff] %v8010_v4  ;;  %v9962_v1 = vld [vmem:[#allocation126_spill] sm:$0xff] }
 0x246   :  { %v2271_v51 = vmax.f32 %v9952_v2, %v2143_v5  ;;  %v2400_v63 = vpop.permute.xlu0 %2399  ;;  %v1746_v2 = vsel %vm1730_vm2, %v7737_v30, %v7157_v0  ;;  %v9595_v30 = vmax.f32 %v8010_v4, 0.0  ;;  %v9970_v4 = vld [vmem:[#allocation59_spill] sm:$0xff] }
 0x247   :  { %1598 = vrot.lane.b32.xlu1 %v9589_v62, %s5881_s11  ;;  %v2577_v46 = vmax.f32 %v1873_v61, %v2400_v63  ;;  %v9955_v63 = vld [vmem:[#allocation130_spill] sm:$0xff]  ;;  %v9959_v62 = vmax.f32 %v9958_v40, 0.0  ;;  %v1131_v40 = vadd.f32 %v9962_v1, %v6316_v24  ;;  %v8066_v1 = vadd.f32 %v7484_v3, %v6321_v25 }
 0x248   :  { %v2144_v61 = vsel %vm1730_vm2, %v9955_v63, %v7666_v32 }
 0x249   :  { %2427 = vrot.lane.b32.xlu0 %v2271_v51, %s5882_s16  ;;  %v8012_v36 = vpop.permute.xlu1 %1554  ;;  %5388 = vmatprep.mubr.msk.f32.mxu1 %vm2637_vm3, %v2577_v46  ;;  %v9956_v51 = vld [vmem:[#allocation128_spill] sm:$0xff]  ;;  %v1874_v32 = vmax.f32 %v9959_v62, %v1746_v2  ;;  %v9599_v3 = vmax.f32 %v8066_v1, 0.0 }
 0x24a   :  { %v8018_v50 = vpop.permute.xlu0 %1652  ;;  %v1126_v5 = vadd.f32 %v9956_v51, %v6316_v24  ;;  %v9957_v46 = vld [vmem:[#allocation132_spill] sm:$0xff] }
 0x24b   :  { %1602 = vrot.lane.b32.xlu1 %v9592_v57, %s5881_s11  ;;  %v8033_v0 = vadd.f32 %v9957_v46, %v6321_v25  ;;  %v9961_v57 = vmax.f32 %v9960_v42, 0.0  ;;  %v1747_v42 = vsel %vm1730_vm2, %v7789_v39, %v7179_v9  ;;  %v9966_v9 = vld [vmem:[#allocation100_spill] sm:$0xff] }
 0x24c   :  { %v1330_v51 = vmax.f32 %v1126_v5, 0.0  ;;  %v9967_v39 = vmax.f32 %v9966_v9, 0.0  ;;  %v8084_v9 = vadd.f32 %v9970_v4, %v6312_v23  ;;  %v1136_v4 = vadd.f32 %v7501_v45, %v6316_v24 }
 0x24d   :  { %1708 = vrot.lane.b32.xlu0 %v9593_v10, %s5881_s11  ;;  %v8038_v7 = vpop.permute.xlu1 %2067  ;;  %v2272_v63 = vmax.f32 %v9961_v57, %v2144_v61  ;;  %v9596_v46 = vmax.f32 %v8033_v0, 0.0  ;;  %v1333_v61 = vmax.f32 %v1131_v40, 0.0 }
 0x24e   :  { %v2402_v15 = vpop.permute.xlu0 %2401  ;;  %9971 = vst [vmem:[#allocation91_spill] sm:$0xff] %v8084_v9  ;;  %v1336_v45 = vmax.f32 %v1136_v4, 0.0 }
 0x24f   :  { %1606 = vrot.lane.b32.xlu1 %v9595_v30, %s5881_s11  ;;  %v2578_v10 = vmax.f32 %v1874_v32, %v2402_v15  ;;  %v2145_v15 = vsel %vm1730_vm2, %v7494_v28, %v7753_v27  ;;  %v9968_v27 = vld [vmem:[#allocation48_spill] sm:$0xff] }
 0x250   :  { %v9969_v32 = vmax.f32 %v9968_v27, 0.0  ;;  %v9977_v27 = vld [vmem:[#allocation56_spill] sm:$0xff] }
 0x251   :  { %2429 = vrot.lane.b32.xlu0 %v2272_v63, %s5882_s16  ;;  %v8049_v62 = vpop.permute.xlu1 %2073  ;;  %5389 = vmatmul.mubr.msk.f32.gmra.mrb[78].mxu1 %vm2637_vm3, %v2578_v10  ;;  %v9964_v10 = vld [vmem:[#allocation57_spill] sm:$0xff]  ;;  %v1875_v63 = vmax.f32 %v9967_v39, %v1747_v42  ;;  %v1748_v42 = vsel %vm1730_vm2, %v7843_v47, %v7193_v18  ;;  %v9601_v47 = vmax.f32 %v8084_v9, 0.0  ;;  %v9975_v39 = vld [vmem:[#allocation106_spill] sm:$0xff] }
 0x252   :  { %v8055_v57 = vpop.permute.xlu0 %1656  ;;  %v8070_v2 = vadd.f32 %v9964_v10, %v6312_v23 }
 0x253   :  { %9963 = vst [vmem:[#allocation72_spill] sm:$0xff] %v8055_v57  ;;  %2103 = vrot.lane.b32.xlu1 %v1330_v51, %s5881_s11  ;;  %v2273_v51 = vmax.f32 %v9969_v32, %v2145_v15  ;;  %v9978_v32 = vmax.f32 %v9977_v27, 0.0 }
 0x254   :  { %9965 = vst [vmem:[#allocation25_spill] sm:$0xff] %v8070_v2  ;;  %v9598_v10 = vmax.f32 %v8070_v2, 0.0  ;;  %v9979_v2 = vld [vmem:[#allocation6_spill] sm:$0xff] }
 0x255   :  { %1712 = vrot.lane.b32.xlu0 %v9596_v46, %s5881_s11  ;;  %v8074_v5 = vpop.permute.xlu1 %1558 }
 0x256   :  { %v2404_v30 = vpop.permute.xlu0 %2403 }
 0x257   :  { %2105 = vrot.lane.b32.xlu1 %v1333_v61, %s5881_s11  ;;  %v2579_v46 = vmax.f32 %v1875_v63, %v2404_v30  ;;  %v2146_v30 = vsel %vm1730_vm2, %v7537_v8, %v7718_v16  ;;  %v9976_v63 = vmax.f32 %v9975_v39, 0.0  ;;  %v1141_v39 = vadd.f32 %v9979_v2, %v6316_v24  ;;  %v9980_v2 = vld [vmem:[#allocation15_spill] sm:$0xff] }
 0x259   :  { %2431 = vrot.lane.b32.xlu0 %v2273_v51, %s5882_s16  ;;  %v8086_v40 = vpop.permute.xlu1 %2071  ;;  %5391 = vmatprep.mubr.msk.f32.mxu1 %vm2637_vm3, %v2579_v46  ;;  %v9973_v46 = vld [vmem:[#allocation22_spill] sm:$0xff]  ;;  %v1876_v16 = vmax.f32 %v9976_v63, %v1748_v42  ;;  %v2274_v51 = vmax.f32 %v9978_v32, %v2146_v30  ;;  %v1749_v30 = vsel %vm1730_vm2, %v7896_v52, %v7218_v17  ;;  %v1339_v32 = vmax.f32 %v1141_v39, 0.0 }
 0x25a   :  { %v8092_v15 = vpop.permute.xlu0 %1660  ;;  %v8107_v18 = vadd.f32 %v9973_v46, %v6321_v25  ;;  %v8140_v63 = vadd.f32 %v9980_v2, %v6321_v25  ;;  %v9983_v17 = vld [vmem:[#allocation114_spill] sm:$0xff] }
 0x25b   :  { %9972 = vst [vmem:[#allocation28_spill] sm:$0xff] %v8092_v15  ;;  %1610 = vrot.lane.b32.xlu1 %v9598_v10, %s5881_s11  ;;  %v9984_v52 = vmax.f32 %v9983_v17, 0.0 }
 0x25c   :  { %9974 = vst [vmem:[#allocation33_spill] sm:$0xff] %v8107_v18  ;;  %v9603_v46 = vmax.f32 %v8107_v18, 0.0  ;;  %v9607_v2 = vmax.f32 %v8140_v63, 0.0  ;;  %v9987_v18 = vld [vmem:[#allocation67_spill] sm:$0xff] }
 0x25d   :  { %1716 = vrot.lane.b32.xlu0 %v9599_v3, %s5881_s11  ;;  %v8112_v61 = vpop.permute.xlu1 %2077  ;;  %v1877_v27 = vmax.f32 %v9984_v52, %v1749_v30  ;;  %v8158_v17 = vadd.f32 %v9987_v18, %v6312_v23  ;;  %v1750_v30 = vsel %vm1730_vm2, %v7956_v49, %v7240_v13  ;;  %v9988_v18 = vld [vmem:[#allocation24_spill] sm:$0xff] }
 0x25e   :  { %v2406_v10 = vpop.permute.xlu0 %2405  ;;  %v9990_v52 = vld [vmem:[#allocation120_spill] sm:$0xff] }
 0x25f   :  { %1614 = vrot.lane.b32.xlu1 %v9601_v47, %s5881_s11  ;;  %v2580_v3 = vmax.f32 %v1876_v16, %v2406_v10  ;;  %v2147_v10 = vsel %vm1730_vm2, %v7577_v26, %v7807_v55  ;;  %v9985_v55 = vld [vmem:[#allocation62_spill] sm:$0xff]  ;;  %v9608_v49 = vmax.f32 %v8158_v17, 0.0 }
 0x261   :  { %2433 = vrot.lane.b32.xlu0 %v2274_v51, %s5882_s16  ;;  %v8123_v42 = vpop.permute.xlu1 %1562  ;;  %5392 = vmatmul.mubr.msk.f32.gmra.mrb[80].mxu1 %vm2637_vm3, %v2580_v3  ;;  %v9981_v3 = vld [vmem:[#allocation64_spill] sm:$0xff] }
 0x262   :  { %v8129_v4 = vpop.permute.xlu0 %1664  ;;  %v8144_v16 = vadd.f32 %v9981_v3, %v6312_v23 }
 0x263   :  { %2107 = vrot.lane.b32.xlu1 %v1336_v45, %s5881_s11  ;;  %v9986_v45 = vmax.f32 %v9985_v55, 0.0  ;;  %v9992_v55 = vld [vmem:[#allocation69_spill] sm:$0xff] }
 0x264   :  { %9982 = vst [vmem:[#allocation76_spill] sm:$0xff] %v8144_v16  ;;  %v9605_v3 = vmax.f32 %v8144_v16, 0.0 }
 0x265   :  { %1720 = vrot.lane.b32.xlu0 %v9603_v46, %s5881_s11  ;;  %v8148_v51 = vpop.permute.xlu1 %2075  ;;  %v2275_v47 = vmax.f32 %v9986_v45, %v2147_v10  ;;  %v9993_v45 = vmax.f32 %v9992_v55, 0.0  ;;  %v9998_v55 = vld [vmem:[#allocation77_spill] sm:$0xff] }
 0x267   :  { %v2408_v9 = vpop.permute.xlu0 %2407  ;;  %2109 = vrot.lane.b32.xlu1 %v1339_v32, %s5881_s11 }
 0x268   :  { %v2581_v46 = vmax.f32 %v1877_v27, %v2408_v9  ;;  %v2148_v9 = vsel %vm1730_vm2, %v7620_v31, %v7772_v11  ;;  %v9991_v27 = vmax.f32 %v9990_v52, 0.0 }
 0x269   :  { %2435 = vrot.lane.b32.xlu0 %v2275_v47, %s5882_s16  ;;  %v8160_v39 = vpop.permute.xlu1 %2081  ;;  %v1146_v47 = vadd.f32 %v9988_v18, %v6316_v24 }
 0x26a   :  { %5394 = vmatprep.mubr.msk.f32.mxu1 %vm2637_vm3, %v2581_v46  ;;  %v9989_v46 = vld [vmem:[#allocation9_spill] sm:$0xff]  ;;  %v1878_v11 = vmax.f32 %v9991_v27, %v1750_v30 }
 0x26b   :  { %v8166_v10 = vpop.permute.xlu0 %1668  ;;  %1618 = vrot.lane.b32.xlu1 %v9605_v3, %s5881_s11  ;;  %v8181_v13 = vadd.f32 %v9989_v46, %v6321_v25  ;;  %v2276_v3 = vmax.f32 %v9993_v45, %v2148_v9  ;;  %v1342_v18 = vmax.f32 %v1146_v47, 0.0  ;;  %v9994_v46 = vld [vmem:[#allocation8_spill] sm:$0xff]  ;;  %v1751_v9 = vsel %vm1730_vm2, %v8012_v36, %v7257_v22 }
 0x26c   :  { %v1151_v52 = vadd.f32 %v9994_v46, %v6316_v24  ;;  %v9995_v24 = vld [vmem:[#allocation70_spill] sm:$0xff]  ;;  %v9999_v45 = vmax.f32 %v9998_v55, 0.0 }
 0x26d   :  { %1724 = vrot.lane.b32.xlu0 %v9607_v2, %s5881_s11  ;;  %v8186_v32 = vpop.permute.xlu1 %1566  ;;  %v9611_v25 = vmax.f32 %v8181_v13, 0.0 }
 0x26e   :  { %v1345_v22 = vmax.f32 %v1151_v52, 0.0 }
 0x26f   :  { %v2410_v16 = vpop.permute.xlu0 %2409  ;;  %1622 = vrot.lane.b32.xlu1 %v9608_v49, %s5881_s11 }
 0x270   :  { %v2582_v2 = vmax.f32 %v1878_v11, %v2410_v16  ;;  %v2149_v16 = vsel %vm1730_vm2, %v7655_v38, %v7859_v6 }
 0x271   :  { %2437 = vrot.lane.b32.xlu0 %v2276_v3, %s5882_s16  ;;  %v8197_v30 = vpop.permute.xlu1 %2079  ;;  %v8214_v3 = vadd.f32 %v9995_v24, %v6312_v23  ;;  %v2277_v46 = vmax.f32 %v9999_v45, %v2149_v16  ;;  %v10001_v16 = vld [vmem:[#allocation83_spill] sm:$0xff]  ;;  %v10003_v45 = vld [vmem:[#allocation78_spill] sm:$0xff] }
 0x272   :  { %5395 = vmatmul.mubr.msk.f32.gmra.mrb[82].mxu1 %vm2637_vm3, %v2582_v2  ;;  %v9996_v2 = vld [vmem:[#allocation133_spill] sm:$0xff] }
 0x273   :  { %v8203_v47 = vpop.permute.xlu0 %1672  ;;  %2111 = vrot.lane.b32.xlu1 %v1342_v18, %s5881_s11  ;;  %v9997_v27 = vmax.f32 %v9996_v2, 0.0  ;;  %v2150_v18 = vsel %vm1730_vm2, %v7691_v20, %v7824_v12  ;;  %v9609_v24 = vmax.f32 %v8214_v3, 0.0  ;;  %v1752_v12 = vsel %vm1730_vm2, %v8074_v5, %v7275_v37 }
 0x275   :  { %1728 = vrot.lane.b32.xlu0 %v9611_v25, %s5881_s11  ;;  %v1879_v11 = vmax.f32 %v9997_v27, %v1751_v9  ;;  %v8218_v36 = vpop.permute.xlu1 %2085  ;;  %v10000_v9 = vld [vmem:[#allocation74_spill] sm:$0xff]  ;;  %v10002_v27 = vmax.f32 %v10001_v16, 0.0 }
 0x276   :  { %v8230_v52 = vadd.f32 %v10000_v9, %v6312_v23  ;;  %v10006_v9 = vld [vmem:[#allocation89_spill] sm:$0xff] }
 0x277   :  { %v2412_v6 = vpop.permute.xlu0 %2411  ;;  %2113 = vrot.lane.b32.xlu1 %v1345_v22, %s5881_s11  ;;  %v2278_v55 = vmax.f32 %v10002_v27, %v2150_v18  ;;  %v2151_v22 = vsel %vm1730_vm2, %v7726_v54, %v7915_v56  ;;  %v10007_v16 = vmax.f32 %v10006_v9, 0.0 }
 0x278   :  { %v2583_v49 = vmax.f32 %v1879_v11, %v2412_v6  ;;  %v10004_v6 = vld [vmem:[#allocation43_spill] sm:$0xff] }
 0x279   :  { %2439 = vrot.lane.b32.xlu0 %v2277_v46, %s5882_s16  ;;  %v8232_v2 = vpop.permute.xlu1 %1570  ;;  %v8252_v46 = vadd.f32 %v10003_v45, %v6312_v23  ;;  %v10005_v37 = vmax.f32 %v10004_v6, 0.0  ;;  %v2279_v56 = vmax.f32 %v10007_v16, %v2151_v22  ;;  %v10010_v22 = vld [vmem:[#allocation95_spill] sm:$0xff]  ;;  %v1753_v16 = vsel %vm1730_vm2, %v8123_v42, %v7303_v34 }
 0x27a   :  { %5397 = vmatprep.mubr.msk.f32.mxu1 %vm2637_vm3, %v2583_v49  ;;  %v9610_v49 = vmax.f32 %v8230_v52, 0.0  ;;  %v10011_v9 = vmax.f32 %v10010_v22, 0.0 }
 0x27b   :  { %v8240_v11 = vpop.permute.xlu0 %1676  ;;  %1626 = vrot.lane.b32.xlu1 %v9609_v24, %s5881_s11  ;;  %v1880_v5 = vmax.f32 %v10005_v37, %v1752_v12  ;;  %v2152_v24 = vsel %vm1730_vm2, %v7761_v35, %v7880_v43  ;;  %v9612_v45 = vmax.f32 %v8252_v46, 0.0  ;;  %v10008_v12 = vld [vmem:[#allocation80_spill] sm:$0xff] }
 0x27c   :  { %v8270_v6 = vadd.f32 %v10008_v12, %v6312_v23  ;;  %v2280_v43 = vmax.f32 %v10011_v9, %v2152_v24  ;;  %v10012_v24 = vld [vmem:[#allocation85_spill] sm:$0xff]  ;;  %v10013_v12 = vld [vmem:[#allocation51_spill] sm:$0xff]  ;;  %v10015_v9 = vld [vmem:[#allocation98_spill] sm:$0xff] }
 0x27d   :  { %2441 = vrot.lane.b32.xlu0 %v2278_v55, %s5882_s16  ;;  %v8256_v18 = vpop.permute.xlu1 %2083  ;;  %v10014_v34 = vmax.f32 %v10013_v12, 0.0 }
 0x27e   :  { %10009 = vst [vmem:[#allocation27_spill] sm:$0xff] %v8270_v6 }
 0x27f   :  { %v2414_v27 = vpop.permute.xlu0 %2413  ;;  %1630 = vrot.lane.b32.xlu1 %v9610_v49, %s5881_s11  ;;  %v1881_v42 = vmax.f32 %v10014_v34, %v1753_v16  ;;  %v10016_v49 = vmax.f32 %v10015_v9, 0.0  ;;  %v10017_v16 = vld [vmem:[#allocation88_spill] sm:$0xff]  ;;  %v1754_v9 = vsel %vm1730_vm2, %v8186_v32, %v7318_v33 }
 0x280   :  { %v2584_v55 = vmax.f32 %v1880_v5, %v2414_v27  ;;  %v9613_v27 = vmax.f32 %v8270_v6, 0.0  ;;  %v8308_v12 = vadd.f32 %v10017_v16, %v6312_v23  ;;  %v10023_v16 = vld [vmem:[#allocation54_spill] sm:$0xff] }
 0x281   :  { %2443 = vrot.lane.b32.xlu0 %v2279_v56, %s5882_s16  ;;  %v8272_v37 = vpop.permute.xlu1 %2089  ;;  %v2153_v56 = vsel %vm1730_vm2, %v7797_v21, %v7970_v29  ;;  %v10024_v33 = vmax.f32 %v10023_v16, 0.0 }
 0x282   :  { %5398 = vmatmul.mubr.msk.f32.gmra.mrb[84].mxu1 %vm2637_vm3, %v2584_v55  ;;  %v8292_v55 = vadd.f32 %v10012_v24, %v6312_v23  ;;  %v2281_v25 = vmax.f32 %v10016_v49, %v2153_v56  ;;  %10018 = vst [vmem:[#allocation35_spill] sm:$0xff] %v8308_v12  ;;  %v10019_v49 = vld [vmem:[#allocation104_spill] sm:$0xff] }
 0x283   :  { %v8280_v5 = vpop.permute.xlu0 %1680  ;;  %1634 = vrot.lane.b32.xlu1 %v9612_v45, %s5881_s11  ;;  %v2154_v45 = vsel %vm1730_vm2, %v7832_v60, %v7929_v41  ;;  %v10020_v56 = vmax.f32 %v10019_v49, 0.0  ;;  %v1882_v32 = vmax.f32 %v10024_v33, %v1754_v9  ;;  %v10027_v9 = vld [vmem:[#allocation93_spill] sm:$0xff] }
 0x284   :  { %v9615_v24 = vmax.f32 %v8292_v55, 0.0  ;;  %v8348_v16 = vadd.f32 %v10027_v9, %v6312_v23 }
 0x285   :  { %2445 = vrot.lane.b32.xlu0 %v2280_v43, %s5882_s16  ;;  %v1575_v22 = vpop.permute.xlu1 %1574  ;;  %v2282_v41 = vmax.f32 %v10020_v56, %v2154_v45  ;;  %v10021_v45 = vld [vmem:[#allocation90_spill] sm:$0xff]  ;;  %v10025_v56 = vld [vmem:[#allocation108_spill] sm:$0xff] }
 0x286   :  { %10028 = vst [vmem:[#allocation99_spill] sm:$0xff] %v8348_v16 }
 0x287   :  { %v2416_v29 = vpop.permute.xlu0 %2415  ;;  %1638 = vrot.lane.b32.xlu1 %v9613_v27, %s5881_s11  ;;  %v10026_v27 = vmax.f32 %v10025_v56, 0.0 }
 0x288   :  { %v2585_v43 = vmax.f32 %v1881_v42, %v2416_v29  ;;  %v9616_v29 = vmax.f32 %v8308_v12, 0.0 }
 0x289   :  { %2447 = vrot.lane.b32.xlu0 %v2281_v25, %s5882_s16  ;;  %v8310_v34 = vpop.permute.xlu1 %2087  ;;  %v2155_v25 = vsel %vm1730_vm2, %v7867_v58, %v8038_v7 }
 0x28a   :  { %5400 = vmatprep.mubr.msk.f32.mxu1 %vm2637_vm3, %v2585_v43  ;;  %v8330_v43 = vadd.f32 %v10021_v45, %v6312_v23  ;;  %v2283_v7 = vmax.f32 %v10026_v27, %v2155_v25  ;;  %v10029_v27 = vld [vmem:[#allocation113_spill] sm:$0xff] }
 0x28b   :  { %v8318_v42 = vpop.permute.xlu0 %1684  ;;  %1642 = vrot.lane.b32.xlu1 %v9615_v24, %s5881_s11  ;;  %v2156_v24 = vsel %vm1730_vm2, %v7904_v53, %v7998_v44  ;;  %v10030_v25 = vmax.f32 %v10029_v27, 0.0  ;;  %v1755_v44 = vsel %vm1730_vm2, %v8232_v2, %v7339_v48  ;;  %v10035_v27 = vld [vmem:[#allocation117_spill] sm:$0xff] }
 0x28c   :  { %10022 = vst [vmem:[#allocation94_spill] sm:$0xff] %v8330_v43  ;;  %v9618_v45 = vmax.f32 %v8330_v43, 0.0 }
 0x28d   :  { %2449 = vrot.lane.b32.xlu0 %v2282_v41, %s5882_s16  ;;  %v8334_v49 = vpop.permute.xlu1 %2093  ;;  %v2284_v56 = vmax.f32 %v10030_v25, %v2156_v24  ;;  %v10031_v24 = vld [vmem:[#allocation96_spill] sm:$0xff]  ;;  %v10036_v25 = vmax.f32 %v10035_v27, 0.0 }
 0x28f   :  { %v2418_v6 = vpop.permute.xlu0 %2417  ;;  %1646 = vrot.lane.b32.xlu1 %v9616_v29, %s5881_s11 }
 0x290   :  { %v2586_v41 = vmax.f32 %v1882_v32, %v2418_v6  ;;  %v2157_v6 = vsel %vm1730_vm2, %v7936_v14, %v8086_v40  ;;  %v9619_v32 = vmax.f32 %v8348_v16, 0.0 }
 0x291   :  { %2451 = vrot.lane.b32.xlu0 %v2283_v7, %s5882_s16  ;;  %v1579_v33 = vpop.permute.xlu1 %1578  ;;  %v8368_v7 = vadd.f32 %v10031_v24, %v6312_v23  ;;  %v2285_v40 = vmax.f32 %v10036_v25, %v2157_v6  ;;  %v10039_v6 = vld [vmem:[#allocation124_spill] sm:$0xff]  ;;  %v1756_v25 = vsel %vm1730_vm2, %v1575_v22, %v7361_v59  ;;  %v10042_v59 = vld [vmem:[#allocation10_spill] sm:$0xff] }
 0x292   :  { %5401 = vmatmul.mubr.msk.f32.gmra.mrb[86].mxu1 %vm2637_vm3, %v2586_v41  ;;  %v10033_v41 = vld [vmem:[#allocation18_spill] sm:$0xff]  ;;  %v10040_v27 = vmax.f32 %v10039_v6, 0.0  ;;  %v10043_v22 = vmax.f32 %v10042_v59, 0.0  ;;  %v10044_v6 = vld [vmem:[#allocation131_spill] sm:$0xff] }
 0x293   :  { %v8356_v29 = vpop.permute.xlu0 %1688  ;;  %1650 = vrot.lane.b32.xlu1 %v9618_v45, %s5881_s11  ;;  %10032 = vst [vmem:[#allocation79_spill] sm:$0xff] %v8368_v7  ;;  %v10034_v48 = vmax.f32 %v10033_v41, 0.0  ;;  %v2158_v45 = vsel %vm1730_vm2, %v7976_v19, %v8049_v62  ;;  %v9621_v24 = vmax.f32 %v8368_v7, 0.0  ;;  %v10046_v59 = vld [vmem:[#allocation103_spill] sm:$0xff] }
 0x294   :  { %v2286_v62 = vmax.f32 %v10040_v27, %v2158_v45  ;;  %v10045_v27 = vmax.f32 %v10044_v6, 0.0 }
 0x295   :  { %2453 = vrot.lane.b32.xlu0 %v2284_v56, %s5882_s16  ;;  %v1883_v2 = vmax.f32 %v10034_v48, %v1755_v44  ;;  %v8372_v9 = vpop.permute.xlu1 %2091  ;;  %v10037_v44 = vld [vmem:[#allocation97_spill] sm:$0xff] }
 0x296   :  { %v8386_v41 = vadd.f32 %v10037_v44, %v6312_v23  ;;  %v1884_v44 = vmax.f32 %v10043_v22, %v1756_v25  ;;  %v8423_v25 = vadd.f32 %v10046_v59, %v6312_v23 }
 0x297   :  { %v2420_v12 = vpop.permute.xlu0 %2419  ;;  %1654 = vrot.lane.b32.xlu1 %v9619_v32, %s5881_s11 }
 0x298   :  { %v2587_v56 = vmax.f32 %v1883_v2, %v2420_v12  ;;  %10038 = vst [vmem:[#allocation30_spill] sm:$0xff] %v8386_v41  ;;  %v2159_v12 = vsel %vm1730_vm2, %v8018_v50, %v8148_v51  ;;  %v9623_v2 = vmax.f32 %v8386_v41, 0.0 }
 0x299   :  { %2455 = vrot.lane.b32.xlu0 %v2285_v40, %s5882_s16  ;;  %v8388_v48 = vpop.permute.xlu1 %2097  ;;  %v10041_v40 = vld [vmem:[#allocation101_spill] sm:$0xff]  ;;  %v2287_v16 = vmax.f32 %v10045_v27, %v2159_v12  ;;  %v10049_v27 = vld [vmem:[#allocation119_spill] sm:$0xff] }
 0x29a   :  { %5403 = vmatprep.mubr.msk.f32.mxu1 %vm2637_vm3, %v2587_v56  ;;  %v8407_v45 = vadd.f32 %v10041_v40, %v6312_v23  ;;  %v10047_v12 = vld [vmem:[#allocation37_spill] sm:$0xff]  ;;  %v1757_v41 = vsel %vm1730_vm2, %v1579_v33, %v10049_v27  ;;  %v9629_v33 = vmax.f32 %v8423_v25, 0.0 }
 0x29b   :  { %v8395_v32 = vpop.permute.xlu0 %1692  ;;  %1658 = vrot.lane.b32.xlu1 %v9621_v24, %s5881_s11  ;;  %v2160_v24 = vsel %vm1730_vm2, %v8055_v57, %v8112_v61  ;;  %v10048_v6 = vmax.f32 %v10047_v12, 0.0  ;;  %v10053_v57 = vld [vmem:[#allocation14_spill] sm:$0xff] }
 0x29c   :  { %v9630_v40 = vmax.f32 %v8407_v45, 0.0 }
 0x29d   :  { %2457 = vrot.lane.b32.xlu0 %v2286_v62, %s5882_s16  ;;  %v1583_v56 = vpop.permute.xlu1 %1582  ;;  %v2288_v61 = vmax.f32 %v10048_v6, %v2160_v24  ;;  %v10051_v6 = vld [vmem:[#allocation19_spill] sm:$0xff] }
 0x29e   :  { %v10052_v27 = vmax.f32 %v10051_v6, 0.0 }
 0x29f   :  { %v2422_v51 = vpop.permute.xlu0 %2421  ;;  %1662 = vrot.lane.b32.xlu1 %v9623_v2, %s5881_s11 }
 0x2a0   :  { %v2588_v62 = vmax.f32 %v1884_v44, %v2422_v51  ;;  %v3330_v44 = vld [vmem:[%s9416_s2 + $0x60] sm:$0xff]  ;;  %v2161_v51 = vsel %vm1730_vm2, %v8092_v15, %v8197_v30  ;;  %v1885_v7 = vmax.f32 %v10052_v27, %v1757_v41  ;;  %v10054_v30 = vmax.f32 %v10053_v57, 0.0  ;;  %v10055_v41 = vld [vmem:[#allocation107_spill] sm:$0xff] }
 0x2a1   :  { %2459 = vrot.lane.b32.xlu0 %v2287_v16, %s5882_s16  ;;  %v8425_v22 = vpop.permute.xlu1 %2095  ;;  %v3329_v16 = vld [vmem:[%s9416_s2 + $0x58] sm:$0xff] }
 0x2a2   :  { %5404 = vmatmul.mubr.msk.f32.gmra.mrb[88].mxu1 %vm2637_vm3, %v2588_v62  ;;  %v5687_v24 = vpack.c.bf16 %v3330_v44, %v3329_v16  ;;  %v10050_v62 = vld [vmem:[#allocation105_spill] sm:$0xff]  ;;  %v2289_v15 = vmax.f32 %v10054_v30, %v2161_v51  ;;  %v10057_v51 = vld [vmem:[#allocation46_spill] sm:$0xff] }
 0x2a3   :  { %v8432_v2 = vpop.permute.xlu0 %1696  ;;  %1666 = vrot.lane.b32.xlu1 %v9630_v40, %s5881_s11  ;;  %v8450_v59 = vadd.f32 %v10050_v62, %v6312_v23  ;;  %v8466_v62 = vadd.f32 %v10055_v41, %v6312_v23 }
 0x2a4   :  { %5688 = vmatprep.subr.bf16.mxu0 %v5687_v24 }
 0x2a5   :  { %2461 = vrot.lane.b32.xlu0 %v2288_v61, %s5882_s16  ;;  %v1587_v12 = vpop.permute.xlu1 %1586  ;;  %5690 = vmatpush3.bf16.msra.mxu0 %v5687_v24  ;;  %v2162_v61 = vsel %vm1730_vm2, %v8129_v4, %v8160_v39  ;;  %v9628_v44 = vmax.f32 %v8450_v59, 0.0  ;;  %10056 = vst [vmem:[#allocation36_spill] sm:$0xff] %v8466_v62  ;;  %v10058_v24 = vmax.f32 %v10057_v51, 0.0  ;;  %v10063_v51 = vld [vmem:[#allocation123_spill] sm:$0xff] }
 0x2a7   :  { %v2424_v43 = vpop.permute.xlu0 %2423  ;;  %1670 = vrot.lane.b32.xlu1 %v9629_v33, %s5881_s11  ;;  %v2290_v39 = vmax.f32 %v10058_v24, %v2162_v61  ;;  %v10061_v61 = vld [vmem:[#allocation16_spill] sm:$0xff] }
 0x2a8   :  { %v2589_v16 = vmax.f32 %v1885_v7, %v2424_v43  ;;  %v2163_v43 = vsel %vm1730_vm2, %v8166_v10, %v8256_v18  ;;  %v10059_v7 = vld [vmem:[#allocation109_spill] sm:$0xff]  ;;  %v1758_v18 = vsel %vm1730_vm2, %v1583_v56, %v10063_v51  ;;  %v10065_v56 = vld [vmem:[#allocation112_spill] sm:$0xff] }
 0x2a9   :  { %2463 = vrot.lane.b32.xlu0 %v2289_v15, %s5882_s16  ;;  %v8468_v57 = vpop.permute.xlu1 %2101  ;;  %v9632_v15 = vmax.f32 %v8466_v62, 0.0  ;;  %v8483_v27 = vadd.f32 %v10059_v7, %v6312_v23  ;;  %v10067_v51 = vld [vmem:[#allocation13_spill] sm:$0xff]  ;;  %v10069_v33 = vld [vmem:[#allocation60_spill] sm:$0xff] }
 0x2aa   :  { %5406 = vmatprep.mubr.msk.f32.mxu1 %vm2637_vm3, %v2589_v16  ;;  %v10062_v16 = vmax.f32 %v10061_v61, 0.0  ;;  %v8507_v61 = vadd.f32 %v10065_v56, %v6312_v23  ;;  %v10070_v40 = vmax.f32 %v10069_v33, 0.0 }
 0x2ab   :  { %v1699_v6 = vpop.permute.xlu0 %1698  ;;  %1674 = vrot.lane.b32.xlu1 %v9628_v44, %s5881_s11  ;;  %10060 = vst [vmem:[#allocation44_spill] sm:$0xff] %v8483_v27  ;;  %v10068_v44 = vmax.f32 %v10067_v51, 0.0 }
 0x2ac   :  { %v2291_v41 = vmax.f32 %v10062_v16, %v2163_v43  ;;  %v9633_v43 = vmax.f32 %v8483_v27, 0.0  ;;  %10066 = vst [vmem:[#allocation82_spill] sm:$0xff] %v8507_v61  ;;  %v9635_v56 = vmax.f32 %v8507_v61, 0.0 }
 0x2ad   :  { %2465 = vrot.lane.b32.xlu0 %v2290_v39, %s5882_s16  ;;  %v8485_v30 = vpop.permute.xlu1 %2099  ;;  %v2164_v39 = vsel %vm1730_vm2, %v8203_v47, %v8218_v36  ;;  %v1886_v36 = vmax.f32 %v10068_v44, %v1758_v18  ;;  %v10072_v44 = vld [vmem:[#allocation115_spill] sm:$0xff] }
 0x2ae   :  { %v2292_v62 = vmax.f32 %v10070_v40, %v2164_v39  ;;  %v8525_v33 = vadd.f32 %v10072_v44, %v6312_v23  ;;  %v10078_v44 = vld [vmem:[#allocation116_spill] sm:$0xff] }
 0x2af   :  { %v8491_v24 = vpop.permute.xlu0 %1700  ;;  %1678 = vrot.lane.b32.xlu1 %v9632_v15, %s5881_s11 }
 0x2b0   :  { %v8501_v7 = vsel %vm1730_vm2, %v1699_v6, %v8491_v24  ;;  %v2165_v6 = vsel %vm1730_vm2, %v8240_v11, %v8310_v34  ;;  %10073 = vst [vmem:[#allocation39_spill] sm:$0xff] %v8525_v33  ;;  %v10075_v34 = vld [vmem:[#allocation58_spill] sm:$0xff] }
 0x2b1   :  { %10064 = vst [vmem:[#allocation102_spill] sm:$0xff] %v8501_v7  ;;  %2467 = vrot.lane.b32.xlu0 %v2291_v41, %s5882_s16  ;;  %v1591_v16 = vpop.permute.xlu1 %1590  ;;  %v10076_v39 = vmax.f32 %v10075_v34, 0.0 }
 0x2b3   :  { %v2426_v15 = vpop.permute.xlu0 %2425  ;;  %1682 = vrot.lane.b32.xlu1 %v9633_v43, %s5881_s11  ;;  %v2293_v51 = vmax.f32 %v10076_v39, %v2165_v6  ;;  %v10077_v43 = vld [vmem:[#allocation127_spill] sm:$0xff]  ;;  %v8546_v6 = vadd.f32 %v10078_v44, %v6312_v23 }
 0x2b4   :  { %v2590_v41 = vmax.f32 %v1886_v36, %v2426_v15  ;;  %v8519_v7 = vpop.f32.mrb[64].mxu1  ;;  %v1759_v15 = vsel %vm1730_vm2, %v1587_v12, %v10077_v43  ;;  %v10079_v12 = vld [vmem:[#allocation66_spill] sm:$0xff] }
 0x2b5   :  { %10071 = vst [vmem:[#allocation32_spill] sm:$0xff] %v8519_v7  ;;  %2469 = vrot.lane.b32.xlu0 %v2292_v62, %s5882_s16  ;;  %v1595_v40 = vpop.permute.xlu1 %1594  ;;  %v8527_v18 = vpop.f32.mrb[65].mxu1  ;;  %v2166_v62 = vsel %vm1730_vm2, %v8280_v5, %v8272_v37  ;;  %v10080_v43 = vmax.f32 %v10079_v12, 0.0  ;;  %v9639_v44 = vmax.f32 %v8546_v6, 0.0  ;;  %v10083_v12 = vld [vmem:[#allocation121_spill] sm:$0xff] }
 0x2b6   :  { %10074 = vst [vmem:[#allocation52_spill] sm:$0xff] %v8527_v18  ;;  %5407 = vmatmul.mubr.msk.f32.gmra.mrb[90].mxu1 %vm2637_vm3, %v2590_v41  ;;  %v9637_v41 = vmax.f32 %v8525_v33, 0.0  ;;  %v10081_v18 = vld [vmem:[#allocation26_spill] sm:$0xff] }
 0x2b7   :  { %v8534_v36 = vpop.permute.xlu0 %1704  ;;  %1686 = vrot.lane.b32.xlu1 %v9635_v56, %s5881_s11  ;;  %v1887_v39 = vmax.f32 %v10080_v43, %v1759_v15  ;;  %v10082_v7 = vmax.f32 %v10081_v18, 0.0  ;;  %v2167_v56 = vsel %vm1730_vm2, %v8318_v42, %v8372_v9  ;;  %v8562_v15 = vadd.f32 %v10083_v12, %v6312_v23  ;;  %v10087_v43 = vld [vmem:[#allocation130_spill] sm:$0xff] }
 0x2b8   :  { %v1760_v33 = vsel %vm1730_vm2, %v1591_v16, %v10087_v43  ;;  %v10089_v16 = vld [vmem:[#allocation75_spill] sm:$0xff] }
 0x2b9   :  { %2471 = vrot.lane.b32.xlu0 %v2293_v51, %s5882_s16  ;;  %v1599_v34 = vpop.permute.xlu1 %1598  ;;  %v2294_v27 = vmax.f32 %v10082_v7, %v2166_v62  ;;  %10084 = vst [vmem:[#allocation110_spill] sm:$0xff] %v8562_v15  ;;  %v10085_v7 = vld [vmem:[#allocation65_spill] sm:$0xff]  ;;  %v10090_v12 = vmax.f32 %v10089_v16, 0.0 }
 0x2ba   :  { %v10086_v62 = vmax.f32 %v10085_v7, 0.0 }
 0x2bb   :  { %v2428_v37 = vpop.permute.xlu0 %2427  ;;  %1690 = vrot.lane.b32.xlu1 %v9637_v41, %s5881_s11  ;;  %v1888_v7 = vmax.f32 %v10090_v12, %v1760_v33 }
 0x2bc   :  { %v2591_v51 = vmax.f32 %v1887_v39, %v2428_v37  ;;  %v2295_v9 = vmax.f32 %v10086_v62, %v2167_v56  ;;  %v9640_v39 = vmax.f32 %v8562_v15, 0.0  ;;  %v10088_v37 = vld [vmem:[#allocation125_spill] sm:$0xff] }
 0x2bd   :  { %2473 = vrot.lane.b32.xlu0 %v2294_v27, %s5882_s16  ;;  %v8564_v18 = vpop.permute.xlu1 %1602  ;;  %v2168_v27 = vsel %vm1730_vm2, %v8356_v29, %v8334_v49  ;;  %v8583_v56 = vadd.f32 %v10088_v37, %v6312_v23  ;;  %v10091_v62 = vld [vmem:[#allocation61_spill] sm:$0xff] }
 0x2be   :  { %5409 = vmatprep.mubr.msk.f32.mxu1 %vm2637_vm3, %v2591_v51  ;;  %v10092_v43 = vmax.f32 %v10091_v62, 0.0 }
 0x2bf   :  { %v8571_v41 = vpop.permute.xlu0 %1708  ;;  %1694 = vrot.lane.b32.xlu1 %v9639_v44, %s5881_s11  ;;  %v2169_v44 = vsel %vm1730_vm2, %v8395_v32, %v8425_v22  ;;  %v9642_v16 = vmax.f32 %v8583_v56, 0.0  ;;  %v2170_v22 = vsel %vm1730_vm2, %v8432_v2, %v8388_v48  ;;  %v10098_v48 = vld [vmem:[#allocation29_spill] sm:$0xff] }
 0x2c0   :  { %v2296_v49 = vmax.f32 %v10092_v43, %v2168_v27  ;;  %v10095_v27 = vld [vmem:[#allocation71_spill] sm:$0xff] }
 0x2c1   :  { %2475 = vrot.lane.b32.xlu0 %v2295_v9, %s5882_s16  ;;  %v8585_v51 = vpop.permute.xlu1 %1606  ;;  %v10096_v62 = vmax.f32 %v10095_v27, 0.0  ;;  %v10099_v27 = vmax.f32 %v10098_v48, 0.0 }
 0x2c3   :  { %v2430_v61 = vpop.permute.xlu0 %2429  ;;  %1702 = vrot.lane.b32.xlu1 %v9640_v39, %s5881_s11  ;;  %v2297_v43 = vmax.f32 %v10096_v62, %v2169_v44  ;;  %v10097_v44 = vld [vmem:[#allocation129_spill] sm:$0xff]  ;;  %v2298_v62 = vmax.f32 %v10099_v27, %v2170_v22  ;;  %v10104_v22 = vld [vmem:[#allocation12_spill] sm:$0xff] }
 0x2c4   :  { %v2592_v9 = vmax.f32 %v1888_v7, %v2430_v61  ;;  %v8597_v37 = vpop.f32.mrb[66].mxu1  ;;  %v1761_v61 = vsel %vm1730_vm2, %v1595_v40, %v7494_v28  ;;  %v10100_v40 = vld [vmem:[#allocation68_spill] sm:$0xff]  ;;  %v8638_v48 = vadd.f32 %v10104_v22, %v6312_v23 }
 0x2c5   :  { %10093 = vst [vmem:[#allocation118_spill] sm:$0xff] %v8597_v37  ;;  %2477 = vrot.lane.b32.xlu0 %v2296_v49, %s5882_s16  ;;  %v2104_v33 = vpop.permute.xlu1 %2103  ;;  %v8601_v12 = vpop.f32.mrb[67].mxu1  ;;  %v2171_v49 = vsel %vm1730_vm2, %v8491_v24, %v8485_v30  ;;  %v10101_v39 = vmax.f32 %v10100_v40, 0.0  ;;  %v10102_v37 = vld [vmem:[#allocation17_spill] sm:$0xff] }
 0x2c6   :  { %10094 = vst [vmem:[#allocation87_spill] sm:$0xff] %v8601_v12  ;;  %5410 = vmatmul.mubr.msk.f32.gmra.mrb[92].mxu1 %vm2637_vm3, %v2592_v9  ;;  %v8622_v9 = vadd.f32 %v10097_v44, %v6312_v23  ;;  %v10103_v15 = vmax.f32 %v10102_v37, 0.0  ;;  %v9643_v27 = vmax.f32 %v8638_v48, 0.0 }
 0x2c7   :  { %v8611_v7 = vpop.permute.xlu0 %1712  ;;  %1706 = vrot.lane.b32.xlu1 %v9642_v16, %s5881_s11  ;;  %v1889_v12 = vmax.f32 %v10101_v39, %v1761_v61  ;;  %v2172_v16 = vsel %vm1730_vm2, %v8534_v36, %v8468_v57  ;;  %v1762_v57 = vsel %vm1730_vm2, %v1599_v34, %v7537_v8 }
 0x2c8   :  { %v2299_v30 = vmax.f32 %v10103_v15, %v2171_v49  ;;  %v9644_v44 = vmax.f32 %v8622_v9, 0.0  ;;  %v10105_v15 = vld [vmem:[#allocation81_spill] sm:$0xff] }
 0x2c9   :  { %2479 = vrot.lane.b32.xlu0 %v2297_v43, %s5882_s16  ;;  %v2106_v28 = vpop.permute.xlu1 %2105  ;;  %v10106_v37 = vmax.f32 %v10105_v15, 0.0 }
 0x2ca   :  { %v2174_v15 = vsel %vm1730_vm2, %v8611_v7, %v2106_v28  ;;  %v1763_v28 = vsel %vm1730_vm2, %v8564_v18, %v7577_v26 }
 0x2cb   :  { %v2432_v24 = vpop.permute.xlu0 %2431  ;;  %2481 = vrot.lane.b32.xlu1 %v2298_v62, %s5882_s16  ;;  %v2300_v61 = vmax.f32 %v10106_v37, %v2172_v16  ;;  %v10107_v62 = vld [vmem:[#allocation49_spill] sm:$0xff] }
 0x2cc   :  { %v2593_v43 = vmax.f32 %v1889_v12, %v2432_v24  ;;  %v2173_v12 = vsel %vm1730_vm2, %v8571_v41, %v2104_v33  ;;  %v8656_v40 = vadd.f32 %v10107_v62, %v6312_v23  ;;  %v10110_v24 = vld [vmem:[#allocation31_spill] sm:$0xff] }
 0x2cd   :  { %2483 = vrot.lane.b32.xlu0 %v2299_v30, %s5882_s16  ;;  %v1611_v39 = vpop.permute.xlu1 %1610  ;;  %v10108_v30 = vld [vmem:[#allocation23_spill] sm:$0xff] }
 0x2ce   :  { %5412 = vmatprep.mubr.msk.f32.mxu1 %vm2637_vm3, %v2593_v43  ;;  %v10109_v8 = vmax.f32 %v10108_v30, 0.0  ;;  %v10111_v43 = vmax.f32 %v10110_v24, 0.0  ;;  %v9647_v62 = vmax.f32 %v8656_v40, 0.0 }
 0x2cf   :  { %v8645_v49 = vpop.permute.xlu0 %1716  ;;  %1710 = vrot.lane.b32.xlu1 %v9644_v44, %s5881_s11 }
 0x2d0   :  { %v1890_v34 = vmax.f32 %v10109_v8, %v1762_v57  ;;  %v2301_v22 = vmax.f32 %v10111_v43, %v2173_v12  ;;  %v10112_v57 = vld [vmem:[#allocation7_spill] sm:$0xff] }
 0x2d1   :  { %2485 = vrot.lane.b32.xlu0 %v2300_v61, %s5882_s16  ;;  %v1615_v16 = vpop.permute.xlu1 %1614  ;;  %v8673_v30 = vadd.f32 %v10112_v57, %v6312_v23 }
 0x2d3   :  { %v2434_v33 = vpop.permute.xlu0 %2433  ;;  %1714 = vrot.lane.b32.xlu1 %v9643_v27, %s5881_s11 }
 0x2d4   :  { %v2594_v37 = vmax.f32 %v1890_v34, %v2434_v33  ;;  %v8667_v61 = vpop.f32.mrb[68].mxu1  ;;  %v10113_v34 = vmax.f32 %v8033_v0, 0.0  ;;  %v9645_v33 = vmax.f32 %v8673_v30, 0.0  ;;  %v10115_v0 = vld [vmem:[#allocation21_spill] sm:$0xff] }
 0x2d5   :  { %2487 = vrot.lane.b32.xlu0 %v2301_v22, %s5882_s16  ;;  %v2108_v12 = vpop.permute.xlu1 %2107  ;;  %v8675_v8 = vpop.f32.mrb[69].mxu1  ;;  %v10116_v18 = vmax.f32 %v10115_v0, 0.0 }
 0x2d6   :  { %5413 = vmatmul.mubr.msk.f32.gmra.mrb[94].mxu1 %vm2637_vm3, %v2594_v37  ;;  %v2302_v24 = vmax.f32 %v10113_v34, %v2174_v15  ;;  %v2175_v22 = vsel %vm1730_vm2, %v8645_v49, %v2108_v12  ;;  %v10114_v37 = vld [vmem:[#allocation55_spill] sm:$0xff]  ;;  %v10117_v34 = vmax.f32 %v8066_v1, 0.0  ;;  %v1764_v1 = vsel %vm1730_vm2, %v8585_v51, %v7620_v31 }
 0x2d7   :  { %v8683_v43 = vpop.permute.xlu0 %1720  ;;  %1718 = vrot.lane.b32.xlu1 %v9647_v62, %s5881_s11  ;;  %v8694_v57 = vadd.f32 %v10114_v37, %v6312_v23  ;;  %v1891_v15 = vmax.f32 %v10116_v18, %v1763_v28  ;;  %v10118_v28 = vld [vmem:[#allocation33_spill] sm:$0xff]  ;;  %v10120_v18 = vld [vmem:[#allocation86_spill] sm:$0xff] }
 0x2d8   :  { %v2303_v27 = vmax.f32 %v10117_v34, %v2175_v22  ;;  %v10119_v22 = vmax.f32 %v10118_v28, 0.0 }
 0x2d9   :  { %2489 = vrot.lane.b32.xlu0 %v2302_v24, %s5882_s16  ;;  %v2110_v26 = vpop.permute.xlu1 %2109  ;;  %v9646_v23 = vmax.f32 %v8694_v57, 0.0 }
 0x2da   :  { %v2176_v44 = vsel %vm1730_vm2, %v8683_v43, %v2110_v26 }
 0x2db   :  { %v2436_v12 = vpop.permute.xlu0 %2435  ;;  %1722 = vrot.lane.b32.xlu1 %v9645_v33, %s5881_s11  ;;  %v2304_v0 = vmax.f32 %v10119_v22, %v2176_v44  ;;  %v1765_v44 = vsel %vm1730_vm2, %v1611_v39, %v7655_v38 }
 0x2dc   :  { %v2595_v24 = vmax.f32 %v1891_v15, %v2436_v12  ;;  %v10121_v15 = vmax.f32 %v10120_v18, 0.0 }
 0x2dd   :  { %2491 = vrot.lane.b32.xlu0 %v2303_v27, %s5882_s16  ;;  %v1619_v37 = vpop.permute.xlu1 %1618 }
 0x2de   :  { %5415 = vmatprep.mubr.msk.f32.mxu1 %vm2637_vm3, %v2595_v24  ;;  %v1892_v34 = vmax.f32 %v10121_v15, %v1764_v1  ;;  %v10124_v15 = vld [vmem:[#allocation25_spill] sm:$0xff] }
 0x2df   :  { %v8713_v26 = vpop.permute.xlu0 %1724  ;;  %1726 = vrot.lane.b32.xlu1 %v9646_v23, %s5881_s11 }
 0x2e1   :  { %2493 = vrot.lane.b32.xlu0 %v2304_v0, %s5882_s16  ;;  %v1623_v27 = vpop.permute.xlu1 %1622  ;;  %v10123_v0 = vmax.f32 %v8140_v63, 0.0  ;;  %v10127_v63 = vld [vmem:[#allocation91_spill] sm:$0xff] }
 0x2e3   :  { %v2438_v12 = vpop.permute.xlu0 %2437 }
 0x2e4   :  { %v2596_v24 = vmax.f32 %v1892_v34, %v2438_v12  ;;  %v8721_v33 = vpop.f32.mrb[70].mxu1  ;;  %v10125_v34 = vmax.f32 %v10124_v15, 0.0 }
 0x2e5   :  { %v2112_v31 = vpop.permute.xlu1 %2111  ;;  %v8723_v51 = vpop.f32.mrb[71].mxu1 }
 0x2e6   :  { %10122 = vst [vmem:[#allocation34_spill] sm:$0xff] %v8723_v51  ;;  %5416 = vmatmul.mubr.msk.f32.gmra.mrb[96].mxu1 %vm2637_vm3, %v2596_v24  ;;  %v2177_v28 = vsel %vm1730_vm2, %v8713_v26, %v2112_v31  ;;  %v1893_v12 = vmax.f32 %v10125_v34, %v1765_v44  ;;  %v1766_v24 = vsel %vm1730_vm2, %v1615_v16, %v7691_v20  ;;  %v10126_v31 = vmax.f32 %v8181_v13, 0.0 }
 0x2e7   :  { %v8730_v22 = vpop.permute.xlu0 %1728  ;;  %v2305_v1 = vmax.f32 %v10123_v0, %v2177_v28  ;;  %v10128_v28 = vmax.f32 %v10127_v63, 0.0  ;;  %v1767_v44 = vsel %vm1730_vm2, %v1619_v37, %v7726_v54  ;;  %v1768_v34 = vsel %vm1730_vm2, %v1623_v27, %v7761_v35 }
 0x2e8   :  { %v10131_v54 = vmax.f32 %v8158_v17, 0.0  ;;  %v10132_v35 = vmax.f32 %v8214_v3, 0.0  ;;  %v10133_v17 = vmax.f32 %v8230_v52, 0.0  ;;  %v10134_v3 = vmax.f32 %v8252_v46, 0.0 }
 0x2e9   :  { %v2114_v18 = vpop.permute.xlu1 %2113  ;;  %2495 = vrot.lane.b32.xlu0 %v2305_v1, %s5882_s16  ;;  %v1894_v0 = vmax.f32 %v10128_v28, %v1766_v24 }
 0x2ea   :  { %v2178_v38 = vsel %vm1730_vm2, %v8730_v22, %v2114_v18  ;;  %v10129_v18 = vld [vmem:[#allocation76_spill] sm:$0xff]  ;;  %v1896_v37 = vmax.f32 %v10131_v54, %v1768_v34 }
 0x2eb   :  { %v2440_v39 = vpop.permute.xlu0 %2439  ;;  %v2306_v23 = vmax.f32 %v10126_v31, %v2178_v38  ;;  %v10130_v13 = vmax.f32 %v10129_v18, 0.0 }
 0x2ec   :  { %v2597_v62 = vmax.f32 %v1893_v12, %v2440_v39 }
 0x2ed   :  { %v1627_v51 = vpop.permute.xlu1 %1626  ;;  %2497 = vrot.lane.b32.xlu1 %v2306_v23, %s5882_s16  ;;  %v1895_v15 = vmax.f32 %v10130_v13, %v1767_v44 }
 0x2ee   :  { %5418 = vmatprep.mubr.msk.f32.mxu1 %vm2637_vm3, %v2597_v62  ;;  %v1769_v39 = vsel %vm1730_vm2, %v1627_v51, %v7797_v21 }
 0x2ef   :  { %v2442_v20 = vpop.permute.xlu0 %2441  ;;  %v1897_v27 = vmax.f32 %v10132_v35, %v1769_v39 }
 0x2f0   :  { %v2598_v16 = vmax.f32 %v1894_v0, %v2442_v20 }
 0x2f1   :  { %v1631_v1 = vpop.permute.xlu1 %1630 }
 0x2f2   :  { %5419 = vmatmul.mubr.msk.f32.gmra.mrb[98].mxu1 %vm2637_vm3, %v2598_v16  ;;  %v1770_v0 = vsel %vm1730_vm2, %v1631_v1, %v7832_v60 }
 0x2f3   :  { %v2444_v23 = vpop.permute.xlu0 %2443  ;;  %v1898_v18 = vmax.f32 %v10133_v17, %v1770_v0 }
 0x2f4   :  { %v2599_v12 = vmax.f32 %v1895_v15, %v2444_v23  ;;  %v8754_v62 = vpop.f32.mrb[72].mxu1 }
 0x2f5   :  { %v1635_v38 = vpop.permute.xlu1 %1634  ;;  %v8756_v24 = vpop.f32.mrb[73].mxu1 }
 0x2f6   :  { %5421 = vmatprep.mubr.msk.f32.mxu1 %vm2637_vm3, %v2599_v12  ;;  %v1771_v21 = vsel %vm1730_vm2, %v1635_v38, %v7867_v58  ;;  %v10135_v58 = vld [vmem:[#allocation27_spill] sm:$0xff] }
 0x2f7   :  { %v2446_v31 = vpop.permute.xlu0 %2445  ;;  %v1899_v34 = vmax.f32 %v10134_v3, %v1771_v21  ;;  %v10136_v38 = vmax.f32 %v10135_v58, 0.0 }
 0x2f8   :  { %v2600_v63 = vmax.f32 %v1896_v37, %v2446_v31 }
 0x2f9   :  { %v1639_v28 = vpop.permute.xlu1 %1638 }
 0x2fa   :  { %5422 = vmatmul.mubr.msk.f32.gmra.mrb[100].mxu1 %vm2637_vm3, %v2600_v63  ;;  %v1772_v60 = vsel %vm1730_vm2, %v1639_v28, %v7904_v53  ;;  %v10137_v53 = vmax.f32 %v8292_v55, 0.0  ;;  %v10140_v55 = vld [vmem:[#allocation94_spill] sm:$0xff] }
 0x2fb   :  { %v2448_v44 = vpop.permute.xlu0 %2447  ;;  %v1900_v37 = vmax.f32 %v10136_v38, %v1772_v60 }
 0x2fc   :  { %v2601_v20 = vmax.f32 %v1897_v27, %v2448_v44 }
 0x2fd   :  { %v1643_v16 = vpop.permute.xlu1 %1642 }
 0x2fe   :  { %5424 = vmatprep.mubr.msk.f32.mxu1 %vm2637_vm3, %v2601_v20  ;;  %v1773_v39 = vsel %vm1730_vm2, %v1643_v16, %v7936_v14  ;;  %v10138_v20 = vld [vmem:[#allocation35_spill] sm:$0xff] }
 0x2ff   :  { %v2450_v51 = vpop.permute.xlu0 %2449  ;;  %v1901_v28 = vmax.f32 %v10137_v53, %v1773_v39  ;;  %v10139_v17 = vmax.f32 %v10138_v20, 0.0 }
 0x300   :  { %v2602_v13 = vmax.f32 %v1898_v18, %v2450_v51 }
 0x301   :  { %v1647_v15 = vpop.permute.xlu1 %1646 }
 0x302   :  { %5425 = vmatmul.mubr.msk.f32.gmra.mrb[102].mxu1 %vm2637_vm3, %v2602_v13  ;;  %v1774_v35 = vsel %vm1730_vm2, %v1647_v15, %v7976_v19  ;;  %v10141_v13 = vmax.f32 %v10140_v55, 0.0  ;;  %v10142_v19 = vld [vmem:[#allocation72_spill] sm:$0xff] }
 0x303   :  { %v2452_v1 = vpop.permute.xlu0 %2451  ;;  %v1902_v18 = vmax.f32 %v10139_v17, %v1774_v35 }
 0x304   :  { %v2603_v23 = vmax.f32 %v1899_v34, %v2452_v1  ;;  %v8778_v12 = vpop.f32.mrb[74].mxu1 }
 0x305   :  { %v1651_v52 = vpop.permute.xlu1 %1650  ;;  %v8780_v54 = vpop.f32.mrb[75].mxu1 }
 0x306   :  { %5427 = vmatprep.mubr.msk.f32.mxu1 %vm2637_vm3, %v2603_v23  ;;  %v1775_v14 = vsel %vm1730_vm2, %v1651_v52, %v8018_v50  ;;  %v10143_v50 = vld [vmem:[#allocation99_spill] sm:$0xff] }
 0x307   :  { %v2454_v46 = vpop.permute.xlu0 %2453  ;;  %v1903_v3 = vmax.f32 %v10141_v13, %v1775_v14  ;;  %v10144_v52 = vmax.f32 %v10143_v50, 0.0 }
 0x308   :  { %v2604_v31 = vmax.f32 %v1900_v37, %v2454_v46  ;;  %v10145_v37 = vld [vmem:[#allocation28_spill] sm:$0xff] }
 0x309   :  { %v1655_v63 = vpop.permute.xlu1 %1654 }
 0x30a   :  { %5428 = vmatmul.mubr.msk.f32.gmra.mrb[104].mxu1 %vm2637_vm3, %v2604_v31  ;;  %v1776_v15 = vsel %vm1730_vm2, %v1655_v63, %v10142_v19  ;;  %v10146_v63 = vld [vmem:[#allocation79_spill] sm:$0xff] }
 0x30b   :  { %v2456_v27 = vpop.permute.xlu0 %2455  ;;  %v1904_v38 = vmax.f32 %v10144_v52, %v1776_v15 }
 0x30c   :  { %v2605_v0 = vmax.f32 %v1901_v28, %v2456_v27  ;;  %v10147_v28 = vmax.f32 %v10146_v63, 0.0 }
 0x30d   :  { %v1659_v44 = vpop.permute.xlu1 %1658 }
 0x30e   :  { %5430 = vmatprep.mubr.msk.f32.mxu1 %vm2637_vm3, %v2605_v0  ;;  %v1777_v39 = vsel %vm1730_vm2, %v1659_v44, %v10145_v37 }
 0x30f   :  { %v2458_v16 = vpop.permute.xlu0 %2457  ;;  %v1905_v35 = vmax.f32 %v10147_v28, %v1777_v39 }
 0x310   :  { %v2606_v21 = vmax.f32 %v1902_v18, %v2458_v16  ;;  %v10148_v18 = vld [vmem:[#allocation30_spill] sm:$0xff] }
 0x311   :  { %v1663_v51 = vpop.permute.xlu1 %1662  ;;  %v10149_v14 = vmax.f32 %v10148_v18, 0.0 }
 0x312   :  { %5431 = vmatmul.mubr.msk.f32.gmra.mrb[106].mxu1 %vm2637_vm3, %v2606_v21  ;;  %v1778_v27 = vsel %vm1730_vm2, %v1663_v51, %v8129_v4 }
 0x313   :  { %v2460_v34 = vpop.permute.xlu0 %2459  ;;  %v1906_v16 = vmax.f32 %v10149_v14, %v1778_v27 }
 0x314   :  { %v2607_v60 = vmax.f32 %v1903_v3, %v2460_v34  ;;  %v8802_v1 = vpop.f32.mrb[76].mxu1  ;;  %v10150_v3 = vmax.f32 %v8407_v45, 0.0 }
 0x315   :  { %v1667_v23 = vpop.permute.xlu1 %1666  ;;  %v8804_v58 = vpop.f32.mrb[77].mxu1 }
 0x316   :  { %5433 = vmatprep.mubr.msk.f32.mxu1 %vm2637_vm3, %v2607_v60  ;;  %v1779_v44 = vsel %vm1730_vm2, %v1667_v23, %v8166_v10  ;;  %v10151_v10 = vmax.f32 %v8423_v25, 0.0  ;;  %v10153_v25 = vld [vmem:[#allocation36_spill] sm:$0xff] }
 0x317   :  { %v2462_v46 = vpop.permute.xlu0 %2461  ;;  %v1907_v19 = vmax.f32 %v10150_v3, %v1779_v44  ;;  %v10154_v28 = vmax.f32 %v10153_v25, 0.0  ;;  %v10157_v44 = vld [vmem:[#allocation32_spill] sm:$0xff]  ;;  %v10161_v25 = vld [vmem:[#allocation39_spill] sm:$0xff] }
 0x318   :  { %v2608_v31 = vmax.f32 %v1904_v38, %v2462_v46 }
 0x319   :  { %v1671_v53 = vpop.permute.xlu1 %1670 }
 0x31a   :  { %5434 = vmatmul.mubr.msk.f32.gmra.mrb[108].mxu1 %vm2637_vm3, %v2608_v31  ;;  %v1780_v4 = vsel %vm1730_vm2, %v1671_v53, %v8203_v47  ;;  %v10152_v47 = vmax.f32 %v8450_v59, 0.0  ;;  %v8848_v59 = vld [vmem:[%s9418_s4 + $0x1] ss:$0 sm:$0xff] }
 0x31b   :  { %v2464_v0 = vpop.permute.xlu0 %2463  ;;  %v1908_v23 = vmax.f32 %v10151_v10, %v1780_v4 }
 0x31c   :  { %v2609_v20 = vmax.f32 %v1905_v35, %v2464_v0 }
 0x31d   :  { %v1675_v17 = vpop.permute.xlu1 %1674 }
 0x31e   :  { %5436 = vmatprep.mubr.msk.f32.mxu1 %vm2637_vm3, %v2609_v20  ;;  %v1781_v52 = vsel %vm1730_vm2, %v1675_v17, %v8240_v11 }
 0x31f   :  { %v2466_v21 = vpop.permute.xlu0 %2465  ;;  %v1909_v39 = vmax.f32 %v10152_v47, %v1781_v52 }
 0x320   :  { %v2610_v55 = vmax.f32 %v1906_v16, %v2466_v21 }
 0x321   :  { %v1679_v13 = vpop.permute.xlu1 %1678 }
 0x322   :  { %5437 = vmatmul.mubr.msk.f32.gmra.mrb[110].mxu1 %vm2637_vm3, %v2610_v55  ;;  %v1782_v46 = vsel %vm1730_vm2, %v1679_v13, %v8280_v5  ;;  %v10155_v5 = vld [vmem:[#allocation44_spill] sm:$0xff] }
 0x323   :  { %v2468_v51 = vpop.permute.xlu0 %2467  ;;  %v1910_v35 = vmax.f32 %v10154_v28, %v1782_v46  ;;  %v10156_v17 = vmax.f32 %v10155_v5, 0.0  ;;  %v10158_v55 = vld [vmem:[#allocation52_spill] sm:$0xff]  ;;  %v10162_v28 = vmax.f32 %v10161_v25, 0.0 }
 0x324   :  { %v2611_v15 = vmax.f32 %v1907_v19, %v2468_v51  ;;  %v8826_v34 = vpop.f32.mrb[78].mxu1  ;;  %v2897_v13 = vadd.f32 %v10158_v55, %v8848_v59 }
 0x325   :  { %v1683_v60 = vpop.permute.xlu1 %1682  ;;  %v8828_v50 = vpop.f32.mrb[79].mxu1 }
 0x326   :  { %5439 = vmatprep.mubr.msk.f32.mxu1 %vm2637_vm3, %v2611_v15  ;;  %v1783_v11 = vsel %vm1730_vm2, %v1683_v60, %v8318_v42  ;;  %v2902_v42 = vadd.f32 %v10157_v44, %v8848_v59  ;;  %v10159_v15 = vld [vmem:[#allocation82_spill] sm:$0xff]  ;;  %v3215_v47 = vmax.f32 %v2897_v13, 0.0 }
 0x327   :  { %v2470_v45 = vpop.permute.xlu0 %2469  ;;  %v1911_v18 = vmax.f32 %v10156_v17, %v1783_v11  ;;  %v10160_v60 = vmax.f32 %v10159_v15, 0.0  ;;  %v10164_v17 = vld [vmem:[#allocation102_spill] sm:$0xff] }
 0x328   :  { %v2612_v38 = vmax.f32 %v1908_v23, %v2470_v45  ;;  %v3216_v45 = vmax.f32 %v2902_v42, 0.0 }
 0x329   :  { %v1687_v37 = vpop.permute.xlu1 %1686 }
 0x32a   :  { %5440 = vmatmul.mubr.msk.f32.gmra.mrb[112].mxu1 %vm2637_vm3, %v2612_v38  ;;  %v1784_v14 = vsel %vm1730_vm2, %v1687_v37, %v8356_v29 }
 0x32b   :  { %v2472_v31 = vpop.permute.xlu0 %2471  ;;  %v1912_v10 = vmax.f32 %v10160_v60, %v1784_v14 }
 0x32c   :  { %v2613_v53 = vmax.f32 %v1909_v39, %v2472_v31 }
 0x32d   :  { %v1691_v63 = vpop.permute.xlu1 %1690 }
 0x32e   :  { %5442 = vmatprep.mubr.msk.f32.mxu1 %vm2637_vm3, %v2613_v53  ;;  %v1785_v29 = vsel %vm1730_vm2, %v1691_v63, %v8395_v32 }
 0x32f   :  { %v2474_v27 = vpop.permute.xlu0 %2473 }
 0x330   :  { %v2614_v0 = vmax.f32 %v1910_v35, %v2474_v27  ;;  %v1913_v35 = vmax.f32 %v10162_v28, %v1785_v29  ;;  %v10163_v27 = vmax.f32 %v8546_v6, 0.0  ;;  %v10167_v6 = vld [vmem:[#allocation110_spill] sm:$0xff] }
 0x331   :  { %v1695_v20 = vpop.permute.xlu1 %1694  ;;  %v10168_v55 = vmax.f32 %v10167_v6, 0.0 }
 0x332   :  { %5443 = vmatmul.mubr.msk.f32.gmra.mrb[114].mxu1 %vm2637_vm3, %v2614_v0  ;;  %v1786_v46 = vsel %vm1730_vm2, %v1695_v20, %v8432_v2  ;;  %v10165_v2 = vld [vmem:[#allocation20_spill] sm:$0xff] }
 0x333   :  { %v2476_v16 = vpop.permute.xlu0 %2475  ;;  %v1914_v0 = vmax.f32 %v10163_v27, %v1786_v46  ;;  %v10166_v20 = vmax.f32 %v10165_v2, 0.0 }
 0x334   :  { %v2615_v21 = vmax.f32 %v1911_v18, %v2476_v16  ;;  %v5393_v3 = vpop.f32.mrb[80].mxu1 }
 0x335   :  { %v1703_v19 = vpop.permute.xlu1 %1702  ;;  %v2982_v4 = vadd.f32 %v5393_v3, %v8848_v59  ;;  %v2976_v51 = vpop.f32.mrb[81].mxu1  ;;  %v1915_v18 = vmax.f32 %v10166_v20, %v10164_v17  ;;  %v10173_v17 = vmax.f32 %v8638_v48, 0.0  ;;  %v2917_v48 = vadd.f32 %v8675_v8, %v8848_v59 }
 0x336   :  { %5445 = vmatprep.mubr.msk.f32.mxu1 %vm2637_vm3, %v2615_v21  ;;  %v2977_v23 = vadd.f32 %v2976_v51, %v8848_v59  ;;  %v1788_v14 = vsel %vm1730_vm2, %v1703_v19, %v8534_v36  ;;  %v10169_v51 = vld [vmem:[#allocation118_spill] sm:$0xff]  ;;  %v10170_v36 = vld [vmem:[#allocation87_spill] sm:$0xff]  ;;  %v10175_v8 = vmax.f32 %v8673_v30, 0.0 }
 0x337   :  { %v2478_v52 = vpop.permute.xlu0 %2477  ;;  %v3232_v38 = vmax.f32 %v2982_v4, 0.0  ;;  %v1916_v13 = vmax.f32 %v10168_v55, %v1788_v14  ;;  %v2912_v15 = vadd.f32 %v10169_v51, %v8848_v59  ;;  %v2907_v19 = vadd.f32 %v10170_v36, %v8848_v59  ;;  %v10178_v30 = vld [vmem:[#allocation34_spill] sm:$0xff] }
 0x338   :  { %v2616_v37 = vmax.f32 %v1912_v10, %v2478_v52  ;;  %v3231_v39 = vmax.f32 %v2977_v23, 0.0  ;;  %v3219_v51 = vmax.f32 %v2917_v48, 0.0 }
 0x339   :  { %v8868_v31 = vmax.f32 %v3216_v45, %v3232_v38  ;;  %v1707_v53 = vpop.permute.xlu1 %1706  ;;  %v10171_v45 = vmax.f32 %v8583_v56, 0.0  ;;  %v3217_v25 = vmax.f32 %v2907_v19, 0.0 }
 0x33a   :  { %5446 = vmatmul.mubr.msk.f32.gmra.mrb[116].mxu1 %vm2637_vm3, %v2616_v37  ;;  %v8873_v32 = vmax.f32 %v3215_v47, %v3231_v39  ;;  %v1789_v3 = vsel %vm1730_vm2, %v1707_v53, %v8571_v41  ;;  %v3218_v39 = vmax.f32 %v2912_v15, 0.0 }
 0x33b   :  { %v2480_v63 = vpop.permute.xlu0 %2479  ;;  %v1917_v38 = vmax.f32 %v10171_v45, %v1789_v3 }
 0x33c   :  { %v2617_v11 = vmax.f32 %v1913_v35, %v2480_v63  ;;  %v10172_v63 = vmax.f32 %v8622_v9, 0.0  ;;  %v10174_v9 = vmax.f32 %v8656_v40, 0.0 }
 0x33d   :  { %v2482_v5 = vpop.permute.xlu1 %2481 }
 0x33e   :  { %5448 = vmatprep.mubr.msk.f32.mxu1 %vm2637_vm3, %v2617_v11  ;;  %v2618_v16 = vmax.f32 %v1914_v0, %v2482_v5 }
 0x33f   :  { %v2484_v44 = vpop.permute.xlu0 %2483 }
 0x340   :  { %v2619_v42 = vmax.f32 %v1915_v18, %v2484_v44  ;;  %5449 = vmatmul.mubr.msk.f32.gmra.mrb[118].mxu1 %vm2637_vm3, %v2618_v16 }
 0x341   :  { %v1711_v21 = vpop.permute.xlu1 %1710 }
 0x342   :  { %5451 = vmatprep.mubr.msk.f32.mxu1 %vm2637_vm3, %v2619_v42  ;;  %v1790_v41 = vsel %vm1730_vm2, %v1711_v21, %v8611_v7  ;;  %v2922_v42 = vadd.f32 %v8667_v61, %v8848_v59 }
 0x343   :  { %v2486_v4 = vpop.permute.xlu0 %2485  ;;  %v1918_v11 = vmax.f32 %v10172_v63, %v1790_v41  ;;  %v2932_v41 = vadd.f32 %v8721_v33, %v8848_v59  ;;  %v2942_v33 = vadd.f32 %v8754_v62, %v8848_v59  ;;  %v2952_v62 = vadd.f32 %v8778_v12, %v8848_v59 }
 0x344   :  { %v2620_v60 = vmax.f32 %v1916_v13, %v2486_v4  ;;  %v3220_v3 = vmax.f32 %v2922_v42, 0.0  ;;  %v2962_v12 = vadd.f32 %v8802_v1, %v8848_v59 }
 0x345   :  { %v5396_v10 = vpop.f32.mrb[82].mxu1  ;;  %v1715_v23 = vpop.permute.xlu1 %1714 }
 0x346   :  { %v2992_v29 = vadd.f32 %v5396_v10, %v8848_v59  ;;  %v2986_v52 = vpop.f32.mrb[83].mxu1  ;;  %5452 = vmatmul.mubr.msk.f32.gmra.mrb[120].mxu1 %vm2637_vm3, %v2620_v60  ;;  %v1791_v56 = vsel %vm1730_vm2, %v1715_v23, %v8645_v49 }
 0x347   :  { %v2987_v37 = vadd.f32 %v2986_v52, %v8848_v59  ;;  %v2488_v47 = vpop.permute.xlu0 %2487  ;;  %v1919_v2 = vmax.f32 %v10173_v17, %v1791_v56 }
 0x348   :  { %v3234_v46 = vmax.f32 %v2992_v29, 0.0  ;;  %v2621_v53 = vmax.f32 %v1917_v38, %v2488_v47  ;;  %v2927_v47 = vadd.f32 %v10178_v30, %v8848_v59 }
 0x349   :  { %v3233_v28 = vmax.f32 %v2987_v37, 0.0  ;;  %v1719_v0 = vpop.permute.xlu1 %1718  ;;  %v10177_v37 = vmov 0.0  }
 0x34a   :  { %v8900_v35 = vmax.f32 %v3218_v39, %v3234_v46  ;;  %5454 = vmatprep.mubr.msk.f32.mxu1 %vm2637_vm3, %v2621_v53  ;;  %v1792_v20 = vsel %vm1730_vm2, %v1719_v0, %v8683_v43 }
 0x34b   :  { %v8907_v27 = vmax.f32 %v3217_v25, %v3233_v28  ;;  %v2490_v7 = vpop.permute.xlu0 %2489  ;;  %v1920_v49 = vmax.f32 %v10174_v9, %v1792_v20  ;;  %v3221_v28 = vmax.f32 %v2927_v47, 0.0  ;;  %v3224_v20 = vmax.f32 %v2942_v33, 0.0 }
 0x34c   :  { %v2622_v5 = vmax.f32 %v1918_v11, %v2490_v7  ;;  %v2937_v7 = vadd.f32 %v8756_v24, %v8848_v59  ;;  %v2947_v24 = vadd.f32 %v8780_v54, %v8848_v59  ;;  %v2957_v54 = vadd.f32 %v8804_v58, %v8848_v59 }
 0x34d   :  { %v1723_v16 = vpop.permute.xlu1 %1722 }
 0x34e   :  { %5455 = vmatmul.mubr.msk.f32.gmra.mrb[122].mxu1 %vm2637_vm3, %v2622_v5  ;;  %v1793_v40 = vsel %vm1730_vm2, %v1723_v16, %v8713_v26  ;;  %v10176_v26 = vmax.f32 %v8694_v57, 0.0  ;;  %v3222_v57 = vmax.f32 %v2932_v41, 0.0  ;;  %v3227_v1 = vmax.f32 %v2957_v54, 0.0 }
 0x34f   :  { %v2492_v18 = vpop.permute.xlu0 %2491  ;;  %v1921_v19 = vmax.f32 %v10175_v8, %v1793_v40  ;;  %v3228_v8 = vmax.f32 %v2962_v12, 0.0 }
 0x350   :  { %v2623_v14 = vmax.f32 %v1919_v2, %v2492_v18 }
 0x351   :  { %v1727_v15 = vpop.permute.xlu1 %1726 }
 0x352   :  { %5457 = vmatprep.mubr.msk.f32.mxu1 %vm2637_vm3, %v2623_v14  ;;  %v1794_v10 = vsel %vm1730_vm2, %v1727_v15, %v8730_v22  ;;  %v3223_v14 = vmax.f32 %v2937_v7, 0.0  ;;  %v3752_v7 = vld [vmem:[%s9417_s3 + $0x40] sm:$0xff] }
 0x353   :  { %v2494_v44 = vpop.permute.xlu0 %2493  ;;  %v1922_v52 = vmax.f32 %v10176_v26, %v1794_v10  ;;  %v3327_v10 = vld [vmem:[%s9416_s2 + $0x48] sm:$0xff] }
 0x354   :  { %v2624_v21 = vmax.f32 %v1920_v49, %v2494_v44 }
 0x355   :  { %v5399_v6 = vpop.f32.mrb[84].mxu1 }
 0x356   :  { %v3002_v55 = vadd.f32 %v5399_v6, %v8848_v59  ;;  %v2996_v43 = vpop.f32.mrb[85].mxu1  ;;  %5458 = vmatmul.mubr.msk.f32.gmra.mrb[124].mxu1 %vm2637_vm3, %v2624_v21  ;;  %v3226_v6 = vmax.f32 %v2952_v62, 0.0 }
 0x357   :  { %v2997_v13 = vadd.f32 %v2996_v43, %v8848_v59  ;;  %v3225_v43 = vmax.f32 %v2947_v24, 0.0 }
 0x358   :  { %v3236_v4 = vmax.f32 %v3002_v55, 0.0 }
 0x359   :  { %v3235_v61 = vmax.f32 %v2997_v13, 0.0 }
 0x35a   :  { %v8926_v60 = vmax.f32 %v3220_v3, %v3236_v4 }
 0x35b   :  { %v8928_v36 = vmax.f32 %v3219_v51, %v3235_v61  ;;  %v2496_v29 = vpop.permute.xlu0 %2495 }
 0x35c   :  { %v2625_v23 = vmax.f32 %v1921_v19, %v2496_v29  ;;  %v3328_v29 = vld [vmem:[%s9416_s2 + $0x50] sm:$0xff] }
 0x35d   :  { %v8981_v26 = vpack.c.bf16 %v3328_v29, %v3327_v10 }
 0x35e   :  { %5460 = vmatprep.mubr.msk.f32.mxu1 %vm2637_vm3, %v2625_v23 }
 0x35f   :  { %v2498_v45 = vpop.permute.xlu1 %2497  ;;  %5692 = vmatprep.subr.bf16.mxu0 %v8981_v26 }
 0x360   :  { %v2626_v38 = vmax.f32 %v1922_v52, %v2498_v45  ;;  %v2972_v45 = vadd.f32 %v8826_v34, %v8848_v59  ;;  %v3753_v34 = vld [vmem:[%s9417_s3 + $0x48] sm:$0xff] }
 0x362   :  { %5461 = vmatmul.mubr.msk.f32.gmra.mrb[126].mxu1 %vm2637_vm3, %v2626_v38  ;;  %v2967_v38 = vadd.f32 %v8828_v50, %v8848_v59  ;;  %v3755_v50 = vld [vmem:[%s9417_s3 + $0x58] sm:$0xff] }
 0x363   :  { %3829 = vmatprep.mubr.f32.mxu1 %v10177_v37 }
 0x365   :  { %v5402_v22 = vpop.f32.mrb[86].mxu1 }
 0x366   :  { %v3012_v39 = vadd.f32 %v5402_v22, %v8848_v59  ;;  %v3006_v46 = vpop.f32.mrb[87].mxu1 }
 0x367   :  { %v3007_v53 = vadd.f32 %v3006_v46, %v8848_v59 }
 0x368   :  { %v3238_v25 = vmax.f32 %v3012_v39, 0.0  ;;  %v3230_v39 = vmax.f32 %v2972_v45, 0.0 }
 0x369   :  { %v3237_v63 = vmax.f32 %v3007_v53, 0.0  ;;  %v3229_v53 = vmax.f32 %v2967_v38, 0.0 }
 0x36a   :  { %v8945_v11 = vmax.f32 %v3222_v57, %v3238_v25 }
 0x36b   :  { %v8947_v56 = vmax.f32 %v3221_v28, %v3237_v63 }
 0x375   :  { %v5405_v0 = vpop.f32.mrb[88].mxu1 }
 0x376   :  { %v3022_v5 = vadd.f32 %v5405_v0, %v8848_v59  ;;  %v3016_v17 = vpop.f32.mrb[89].mxu1  ;;  %v5703_v0 = vpack.c.bf16 %v3755_v50, %v3753_v34 }
 0x377   :  { %v3017_v2 = vadd.f32 %v3016_v17, %v8848_v59  ;;  %v3757_v17 = vld [vmem:[%s9417_s3 + $0x68] sm:$0xff] }
 0x378   :  { %v3240_v18 = vmax.f32 %v3022_v5, 0.0  ;;  %v3754_v5 = vld [vmem:[%s9417_s3 + $0x50] sm:$0xff]  ;;  %5704 = vmatprep.subr.bf16.mxu1 %v5703_v0 }
 0x379   :  { %v3239_v9 = vmax.f32 %v3017_v2, 0.0  ;;  %v3759_v2 = vld [vmem:[%s9417_s3 + $0x78] sm:$0xff] }
 0x37a   :  { %v8955_v49 = vmax.f32 %v3224_v20, %v3240_v18  ;;  %v5705_v20 = vpack.c.bf16 %v3754_v5, %v3752_v7  ;;  %v5707_v18 = vpack.c.bf16 %v3759_v2, %v3757_v17 }
 0x37b   :  { %v8957_v16 = vmax.f32 %v3223_v14, %v3239_v9  ;;  %v3756_v14 = vld [vmem:[%s9417_s3 + $0x60] sm:$0xff]  ;;  %v3758_v9 = vld [vmem:[%s9417_s3 + $0x70] sm:$0xff] }
 0x37c   :  { %5706 = vmatpush1.bf16.msra.mxu1 %v5705_v20  ;;  %v5709_v24 = vpack.c.bf16 %v3758_v9, %v3756_v14 }
 0x37d   :  { %5708 = vmatprep.subr.bf16.mxu1 %v5707_v18 }
 0x380   :  { %5710 = vmatpush1.bf16.msra.mxu1 %v5709_v24 }
 0x389   :  { %v5408_v44 = vpop.f32.mrb[90].mxu1 }
 0x38a   :  { %v3032_v42 = vadd.f32 %v5408_v44, %v8848_v59  ;;  %v3026_v21 = vpop.f32.mrb[91].mxu1 }
 0x38b   :  { %v3027_v48 = vadd.f32 %v3026_v21, %v8848_v59 }
 0x38c   :  { %v3242_v55 = vmax.f32 %v3032_v42, 0.0 }
 0x38d   :  { %v3241_v13 = vmax.f32 %v3027_v48, 0.0 }
 0x38e   :  { %v8965_v3 = vmax.f32 %v3226_v6, %v3242_v55 }
 0x38f   :  { %v8967_v40 = vmax.f32 %v3225_v43, %v3241_v13 }
 0x399   :  { %v5411_v4 = vpop.f32.mrb[92].mxu1 }
 0x39a   :  { %v3042_v51 = vadd.f32 %v5411_v4, %v8848_v59  ;;  %v3036_v15 = vpop.f32.mrb[93].mxu1 }
 0x39b   :  { %v3037_v61 = vadd.f32 %v3036_v15, %v8848_v59 }
 0x39c   :  { %v3244_v19 = vmax.f32 %v3042_v51, 0.0 }
 0x39d   :  { %v3243_v23 = vmax.f32 %v3037_v61, 0.0 }
 0x39e   :  { %v8983_v58 = vmax.f32 %v3228_v8, %v3244_v19 }
 0x39f   :  { %v8985_v52 = vmax.f32 %v3227_v1, %v3243_v23 }
 0x3a9   :  { %v5414_v41 = vpop.f32.mrb[94].mxu1 }
 0x3aa   :  { %v3052_v30 = vadd.f32 %v5414_v41, %v8848_v59  ;;  %v3046_v47 = vpop.f32.mrb[95].mxu1 }
 0x3ab   :  { %v3047_v22 = vadd.f32 %v3046_v47, %v8848_v59 }
 0x3ac   :  { %v3246_v46 = vmax.f32 %v3052_v30, 0.0 }
 0x3ad   :  { %v3245_v57 = vmax.f32 %v3047_v22, 0.0 }
 0x3ae   :  { %v8994_v25 = vmax.f32 %v3230_v39, %v3246_v46 }
 0x3af   :  { %v8996_v28 = vmax.f32 %v3229_v53, %v3245_v57 }
 0x3b9   :  { %v5417_v63 = vpop.f32.mrb[96].mxu1 }
 0x3ba   :  { %v3056_v33 = vpop.f32.mrb[97].mxu1  ;;  %v3062_v61 = vadd.f32 %v5417_v63, %v8848_v59 }
 0x3bb   :  { %v3057_v8 = vadd.f32 %v3056_v33, %v8848_v59 }
 0x3bc   :  { %v3248_v23 = vmax.f32 %v3062_v61, 0.0 }
 0x3bd   :  { %v3247_v38 = vmax.f32 %v3057_v8, 0.0 }
 0x3c5   :  { %v5420_v62 = vpop.f32.mrb[98].mxu1 }
 0x3c6   :  { %v3066_v44 = vpop.f32.mrb[99].mxu1  ;;  %v3072_v22 = vadd.f32 %v5420_v62, %v8848_v59 }
 0x3c7   :  { %v3067_v46 = vadd.f32 %v3066_v44, %v8848_v59 }
 0x3c8   :  { %v3250_v50 = vmax.f32 %v3072_v22, 0.0 }
 0x3c9   :  { %v3249_v0 = vmax.f32 %v3067_v46, 0.0 }
 0x3cd   :  { %v5423_v42 = vpop.f32.mrb[100].mxu1 }
 0x3ce   :  { %v3076_v21 = vpop.f32.mrb[101].mxu1  ;;  %v3082_v20 = vadd.f32 %v5423_v42, %v8848_v59 }
 0x3cf   :  { %v3077_v14 = vadd.f32 %v3076_v21, %v8848_v59  ;;  %v3526_v21 = vld [vmem:[%s9416_s2 + $0x68] sm:$0xff] }
 0x3d0   :  { %v3252_v8 = vmax.f32 %v3082_v20, 0.0 }
 0x3d5   :  { %v5426_v48 = vpop.f32.mrb[102].mxu1 }
 0x3d6   :  { %v3086_v6 = vpop.f32.mrb[103].mxu1  ;;  %v3092_v42 = vadd.f32 %v5426_v48, %v8848_v59 }
 0x3dd   :  { %v9022_v55 = vpop.f32.mrb[104].mxu1 }
 0x3de   :  { %v9024_v43 = vpop.f32.mrb[105].mxu1 }
 0x3e5   :  { %v9026_v13 = vpop.f32.mrb[106].mxu1 }
 0x3e6   :  { %v9028_v12 = vpop.f32.mrb[107].mxu1 }
 0x3ed   :  { %v9030_v54 = vpop.f32.mrb[108].mxu1 }
 0x3ee   :  { %v9032_v4 = vpop.f32.mrb[109].mxu1 }
 0x3f5   :  { %v9034_v51 = vpop.f32.mrb[110].mxu1 }
 0x3f6   :  { %v9036_v15 = vpop.f32.mrb[111].mxu1 }
 0x3fd   :  { %v5441_v19 = vpop.f32.mrb[112].mxu1 }
 0x3fe   :  { %v3142_v10 = vadd.f32 %v5441_v19, %v8848_v59  ;;  %v3136_v29 = vpop.f32.mrb[113].mxu1 }
 0x3ff   :  { %v3137_v1 = vadd.f32 %v3136_v29, %v8848_v59 }
 0x400   :  { %v3264_v45 = vmax.f32 %v3142_v10, 0.0  ;;  %v3251_v10 = vmax.f32 %v3077_v14, 0.0 }
 0x401   :  { %v3263_v41 = vmax.f32 %v3137_v1, 0.0 }
 0x402   :  { %v9042_v30 = vmax.f32 %v3248_v23, %v3264_v45  ;;  %v3527_v45 = vld [vmem:[%s9416_s2 + $0x70] sm:$0xff] }
 0x403   :  { %v9044_v47 = vmax.f32 %v3247_v38, %v3263_v41  ;;  %v3087_v38 = vadd.f32 %v3086_v6, %v8848_v59  ;;  %v3102_v6 = vadd.f32 %v9022_v55, %v8848_v59 }
 0x404   :  { %v3312_v39 = vmax.f32 %v8868_v31, %v9042_v30  ;;  %v3122_v31 = vadd.f32 %v9030_v54, %v8848_v59 }
 0x405   :  { %v3311_v53 = vmax.f32 %v8873_v32, %v9044_v47  ;;  %v5444_v57 = vpop.f32.mrb[114].mxu1  ;;  %v3256_v55 = vmax.f32 %v3102_v6, 0.0 }
 0x406   :  { %v3152_v63 = vadd.f32 %v5444_v57, %v8848_v59  ;;  %v3146_v33 = vpop.f32.mrb[115].mxu1 }
 0x407   :  { %v3147_v34 = vadd.f32 %v3146_v33, %v8848_v59  ;;  %v5695_v33 = vpack.c.bf16 %v3527_v45, %v3526_v21 }
 0x408   :  { %v3266_v7 = vmax.f32 %v3152_v63, 0.0 }
 0x409   :  { %v3265_v5 = vmax.f32 %v3147_v34, 0.0  ;;  %v3254_v34 = vmax.f32 %v3092_v42, 0.0  ;;  %v3107_v42 = vadd.f32 %v9028_v12, %v8848_v59 }
 0x40a   :  { %v9054_v17 = vmax.f32 %v3250_v50, %v3266_v7  ;;  %v3253_v7 = vmax.f32 %v3087_v38, 0.0 }
 0x40b   :  { %v9056_v2 = vmax.f32 %v3249_v0, %v3265_v5 }
 0x40c   :  { %v3314_v18 = vmax.f32 %v8900_v35, %v9054_v17  ;;  %v3260_v17 = vmax.f32 %v3122_v31, 0.0 }
 0x40d   :  { %v3313_v9 = vmax.f32 %v8907_v27, %v9056_v2  ;;  %v5447_v62 = vpop.f32.mrb[116].mxu1  ;;  %v3117_v27 = vadd.f32 %v9032_v4, %v8848_v59 }
 0x40e   :  { %v3162_v24 = vadd.f32 %v5447_v62, %v8848_v59  ;;  %v3156_v44 = vpop.f32.mrb[117].mxu1 }
 0x40f   :  { %v3157_v61 = vadd.f32 %v3156_v44, %v8848_v59 }
 0x410   :  { %v3268_v19 = vmax.f32 %v3162_v24, 0.0 }
 0x411   :  { %v3267_v29 = vmax.f32 %v3157_v61, 0.0 }
 0x412   :  { %v3300_v1 = vmax.f32 %v3252_v8, %v3268_v19 }
 0x413   :  { %v3299_v23 = vmax.f32 %v3251_v10, %v3267_v29  ;;  %v5450_v22 = vpop.f32.mrb[118].mxu1  ;;  %v3630_v29 = vld [vmem:[%s9416_s2 + $0x80] sm:$0xff] }
 0x414   :  { %v3316_v41 = vmax.f32 %v8926_v60, %v3300_v1  ;;  %v3172_v57 = vadd.f32 %v5450_v22, %v8848_v59  ;;  %v3166_v48 = vpop.f32.mrb[119].mxu1  ;;  %v3097_v60 = vadd.f32 %v9024_v43, %v8848_v59 }
 0x415   :  { %v3315_v46 = vmax.f32 %v8928_v36, %v3299_v23  ;;  %v3167_v63 = vadd.f32 %v3166_v48, %v8848_v59  ;;  %v3132_v48 = vadd.f32 %v9034_v51, %v8848_v59  ;;  %v3745_v51 = vld [vmem:[%s9417_s3 + $0x8] sm:$0xff] }
 0x416   :  { %v3270_v50 = vmax.f32 %v3172_v57, 0.0  ;;  %v3255_v19 = vmax.f32 %v3097_v60, 0.0 }
 0x417   :  { %5467 = vmatprep.mubr.msk.f32.mxu0 %vm3331_vm4, %v3315_v46  ;;  %v3269_v0 = vmax.f32 %v3167_v63, 0.0  ;;  %v3127_v63 = vadd.f32 %v9036_v15, %v8848_v59  ;;  %v3262_v6 = vmax.f32 %v3132_v48, 0.0  ;;  %v3915_v48 = vld [vmem:[%s9417_s3 + $0xb0] sm:$0xff] }
 0x418   :  { %5468 = vmatmul.mubr.msk.f32.vlgmr.msra.gmra.mrb[128].mxu0 %vm3331_vm4, %v3316_v41  ;;  %v3302_v36 = vmax.f32 %v3254_v34, %v3270_v50 }
 0x419   :  { %v5453_v5 = vpop.f32.mrb[120].mxu1  ;;  %5694 = vmatpush3.bf16.msra.mxu0 %v8981_v26  ;;  %v3301_v20 = vmax.f32 %v3253_v7, %v3269_v0  ;;  %v3629_v26 = vld [vmem:[%s9416_s2 + $0x78] sm:$0xff]  ;;  %v3261_v0 = vmax.f32 %v3127_v63, 0.0  ;;  %v3994_v63 = vld [vmem:[%s9417_s3 + $0xc8] sm:$0xff] }
 0x41a   :  { %v3182_v14 = vadd.f32 %v5453_v5, %v8848_v59  ;;  %v3176_v62 = vpop.f32.mrb[121].mxu1  ;;  %5696 = vmatprep.subr.bf16.mxu0 %v5695_v33  ;;  %v3318_v24 = vmax.f32 %v8945_v11, %v3302_v36  ;;  %v5699_v45 = vpack.c.bf16 %v3630_v29, %v3629_v26 }
 0x41b   :  { %v3177_v44 = vadd.f32 %v3176_v62, %v8848_v59  ;;  %v3317_v61 = vmax.f32 %v8947_v56, %v3301_v20  ;;  %v3112_v56 = vadd.f32 %v9026_v13, %v8848_v59  ;;  %v5883_v62 = vmov 0.0|0.0  }
 0x41c   :  { %v3272_v8 = vmax.f32 %v3182_v14, 0.0  ;;  %v4096_v14 = vld [vmem:[%s9416_s2 + $0x98] sm:$0xff] }
 0x41d   :  { %v3271_v10 = vmax.f32 %v3177_v44, 0.0  ;;  %5470 = vmatprep.mubr.msk.f32.mxu0 %vm3331_vm4, %v3317_v61  ;;  %v3258_v32 = vmax.f32 %v3112_v56, 0.0  ;;  %v4097_v44 = vld [vmem:[%s9416_s2 + $0xa0] sm:$0xff]  ;;  %v4098_v61 = vld [vmem:[%s9416_s2 + $0xa8] sm:$0xff] }
 0x41e   :  { %v3304_v43 = vmax.f32 %v3256_v55, %v3272_v8  ;;  %5471 = vmatmul.mubr.msk.f32.gmra.mrb[130].mxu0 %vm3331_vm4, %v3318_v24  ;;  %v9169_v55 = vpack.c.bf16 %v4097_v44, %v4096_v14  ;;  %v4099_v8 = vld [vmem:[%s9416_s2 + $0xb0] sm:$0xff]  ;;  %v4996_v14 = vld [vmem:[%s9418_s4 + $0x3] ss:$8 sm:$0x3] }
 0x41f   :  { %v3303_v11 = vmax.f32 %v3255_v19, %v3271_v10  ;;  %5477 = vmatprep.mubr.msk.f32.mxu0 %vm3331_vm4, %v3311_v53  ;;  %v9179_v19 = vpack.c.bf16 %v4099_v8, %v4098_v61  ;;  %v3732_v10 = vld [vmem:[%s9418_s4 + $0x2] ss:$0 sm:$0xff]  ;;  %v10179_v44 = vld [vmem:[#allocation5_spill] sm:$0xff] }
 0x420   :  { %v3320_v1 = vmax.f32 %v8955_v49, %v3304_v43  ;;  %v10180_v61 = vsub.s32 0, %v10179_v44 }
 0x421   :  { %v3319_v23 = vmax.f32 %v8957_v16, %v3303_v11  ;;  %v5456_v21 = vpop.f32.mrb[122].mxu1  ;;  %v3257_v16 = vmax.f32 %v3107_v42, 0.0 }
 0x422   :  { %v3192_v38 = vadd.f32 %v5456_v21, %v8848_v59  ;;  %v3186_v41 = vpop.f32.mrb[123].mxu1  ;;  %5478 = vmatmul.mubr.msk.f32.vlgmr.msra.gmra.mrb[128].mxu0 %vm3331_vm4, %v3312_v39  ;;  %v4083_v8 = vrot.slane %v4996_v14, %v10180_v61 }
 0x423   :  { %v3187_v22 = vadd.f32 %v3186_v41, %v8848_v59  ;;  %5480 = vmatprep.mubr.msk.f32.mxu0 %vm3331_vm4, %v3313_v9  ;;  %5698 = vmatpush3.bf16.msra.mxu0 %v5695_v33 }
 0x424   :  { %v3274_v49 = vmax.f32 %v3192_v38, 0.0  ;;  %5700 = vmatprep.subr.bf16.mxu0 %v5699_v45 }
 0x425   :  { %v3273_v13 = vmax.f32 %v3187_v22, 0.0 }
 0x426   :  { %v3306_v12 = vmax.f32 %v3258_v32, %v3274_v49  ;;  %5481 = vmatmul.mubr.msk.f32.gmra.mrb[130].mxu0 %vm3331_vm4, %v3314_v18  ;;  %v3744_v49 = vld [vmem:[%s9417_s3] sm:$0xff] }
 0x427   :  { %v3305_v47 = vmax.f32 %v3257_v16, %v3273_v13  ;;  %5487 = vmatprep.mubr.msk.f32.mxu0 %vm3331_vm4, %v3319_v23  ;;  %v3746_v16 = vld [vmem:[%s9417_s3 + $0x10] sm:$0xff]  ;;  %v3749_v13 = vld [vmem:[%s9417_s3 + $0x28] sm:$0xff] }
 0x428   :  { %v3322_v30 = vmax.f32 %v8965_v3, %v3306_v12  ;;  %v3259_v3 = vmax.f32 %v3117_v27, 0.0  ;;  %v3751_v12 = vld [vmem:[%s9417_s3 + $0x38] sm:$0xff]  ;;  %v5713_v31 = vpack.c.bf16 %v3746_v16, %v3744_v49  ;;  %v4183_v49 = vld [vmem:[%s9416_s2 + $0xf0] sm:$0xff] }
 0x429   :  { %v3321_v39 = vmax.f32 %v8967_v40, %v3305_v47  ;;  %v5459_v53 = vpop.f32.mrb[124].mxu1  ;;  %v5715_v27 = vpack.c.bf16 %v3751_v12, %v3749_v13  ;;  %v4184_v13 = vld [vmem:[%s9416_s2 + $0xf8] sm:$0xff]  ;;  %v4185_v12 = vld [vmem:[%s9416_s2 + $0x100] sm:$0xff] }
 0x42a   :  { %v3202_v2 = vadd.f32 %v5459_v53, %v8848_v59  ;;  %v3196_v9 = vpop.f32.mrb[125].mxu1  ;;  %5488 = vmatmul.mubr.msk.f32.vlgmr.msra.gmra.mrb[128].mxu0 %vm3331_vm4, %v3320_v1  ;;  %v3750_v53 = vld [vmem:[%s9417_s3 + $0x30] sm:$0xff] }
 0x42b   :  { %v3197_v35 = vadd.f32 %v3196_v9, %v8848_v59  ;;  %5490 = vmatprep.mubr.msk.f32.mxu0 %vm3331_vm4, %v3321_v39  ;;  %5702 = vmatpush3.bf16.msra.mxu0 %v5699_v45  ;;  %v3748_v39 = vld [vmem:[%s9417_s3 + $0x20] sm:$0xff]  ;;  %v3912_v9 = vld [vmem:[%s9417_s3 + $0x98] sm:$0xff] }
 0x42c   :  { %v3276_v18 = vmax.f32 %v3202_v2, 0.0  ;;  %5735 = vmatprep.subr.bf16.mxu0 %v5883_v62  ;;  %v3910_v2 = vld [vmem:[%s9417_s3 + $0x88] sm:$0xff] }
 0x42d   :  { %v3275_v54 = vmax.f32 %v3197_v35, 0.0  ;;  %v5717_v35 = vpack.c.bf16 %v3750_v53, %v3748_v39 }
 0x42e   :  { %v3308_v46 = vmax.f32 %v3260_v17, %v3276_v18  ;;  %5491 = vmatmul.mubr.msk.f32.gmra.mrb[130].mxu0 %vm3331_vm4, %v3322_v30  ;;  %v5719_v17 = vpack.c.bf16 %v3912_v9, %v3910_v2  ;;  %v3909_v18 = vld [vmem:[%s9417_s3 + $0x80] sm:$0xff] }
 0x42f   :  { %v3307_v57 = vmax.f32 %v3259_v3, %v3275_v54  ;;  %v3911_v3 = vld [vmem:[%s9417_s3 + $0x90] sm:$0xff]  ;;  %v3914_v54 = vld [vmem:[%s9417_s3 + $0xa8] sm:$0xff] }
 0x430   :  { %v3324_v40 = vmax.f32 %v8983_v58, %v3308_v46  ;;  %v3916_v46 = vld [vmem:[%s9417_s3 + $0xb8] sm:$0xff] }
 0x431   :  { %v3323_v4 = vmax.f32 %v8985_v52, %v3307_v57  ;;  %v5721_v57 = vpack.c.bf16 %v3911_v3, %v3909_v18 }
 0x433   :  { %5497 = vmatprep.mubr.msk.f32.mxu0 %vm3331_vm4, %v3323_v4  ;;  %v3913_v4 = vld [vmem:[%s9417_s3 + $0xa0] sm:$0xff] }
 0x434   :  { %5498 = vmatmul.mubr.msk.f32.vlgmr.msra.gmra.mrb[128].mxu0 %vm3331_vm4, %v3324_v40  ;;  %v5723_v40 = vpack.c.bf16 %v3916_v46, %v3914_v54 }
 0x435   :  { %v5462_v33 = vpop.f32.mrb[126].mxu1 }
 0x436   :  { %v3212_v34 = vadd.f32 %v5462_v33, %v8848_v59  ;;  %v3206_v50 = vpop.f32.mrb[127].mxu1  ;;  %v3996_v33 = vld [vmem:[%s9417_s3 + $0xd8] sm:$0xff] }
 0x437   :  { %v3207_v7 = vadd.f32 %v3206_v50, %v8848_v59  ;;  %v3747_v59 = vld [vmem:[%s9417_s3 + $0x18] sm:$0xff]  ;;  %v5727_v50 = vpack.c.bf16 %v3996_v33, %v3994_v63 }
 0x438   :  { %v3278_v58 = vmax.f32 %v3212_v34, 0.0  ;;  %v5711_v15 = vpack.c.bf16 %v3747_v59, %v3745_v51  ;;  %v5725_v34 = vpack.c.bf16 %v3915_v48, %v3913_v4 }
 0x439   :  { %v3277_v52 = vmax.f32 %v3207_v7, 0.0  ;;  %v3993_v7 = vld [vmem:[%s9417_s3 + $0xc0] sm:$0xff] }
 0x43a   :  { %v3310_v60 = vmax.f32 %v3262_v6, %v3278_v58  ;;  %5712 = vmatprep.subr.bf16.mxu1 %v5711_v15  ;;  %v3995_v6 = vld [vmem:[%s9417_s3 + $0xd0] sm:$0xff]  ;;  %v3998_v58 = vld [vmem:[%s9417_s3 + $0xe8] sm:$0xff]  ;;  %v4100_v15 = vld [vmem:[%s9416_s2 + $0xb8] sm:$0xff] }
 0x43b   :  { %v3309_v36 = vmax.f32 %v3261_v0, %v3277_v52  ;;  %v4000_v0 = vld [vmem:[%s9417_s3 + $0xf8] sm:$0xff]  ;;  %v5729_v52 = vpack.c.bf16 %v3995_v6, %v3993_v7 }
 0x43c   :  { %v3326_v5 = vmax.f32 %v8994_v25, %v3310_v60  ;;  %v4094_v25 = vld [vmem:[%s9416_s2 + $0x88] sm:$0xff] }
 0x43d   :  { %v3325_v20 = vmax.f32 %v8996_v28, %v3309_v36  ;;  %v4095_v28 = vld [vmem:[%s9416_s2 + $0x90] sm:$0xff]  ;;  %v5731_v36 = vpack.c.bf16 %v4000_v0, %v3998_v58 }
 0x43e   :  { %v9163_v24 = vpack.c.bf16 %v4095_v28, %v4094_v25  ;;  %v4101_v25 = vld [vmem:[%s9416_s2 + $0xc0] sm:$0xff] }
 0x43f   :  { %5500 = vmatprep.mubr.msk.f32.mxu0 %vm3331_vm4, %v3325_v20  ;;  %v3999_v20 = vld [vmem:[%s9417_s3 + $0xf0] sm:$0xff]  ;;  %v9267_v28 = vpack.c.bf16 %v4101_v25, %v4100_v15 }
 0x440   :  { %5501 = vmatmul.mubr.msk.f32.gmra.mrb[130].mxu0 %vm3331_vm4, %v3326_v5  ;;  %v3997_v5 = vld [vmem:[%s9417_s3 + $0xe0] sm:$0xff] }
 0x441   :  { %5737 = vmatpush3.bf16.msra.mxu0 %v9163_v24  ;;  %v5733_v51 = vpack.c.bf16 %v3999_v20, %v3997_v5  ;;  %5519 = vmatprep.mubr.msk.f32.mxu0 %vm5884_vm6, %v10177_v37 }
 0x442   :  { %5738 = vmatprep.subr.bf16.mxu0 %v5883_v62 }
 0x445   :  { %5740 = vmatpush3.bf16.msra.mxu0 %v9169_v55 }
 0x446   :  { %5741 = vmatprep.subr.bf16.mxu0 %v5883_v62 }
 0x449   :  { %5743 = vmatpush3.bf16.msra.mxu0 %v9179_v19 }
 0x44a   :  { %5744 = vmatprep.subr.bf16.mxu0 %v5883_v62 }
 0x44d   :  { %5746 = vmatpush3.bf16.msra.mxu0 %v9267_v28 }
 0x44e   :  { %5759 = vmatprep.subr.bf16.mxu0 %v5883_v62 }
 0x507   :  { %v5499_v43 = vpop.f32.mrb[128].mxu0 }
 0x508   :  { %v3734_v26 = vadd.f32 %v5499_v43, %v3732_v10  ;;  %v3709_v29 = vpop.f32.mrb[129].mxu0 }
 0x509   :  { %v3733_v11 = vadd.f32 %v3732_v10, %v3709_v29 }
 0x50a   :  { %v3738_v56 = vmax.f32 %v3734_v26, 0.0 }
 0x50b   :  { %v3737_v1 = vmax.f32 %v3733_v11, 0.0 }
 0x50d   :  { %v3741_v42 = vmax.f32 %v3737_v1, %v3738_v56 }
 0x513   :  { %v5502_v23 = vpop.f32.mrb[130].mxu0 }
 0x514   :  { %v3736_v21 = vadd.f32 %v5502_v23, %v3732_v10  ;;  %v3719_v45 = vpop.f32.mrb[131].mxu0  ;;  %v4178_v23 = vld [vmem:[%s9416_s2 + $0xc8] sm:$0xff] }
 0x515   :  { %v3735_v38 = vadd.f32 %v3732_v10, %v3719_v45  ;;  %v10181_v10 = vsub.s32 1, %v10179_v44  ;;  %v4180_v45 = vld [vmem:[%s9416_s2 + $0xd8] sm:$0xff] }
 0x516   :  { %v3740_v41 = vmax.f32 %v3736_v21, 0.0  ;;  %v4179_v21 = vld [vmem:[%s9416_s2 + $0xd0] sm:$0xff] }
 0x517   :  { %v3739_v22 = vmax.f32 %v3735_v38, 0.0  ;;  %v4087_v43 = vrot.slane %v4996_v14, %v10181_v10  ;;  %v9302_v38 = vpack.c.bf16 %v4179_v21, %v4178_v23 }
 0x519   :  { %v3742_v32 = vmax.f32 %v3739_v22, %v3740_v41  ;;  %v4181_v41 = vld [vmem:[%s9416_s2 + $0xe0] sm:$0xff] }
 0x51a   :  { %v9308_v22 = vpack.c.bf16 %v4181_v41, %v4180_v45 }
 0x51b   :  { %v3743_v47 = vmax.f32 %v3741_v42, %v3742_v32  ;;  %v4182_v32 = vld [vmem:[%s9416_s2 + $0xe8] sm:$0xff] }
 0x51c   :  { %v9318_v16 = vpack.c.bf16 %v4183_v49, %v4182_v32 }
 0x51d   :  { %v3761_v30 = vrot.slane %v3743_v47, 2  ;;  %v3917_v60 = vrot.slane %v3743_v47, 4  ;;  %v4001_v59 = vrot.slane %v3743_v47, 6 }
 0x51f   :  { %4992 = vmatmul.mubr.msk.f32.vlgmr.msra.gmra.mrb[128].mxu1 %vm3762_vm5, %v3761_v30 }
 0x520   :  { %5714 = vmatpush1.bf16.msra.mxu1 %v5713_v31  ;;  %3902 = vmatprep.mubr.f32.mxu1 %v10177_v37 }
 0x521   :  { %5716 = vmatprep.subr.bf16.mxu1 %v5715_v27 }
 0x524   :  { %5718 = vmatpush1.bf16.msra.mxu1 %v5717_v35 }
 0x525   :  { %5720 = vmatprep.subr.bf16.mxu1 %v5719_v17 }
 0x527   :  { %4993 = vmatmul.mubr.msk.f32.vlgmr.msra.gmra.mrb[128].mxu1 %vm3762_vm5, %v3743_v47  ;;  %v9329_v47 = vpack.c.bf16 %v4185_v12, %v4184_v13 }
 0x528   :  { %5722 = vmatpush1.bf16.msra.mxu1 %v5721_v57  ;;  %3984 = vmatprep.mubr.f32.mxu1 %v10177_v37 }
 0x529   :  { %5724 = vmatprep.subr.bf16.mxu1 %v5723_v40 }
 0x52c   :  { %5726 = vmatpush1.bf16.msra.mxu1 %v5725_v34 }
 0x52d   :  { %5728 = vmatprep.subr.bf16.mxu1 %v5727_v50 }
 0x52f   :  { %4994 = vmatmul.mubr.msk.f32.vlgmr.msra.gmra.mrb[128].mxu1 %vm3762_vm5, %v3917_v60 }
 0x530   :  { %5730 = vmatpush1.bf16.msra.mxu1 %v5729_v52  ;;  %4068 = vmatprep.mubr.f32.mxu1 %v10177_v37 }
 0x531   :  { %5732 = vmatprep.subr.bf16.mxu1 %v5731_v36 }
 0x534   :  { %5734 = vmatpush1.bf16.msra.mxu1 %v5733_v51 }
 0x535   :  { %5747 = vmatprep.subr.bf16.mxu1 %v5883_v62 }
 0x537   :  { %4995 = vmatmul.mubr.msk.f32.vlgmr.msra.gmra.mrb[128].mxu1 %vm3762_vm5, %v4001_v59 }
 0x538   :  { %5538 = vmatprep.mubr.msk.f32.mxu1 %vm5884_vm6, %v10177_v37  ;;  %5749 = vmatpush3.bf16.msra.mxu1 %v9302_v38 }
 0x539   :  { %5750 = vmatprep.subr.bf16.mxu1 %v5883_v62 }
 0x53c   :  { %5752 = vmatpush3.bf16.msra.mxu1 %v9308_v22 }
 0x53d   :  { %5753 = vmatprep.subr.bf16.mxu1 %v5883_v62 }
 0x540   :  { %5755 = vmatpush3.bf16.msra.mxu1 %v9318_v16 }
 0x541   :  { %5756 = vmatprep.subr.bf16.mxu1 %v5883_v62 }
 0x544   :  { %5758 = vmatpush3.bf16.msra.mxu1 %v9329_v47 }
 0x545   :  { %5771 = vmatprep.subr.bf16.mxu1 %v5883_v62 }
 0x60a   :  { %v4070_v26 = vpop.f32.mrb[128].mxu1 }
 0x60b   :  { %v4090_v29 = vadd.f32 %v4083_v8, %v4070_v26  ;;  %v4072_v11 = vpop.f32.mrb[129].mxu1 }
 0x60c   :  { %v4091_v56 = vadd.f32 %v4087_v43, %v4072_v11 }
 0x60d   :  { %v4092_v1 = vmax.f32 %v4090_v29, 0.0 }
 0x60e   :  { %v4093_v42 = vmax.f32 %v4091_v56, 0.0 }
 0x60f   :  { %4273 = vrot.lane.b32.xlu0 %v4092_v1, %s5885_s9  ;;  %5520 = vmatmul.mubr.msk.f32.vlgmr.msra.gmra.mrb[132].mxu0 %vm4103_vm7, %v4092_v1 }
 0x610   :  { %4608 = vrot.lane.b32.xlu1 %v4093_v42, %s5885_s9  ;;  %5761 = vmatpush3.bf16.msra.mxu0 %v9163_v24 }
 0x611   :  { %5762 = vmatprep.subr.bf16.mxu0 %v5883_v62  ;;  %5557 = vmatprep.mubr.msk.f32.mxu0 %vm5884_vm6, %v10177_v37 }
 0x614   :  { %5764 = vmatpush3.bf16.msra.mxu0 %v9169_v55 }
 0x615   :  { %5765 = vmatprep.subr.bf16.mxu0 %v5883_v62 }
 0x618   :  { %5767 = vmatpush3.bf16.msra.mxu0 %v9179_v19 }
 0x619   :  { %5768 = vmatprep.subr.bf16.mxu0 %v5883_v62 }
 0x61c   :  { %5770 = vmatpush3.bf16.msra.mxu0 %v9267_v28 }
 0x61d   :  { %5783 = vmatprep.subr.bf16.mxu0 %v5883_v62 }
 0x681   :  { %v4274_v31 = vpop.permute.xlu0 %4273 }
 0x682   :  { %5558 = vmatmul.mubr.msk.f32.vlgmr.msra.gmra.mrb[134].mxu0 %vm4103_vm7, %v4274_v31  ;;  %v4609_v30 = vpop.permute.xlu1 %4608 }
 0x683   :  { %5785 = vmatpush3.bf16.msra.mxu0 %v9163_v24  ;;  %5595 = vmatprep.mubr.msk.f32.mxu0 %vm5884_vm6, %v10177_v37 }
 0x684   :  { %5786 = vmatprep.subr.bf16.mxu0 %v5883_v62 }
 0x687   :  { %5788 = vmatpush3.bf16.msra.mxu0 %v9169_v55 }
 0x688   :  { %5789 = vmatprep.subr.bf16.mxu0 %v5883_v62 }
 0x68b   :  { %5791 = vmatpush3.bf16.msra.mxu0 %v9179_v19 }
 0x68c   :  { %5792 = vmatprep.subr.bf16.mxu0 %v5883_v62 }
 0x68f   :  { %5794 = vmatpush3.bf16.msra.mxu0 %v9267_v28 }
 0x690   :  { %5807 = vmatprep.subr.bf16.mxu0 %v5883_v62 }
 0x692   :  { %5596 = vmatmul.mubr.msk.f32.vlgmr.msra.gmra.mrb[136].mxu0 %vm4103_vm7, %v4093_v42 }
 0x693   :  { %5809 = vmatpush3.bf16.msra.mxu0 %v9163_v24  ;;  %5633 = vmatprep.mubr.msk.f32.mxu0 %vm5884_vm6, %v10177_v37  ;;  %v4102_v24 = vld [vmem:[%s9418_s4 + $0x4] ss:$0 sm:$0xff] }
 0x694   :  { %5810 = vmatprep.subr.bf16.mxu0 %v5883_v62 }
 0x697   :  { %5812 = vmatpush3.bf16.msra.mxu0 %v9169_v55 }
 0x698   :  { %5813 = vmatprep.subr.bf16.mxu0 %v5883_v62 }
 0x69b   :  { %5815 = vmatpush3.bf16.msra.mxu0 %v9179_v19 }
 0x69c   :  { %5816 = vmatprep.subr.bf16.mxu0 %v5883_v62 }
 0x69f   :  { %5818 = vmatpush3.bf16.msra.mxu0 %v9267_v28 }
 0x6a2   :  { %5634 = vmatmul.mubr.msk.f32.vlgmr.msra.gmra.mrb[138].mxu0 %vm4103_vm7, %v4609_v30 }
 0x6e2   :  { %v4173_v27 = vpop.f32.mrb[132].mxu0 }
 0x6e3   :  { %v4174_v39 = vadd.f32 %v4173_v27, %v4102_v24  ;;  %v5521_v53 = vpop.f32.mrb[133].mxu0 }
 0x6e5   :  { %v4177_v2 = vmax.f32 %v4174_v39, 0.0 }
 0x6e7   :  { %5539 = vmatmul.mubr.msk.f32.vlgmr.msra.gmra.mrb[130].mxu1 %vm4103_vm7, %v4177_v2 }
 0x6e8   :  { %5773 = vmatpush3.bf16.msra.mxu1 %v9302_v38  ;;  %5576 = vmatprep.mubr.msk.f32.mxu1 %vm5884_vm6, %v10177_v37 }
 0x6e9   :  { %5774 = vmatprep.subr.bf16.mxu1 %v5883_v62 }
 0x6ec   :  { %5776 = vmatpush3.bf16.msra.mxu1 %v9308_v22 }
 0x6ed   :  { %5777 = vmatprep.subr.bf16.mxu1 %v5883_v62 }
 0x6f0   :  { %5779 = vmatpush3.bf16.msra.mxu1 %v9318_v16 }
 0x6f1   :  { %5780 = vmatprep.subr.bf16.mxu1 %v5883_v62 }
 0x6f4   :  { %5782 = vmatpush3.bf16.msra.mxu1 %v9329_v47 }
 0x6f5   :  { %5795 = vmatprep.subr.bf16.mxu1 %v5883_v62 }
 0x755   :  { %v4343_v55 = vpop.f32.mrb[134].mxu0 }
 0x756   :  { %v4344_v19 = vadd.f32 %v4343_v55, %v4102_v24  ;;  %v5559_v9 = vpop.f32.mrb[135].mxu0 }
 0x758   :  { %v4347_v35 = vmax.f32 %v4344_v19, 0.0 }
 0x75a   :  { %5577 = vmatmul.mubr.msk.f32.vlgmr.msra.gmra.mrb[132].mxu1 %vm4103_vm7, %v4347_v35 }
 0x75b   :  { %5797 = vmatpush3.bf16.msra.mxu1 %v9302_v38  ;;  %5614 = vmatprep.mubr.msk.f32.mxu1 %vm5884_vm6, %v10177_v37 }
 0x75c   :  { %5798 = vmatprep.subr.bf16.mxu1 %v5883_v62 }
 0x75f   :  { %5800 = vmatpush3.bf16.msra.mxu1 %v9308_v22 }
 0x760   :  { %5801 = vmatprep.subr.bf16.mxu1 %v5883_v62 }
 0x763   :  { %5803 = vmatpush3.bf16.msra.mxu1 %v9318_v16 }
 0x764   :  { %5804 = vmatprep.subr.bf16.mxu1 %v5883_v62 }
 0x765   :  { %v4510_v17 = vpop.f32.mrb[136].mxu0 }
 0x766   :  { %v4511_v18 = vadd.f32 %v4510_v17, %v4102_v24  ;;  %v5597_v3 = vpop.f32.mrb[137].mxu0 }
 0x767   :  { %5806 = vmatpush3.bf16.msra.mxu1 %v9329_v47 }
 0x768   :  { %v4514_v54 = vmax.f32 %v4511_v18, 0.0  ;;  %5819 = vmatprep.subr.bf16.mxu1 %v5883_v62 }
 0x76a   :  { %5615 = vmatmul.mubr.msk.f32.vlgmr.msra.gmra.mrb[134].mxu1 %vm4103_vm7, %v4514_v54 }
 0x76b   :  { %5821 = vmatpush3.bf16.msra.mxu1 %v9302_v38  ;;  %5652 = vmatprep.mubr.msk.f32.mxu1 %vm5884_vm6, %v10177_v37  ;;  %v4186_v37 = vld [vmem:[%s9418_s4 + $0x5] ss:$0 sm:$0xff]  ;;  %s5886_s4 = smov [#allocation2]  }
 0x76c   :  { %5822 = vmatprep.subr.bf16.mxu1 %v5883_v62  ;;  %s4773_s28 = sshll.u32 %s5886_s4, 4  ;;  %s4774_s28 = int_to_ptr.vmem [resolvable:$true] %s4773_s28 }
 0x76d   :  { %s5856_s1 = scalar_lea.vmem %s4774_s28, 128  ;;  %p5861_p1 = scmp.lt.s32.totalorder %s4774_s28, %s4774_s28 }
 0x76e   :  { %p5857_p0 = scmp.ne.s32.totalorder %s4774_s28, %s5856_s1  ;;  %p5862_p2 = scmp.lt.s32.totalorder %s5856_s1, %s5856_s1 }
 0x76f   :  { %5824 = vmatpush3.bf16.msra.mxu1 %v9308_v22 }
 0x770   :  { %5825 = vmatprep.subr.bf16.mxu1 %v5883_v62  ;;  %p5863_p3 = por %p5862_p2, %p5861_p1 }
 0x772   :  { %p5864_p4 = pnand %p5863_p3, %p5857_p0 }
 0x773   :  { %5827 = vmatpush3.bf16.msra.mxu1 %v9318_v16 }
 0x774   :  { %5828 = vmatprep.subr.bf16.mxu1 %v5883_v62 }
 0x775   :  { %v4678_v46 = vpop.f32.mrb[138].mxu0 }
 0x776   :  { %v4679_v57 = vadd.f32 %v4678_v46, %v4102_v24  ;;  %v5635_v40 = vpop.f32.mrb[139].mxu0 }
 0x777   :  { %5830 = vmatpush3.bf16.msra.mxu1 %v9329_v47 }
 0x778   :  { %v4682_v4 = vmax.f32 %v4679_v57, 0.0 }
 0x77a   :  { %5653 = vmatmul.mubr.msk.f32.vlgmr.msra.gmra.mrb[136].mxu1 %vm4103_vm7, %v4682_v4 }
 0x7ba   :  { %v4256_v48 = vpop.f32.mrb[130].mxu1 }
 0x7bb   :  { %v4257_v63 = vadd.f32 %v4256_v48, %v4186_v37  ;;  %v5540_v33 = vpop.f32.mrb[131].mxu1 }
 0x7bd   :  { %4261 = vst.msk [vmem:[#allocation2] sm:$0x1] %vm4260_vm8, %v4257_v63 }
 0x7be   :  { %4263 = vst.msk [vmem:[#allocation2 + $0x3] sm:$0x2] %vm4262_vm9, %v4257_v63 }
 0x82d   :  { %v4426_v62 = vpop.f32.mrb[132].mxu1 }
 0x82e   :  { %v4427_v34 = vadd.f32 %v4426_v62, %v4186_v37  ;;  %v5578_v50 = vpop.f32.mrb[133].mxu1 }
 0x830   :  { %4430 = vst.msk [vmem:[#allocation2 + $0x1] sm:$0x1] %vm4260_vm8, %v4427_v34 }
 0x831   :  { %4431 = vst.msk [vmem:[#allocation2 + $0x4] sm:$0x2] %vm4262_vm9, %v4427_v34 }
 0x83d   :  { %v4593_v7 = vpop.f32.mrb[134].mxu1 }
 0x83e   :  { %v4594_v6 = vadd.f32 %v4593_v7, %v4186_v37  ;;  %v5616_v58 = vpop.f32.mrb[135].mxu1 }
 0x840   :  { %4597 = vst.msk [vmem:[#allocation2 + $0x2] sm:$0x1] %vm4260_vm8, %v4594_v6 }
 0x841   :  { %4598 = vst.msk [vmem:[#allocation2 + $0x5] sm:$0x2] %vm4262_vm9, %v4594_v6 }
 0x84d   :  { %v4761_v0 = vpop.f32.mrb[136].mxu1 }
 0x84e   :  { %v4762_v52 = vadd.f32 %v4761_v0, %v4186_v37  ;;  %v5654_v60 = vpop.f32.mrb[137].mxu1 }
 0x850   :  { %4765 = vst.msk [vmem:[#allocation2 + $0x3] sm:$0x1] %vm4260_vm8, %v4762_v52 }
 0x851   :  { %4766 = vst.msk [vmem:[#allocation2 + $0x6] sm:$0x2] %vm4262_vm9, %v4762_v52 }
 0x852   :  { %5867 = shalt.err (!%p5864_p4)
}
 0x853   :  { %s5868_s6 = scalar_lea.hbm %s9419_s5, 128 }
 0x854   :  { %p5869_p5 = scmp.ne.s32.totalorder %s9419_s5, %s5868_s6  ;;  %p5872_p6 = scmp.lt.u32.totalorder %s5868_s6, %s9419_s5 }
 0x856   :  { %p5874_p7 = pnand %p5872_p6, %p5869_p5 }
 0x858   :  { %5877 = shalt.err (!%p5874_p7)
}
 0x859   :  { %4776 = dma.vmem_to_hbm [thread:$0]  %s4774_s28, 128, %s9419_s5, [#allocation3]  }
 0x85a   :  { %5878 = dma.done.wait [#allocation3], 128  }
 0x85b   :  { %5879 = vsyncadd [#allocation3], 4294967168 }
 0x85c   :  { %4780 = vsyncpa [#allocation3], 1 }

</bundles_post_ra>
